<compile_context>
chip_gen: v6e
topology: v6e:2x2x1
jax: 0.10.0
libtpu: 0.0.40
codegen_flags: <defaults>
</compile_context>

<pallas_src>
import jax
import jax.numpy as jnp
from jax import lax
from jax.experimental import pallas as pl
from jax.experimental.pallas import tpu as pltpu


def textrnn_kernel(x_ref,                          # (Tt, Bt, E) bf16, time-major block
                   wih_f_ref, whh_f_ref, b_f_ref,  # forward cell: (E,4H) bf16, (H,4H) bf16, (1,4H) f32
                   wih_b_ref, b_b_ref,             # backward cell: (E,4H) bf16, (1,4H) f32
                   fcw_f_ref, fcw_b_ref, fcb_ref,  # split FC: (H,Cp) bf16, (H,Cp) bf16, (1,Cp) f32
                   out_ref,                        # (Bt, Cp) f32 log-probs
                   h_sc, c_sc, gx_sc, yb_sc):      # persistent VMEM scratch
    t_idx = pl.program_id(1)
    n_t = pl.num_programs(1)
    Tt, Bt, _E = x_ref.shape
    H = whh_f_ref.shape[0]

    def gate_act(g):
        # gate order [i | f | o | g]: one EUP tanh over the contiguous (Bt, 3H) slice
        # (sigmoid(x) = 0.5*(tanh(x/2)+1): 1 EUP push + cheap VPU scale/add) and one
        # tanh over the trailing (Bt, H) slice -> 2 EUP pushes per serial step.
        s = 0.5 * (jnp.tanh(0.5 * g[:, :3 * H]) + 1.0)
        i = s[:, 0 * H:1 * H]
        f = s[:, 1 * H:2 * H]
        o = s[:, 2 * H:3 * H]
        gg = jnp.tanh(g[:, 3 * H:])
        return i, f, o, gg

    # --- init persistent recurrent state at the first time block of each batch tile --
    @pl.when(t_idx == 0)
    def _init():
        h_sc[...] = jnp.zeros_like(h_sc)
        c_sc[...] = jnp.zeros_like(c_sc)

    x_blk = x_ref[...].reshape(Tt * Bt, _E)        # bf16, (Tt*Bt, E)

    # --- hoisted input projection: ONE bf16 MXU matmul (f32 accumulate) for the whole
    #     time block, bias folded in, result stored bf16 (halves gx VMEM).  Only
    #     h @ W_hh remains on the serial path below. ----------------------------------
    gx_sc[...] = (jnp.dot(x_blk, wih_f_ref[...], preferred_element_type=jnp.float32)
                  + b_f_ref[...]).astype(gx_sc.dtype)

    # --- backward direction: unconditional (no pl.when basic-block boundary, so the
    #     scheduler can overlap it with the recurrence); only the LAST grid step's
    #     value is consumed.  Zero initial state => h@W_hh vanishes and c_new == i*g. --
    xl = x_ref[Tt - 1]                             # (Bt, E) bf16, last row of this block
    gb = (jnp.dot(xl, wih_b_ref[...], preferred_element_type=jnp.float32)
          + b_b_ref[...])
    ib, _fb, ob, ggb = gate_act(gb)
    h_b = ob * jnp.tanh(ib * ggb)
    yb_sc[...] = (jnp.dot(h_b.astype(fcw_b_ref.dtype), fcw_b_ref[...],
                          preferred_element_type=jnp.float32)
                  + fcb_ref[...])                  # padded columns carry -1e30 bias

    # --- serial forward recurrence over this time block (grouped unroll) -------------
    whh_f = whh_f_ref[...]                         # value-level weight-stationary
    # TODO(synk): keep W_hh stationary in the MXU via pltpu.matmul_push_rhs /
    # matmul_acc_lhs / matmul_pop (generation-dependent MRF vs MRB result path).
    bf16 = whh_f.dtype
    align = 16 if Bt % 16 == 0 else 8              # bf16 sublane tile is 16 rows

    def step(s, carry):
        h, c = carry
        r = pl.multiple_of(s * Bt, align)
        g = (gx_sc[pl.ds(r, Bt), :].astype(jnp.float32)
             + jnp.dot(h.astype(bf16), whh_f, preferred_element_type=jnp.float32))
        i, f, o, gg = gate_act(g)
        c_new = f * c + i * gg
        h_new = o * jnp.tanh(c_new)
        return h_new, c_new

    # loop-carried h/c limits useful lookahead: grouped unroll instead of full unroll
    h_f, c_f = lax.fori_loop(0, Tt, step, (h_sc[...], c_sc[...]), unroll=min(Tt, 8))
    h_sc[...] = h_f
    c_sc[...] = c_f

    # --- last time block: split FC (no lane concat) + log_softmax --------------------
    @pl.when(t_idx == n_t - 1)
    def _fin():
        y = (jnp.dot(h_f.astype(fcw_f_ref.dtype), fcw_f_ref[...],
                     preferred_element_type=jnp.float32)
             + yb_sc[...])                         # backward partial already holds fc bias
        # Dropout: eval-mode identity.  Padded logit columns are ~-1e30 -> exp()==0,
        # so they never affect the softmax; wrapper slices them off.
        m = jnp.max(y, axis=-1, keepdims=True)
        z = y - m
        lse = jnp.log(jnp.sum(jnp.exp(z), axis=-1, keepdims=True))
        out_ref[...] = z - lse


def textrnn_forward(tokens, params, *, time_block=None, batch_block=None):
    """tokens: (B, T) int32. Returns (B, C) f32 log-probabilities."""
    emb_table = params["embedding"]                # (V, E) f32
    B, T = tokens.shape
    E = emb_table.shape[1]
    H = params["whh_f"].shape[0]
    C = params["fc_w"].shape[1]
    cdtype = jnp.bfloat16

    # Time-major embedding gather straight to (T, B, E) in bf16 (half the HBM stream;
    # no (B,T,E) intermediate, no transpose copy).
    # TODO(synk): for v5e, scalar-prefetch the token ids and gather embedding rows
    # inside the kernel (pl.Element / manual DMA) to avoid this HBM round-trip.
    x_tbe = jnp.take(emb_table, tokens.T, axis=0).astype(cdtype)   # (T, B, E)

    Tt = T if time_block is None else time_block
    assert T % Tt == 0, "time_block must divide T"
    Bt = B if batch_block is None else batch_block
    assert B % Bt == 0, "batch_block must divide B"
    assert Bt % 8 == 0, "batch tile must be a multiple of 8 sublanes (16 ideal for bf16)"
    n_t = T // Tt
    n_b = B // Bt

    # FC output padded to a full 128-lane tile; padded bias columns = -1e30 so the
    # padded logits never influence the log_softmax (sliced back to C below).
    Cp = ((C + 127) // 128) * 128
    fcw_f = jnp.zeros((H, Cp), cdtype).at[:, :C].set(params["fc_w"][:H].astype(cdtype))
    fcw_b = jnp.zeros((H, Cp), cdtype).at[:, :C].set(params["fc_w"][H:].astype(cdtype))
    fcb = jnp.full((1, Cp), -1e30, jnp.float32).at[:, :C].set(params["fc_b"])

    wih_f = params["wih_f"].astype(cdtype)
    whh_f = params["whh_f"].astype(cdtype)
    wih_b = params["wih_b"].astype(cdtype)
    b_f = params["b_f"].astype(jnp.float32)
    b_b = params["b_b"].astype(jnp.float32)

    # VMEM budget with headroom: ~48 MiB on v7x (64 MiB/TC physical), ~100 MiB on
    # v5e/v6e (128 MiB physical).  Re-derive time_block if you grow B/E/H.
    try:
        phys = pltpu.get_tpu_info().vmem_capacity_bytes
        vmem_limit = int(min(phys - 16 * 1024 * 1024, 100 * 1024 * 1024))
    except Exception:
        vmem_limit = 48 * 1024 * 1024

    def run(single_buffer_weights):
        def weight_spec(a):
            imap = lambda b, t, _nd=a.ndim: (0,) * _nd     # resident, never revolves
            if single_buffer_weights:
                return pl.BlockSpec(a.shape, imap, pipeline_mode=pl.Buffered(1))
            return pl.BlockSpec(a.shape, imap)

        return pl.pallas_call(
            textrnn_kernel,
            out_shape=jax.ShapeDtypeStruct((B, Cp), jnp.float32),
            grid_spec=pltpu.PrefetchScalarGridSpec(
                num_scalar_prefetch=0,
                grid=(n_b, n_t),                   # batch tiles parallel, time serial
                in_specs=[
                    pl.BlockSpec((Tt, Bt, E), lambda b, t: (t, b, 0)),  # streamed x
                    weight_spec(wih_f), weight_spec(whh_f), weight_spec(b_f),
                    weight_spec(wih_b), weight_spec(b_b),
                    weight_spec(fcw_f), weight_spec(fcw_b), weight_spec(fcb),
                ],
                out_specs=pl.BlockSpec((Bt, Cp), lambda b, t: (b, 0)),
                scratch_shapes=[
                    pltpu.VMEM((Bt, H), jnp.float32),          # h carry
                    pltpu.VMEM((Bt, H), jnp.float32),          # c carry
                    pltpu.VMEM((Tt * Bt, 4 * H), cdtype),      # hoisted gates (bf16)
                    pltpu.VMEM((Bt, Cp), jnp.float32),         # backward FC partial
                ]),
            compiler_params=pltpu.CompilerParams(
                dimension_semantics=("parallel", "arbitrary"),
                vmem_limit_bytes=vmem_limit),
        )(x_tbe, wih_f, whh_f, b_f, wih_b, b_b, fcw_f, fcw_b, fcb)

    try:
        out_padded = run(True)
    except Exception:
        # pl.Buffered(1) single-buffering unavailable on this jax build -> default
        # double-buffered resident weights (correctness unchanged).
        out_padded = run(False)

    return out_padded[:, :C]


def init_params(key, vocab_size, embed_size, hidden_size, class_num):
    ks = jax.random.split(key, 10)
    scale = 1.0 / jnp.sqrt(hidden_size)
    u = lambda k, shape: jax.random.uniform(k, shape, jnp.float32, -scale, scale)
    H4 = 4 * hidden_size
    return {
        "embedding": jax.random.normal(ks[0], (vocab_size, embed_size), jnp.float32),
        # forward cell (pre-transposed input-major, gate order [i|f|o|g]);
        # a PyTorch checkpoint ([i|f|g|o], (4H,E)) must be transposed + gate-permuted.
        "wih_f": u(ks[1], (embed_size, H4)),
        "whh_f": u(ks[2], (hidden_size, H4)),
        "b_f":   u(ks[3], (1, H4)),                # b_ih + b_hh combined
        # backward cell (whh_b only needed by the reference: zero initial state)
        "wih_b": u(ks[4], (embed_size, H4)),
        "whh_b": u(ks[5], (hidden_size, H4)),
        "b_b":   u(ks[6], (1, H4)),
        # fc
        "fc_w":  u(ks[7], (2 * hidden_size, class_num)),
        "fc_b":  u(ks[8], (1, class_num)),
    }


def reference_forward(tokens, params):
    """Pure-JAX reference with the kernel's dtype policy (bf16 operands, f32 accumulate),
    gate order [i|f|o|g]."""
    cd = jnp.bfloat16
    emb = jnp.take(params["embedding"], tokens, axis=0).astype(cd)   # (B, T, E)
    B, T, E = emb.shape
    H = params["whh_f"].shape[0]
    wih_f = params["wih_f"].astype(cd)
    whh_f = params["whh_f"].astype(cd)
    wih_b = params["wih_b"].astype(cd)
    whh_b = params["whh_b"].astype(cd)

    def cell(x_t, h, c, wih, whh, b):
        g = (jnp.dot(x_t, wih, preferred_element_type=jnp.float32)
             + jnp.dot(h.astype(cd), whh, preferred_element_type=jnp.float32) + b)
        i = jax.nn.sigmoid(g[:, :H])
        f = jax.nn.sigmoid(g[:, H:2 * H])
        o = jax.nn.sigmoid(g[:, 2 * H:3 * H])
        gg = jnp.tanh(g[:, 3 * H:])
        c = f * c + i * gg
        return o * jnp.tanh(c), c

    h = jnp.zeros((B, H), jnp.float32)
    c = jnp.zeros((B, H), jnp.float32)
    for t in range(T):
        h, c = cell(emb[:, t], h, c, wih_f, whh_f, params["b_f"])
    hb, _ = cell(emb[:, T - 1], jnp.zeros((B, H), jnp.float32),
                 jnp.zeros((B, H), jnp.float32), wih_b, whh_b, params["b_b"])
    y = (jnp.dot(h.astype(cd), params["fc_w"][:H].astype(cd),
                 preferred_element_type=jnp.float32)
         + jnp.dot(hb.astype(cd), params["fc_w"][H:].astype(cd),
                   preferred_element_type=jnp.float32)
         + params["fc_b"])
    return jax.nn.log_softmax(y, axis=1)


if __name__ == "__main__":
    # Small but lane/sublane-aligned shapes: H, E multiples of 128 so the [i|f|o]/g
    # gate slices are free register views; batch a multiple of 16 for bf16 sublanes.
    vocab_size, embed_size, hidden_size, class_num = 64, 128, 128, 8
    batch, seq = 16, 8

    key = jax.random.PRNGKey(0)
    kp, kx = jax.random.split(key)
    params = init_params(kp, vocab_size, embed_size, hidden_size, class_num)
    tokens = jax.random.randint(kx, (batch, seq), 0, vocab_size, dtype=jnp.int32)

    # time_block=4 -> 2 streamed grid steps: exercises the persistent-state path.
    out = textrnn_forward(tokens, params, time_block=4)
    out = jax.block_until_ready(out)

    ref = jax.block_until_ready(reference_forward(tokens, params))
    assert out.shape == (batch, class_num)
    max_err = float(jnp.max(jnp.abs(out - ref)))
    assert jnp.allclose(out, ref, atol=2e-2, rtol=2e-2), \
        f"mismatch vs pure-JAX reference (max |err| = {max_err})"

    print("KERNEL_OK")
</pallas_src>

<mosaic_0001>
module attributes {stable_mosaic.version = 11 : i64} {
  func.func @textrnn_kernel(%arg0: i32, %arg1: i32, %arg2: memref<4x16x128xbf16, #tpu.memory_space<vmem>>, %arg3: memref<128x512xbf16, #tpu.memory_space<vmem>>, %arg4: memref<128x512xbf16, #tpu.memory_space<vmem>>, %arg5: memref<1x512xf32, #tpu.memory_space<vmem>>, %arg6: memref<128x512xbf16, #tpu.memory_space<vmem>>, %arg7: memref<1x512xf32, #tpu.memory_space<vmem>>, %arg8: memref<128x128xbf16, #tpu.memory_space<vmem>>, %arg9: memref<128x128xbf16, #tpu.memory_space<vmem>>, %arg10: memref<1x128xf32, #tpu.memory_space<vmem>>, %arg11: memref<16x128xf32, #tpu.memory_space<vmem>>, %arg12: memref<16x128xf32, #tpu.memory_space<vmem>>, %arg13: memref<16x128xf32, #tpu.memory_space<vmem>>, %arg14: memref<64x512xbf16, #tpu.memory_space<vmem>>, %arg15: memref<16x128xf32, #tpu.memory_space<vmem>>) attributes {dimension_semantics = [#tpu.dimension_semantics<parallel>, #tpu.dimension_semantics<arbitrary>], iteration_bounds = array<i64: 1, 2>, scalar_prefetch = 0 : i64, scratch_operands = 4 : i64, tpu.core_type = #tpu.core_type<tc>, window_params = [{transform_indices = @transform_0, window_bounds = array<i64: 4, 16, 128>}, {pipeline_mode = #tpu.pipeline_mode<synchronous>, transform_indices = @transform_1, window_bounds = array<i64: 128, 512>}, {pipeline_mode = #tpu.pipeline_mode<synchronous>, transform_indices = @transform_2, window_bounds = array<i64: 128, 512>}, {pipeline_mode = #tpu.pipeline_mode<synchronous>, transform_indices = @transform_3, window_bounds = array<i64: 1, 512>}, {pipeline_mode = #tpu.pipeline_mode<synchronous>, transform_indices = @transform_4, window_bounds = array<i64: 128, 512>}, {pipeline_mode = #tpu.pipeline_mode<synchronous>, transform_indices = @transform_5, window_bounds = array<i64: 1, 512>}, {pipeline_mode = #tpu.pipeline_mode<synchronous>, transform_indices = @transform_6, window_bounds = array<i64: 128, 128>}, {pipeline_mode = #tpu.pipeline_mode<synchronous>, transform_indices = @transform_7, window_bounds = array<i64: 128, 128>}, {pipeline_mode = #tpu.pipeline_mode<synchronous>, transform_indices = @transform_8, window_bounds = array<i64: 1, 128>}, {transform_indices = @transform_9, window_bounds = array<i64: 16, 128>}]} {
    %c0_i32 = arith.constant 0 : i32
    %0 = arith.cmpi eq, %arg1, %c0_i32 : i32
    %1 = arith.extui %0 : i1 to i32
    %c0_i32_0 = arith.constant 0 : i32
    %2 = arith.cmpi ne, %1, %c0_i32_0 : i32
    scf.if %2 {
      %cst_62 = arith.constant 0.000000e+00 : f32
      %153 = vector.broadcast %cst_62 : f32 to vector<16x128xf32>
      %c0_63 = arith.constant 0 : index
      %c0_64 = arith.constant 0 : index
      %154 = vector.load %arg12[%c0_63, %c0_64] : memref<16x128xf32, #tpu.memory_space<vmem>>, vector<16x128xf32>
      tpu.vector_store %arg12[%c0_63, %c0_64], %153 {strides = array<i32>} : memref<16x128xf32, #tpu.memory_space<vmem>>, vector<16x128xf32>,
      %cst_65 = arith.constant 0.000000e+00 : f32
      %155 = vector.broadcast %cst_65 : f32 to vector<16x128xf32>
      %c0_66 = arith.constant 0 : index
      %c0_67 = arith.constant 0 : index
      %156 = vector.load %arg13[%c0_66, %c0_67] : memref<16x128xf32, #tpu.memory_space<vmem>>, vector<16x128xf32>
      tpu.vector_store %arg13[%c0_66, %c0_67], %155 {strides = array<i32>} : memref<16x128xf32, #tpu.memory_space<vmem>>, vector<16x128xf32>,
    } else {
    }
    %c0 = arith.constant 0 : index
    %c0_1 = arith.constant 0 : index
    %c0_2 = arith.constant 0 : index
    %3 = vector.load %arg2[%c0, %c0_1, %c0_2] : memref<4x16x128xbf16, #tpu.memory_space<vmem>>, vector<4x16x128xbf16>
    %4 = vector.shape_cast %3 : vector<4x16x128xbf16> to vector<64x128xbf16>
    %c0_3 = arith.constant 0 : index
    %c0_4 = arith.constant 0 : index
    %5 = vector.load %arg3[%c0_3, %c0_4] : memref<128x512xbf16, #tpu.memory_space<vmem>>, vector<128x512xbf16>
    %cst = arith.constant dense<0.000000e+00> : vector<64x512xf32>
    %6 = tpu.matmul %4, %5, %cst {dimension_numbers = #tpu.dot_dimension_numbers<[1], [0], [0], [1], [0, 0, 1, 1], [], []>} : vector<64x128xbf16>, vector<128x512xbf16>, vector<64x512xf32> -> vector<64x512xf32>
    %c0_5 = arith.constant 0 : index
    %c0_6 = arith.constant 0 : index
    %7 = vector.load %arg5[%c0_5, %c0_6] : memref<1x512xf32, #tpu.memory_space<vmem>>, vector<1x512xf32>
    %8 = vector.broadcast %7 : vector<1x512xf32> to vector<64x512xf32>
    %9 = arith.addf %6, %8 : vector<64x512xf32>
    %10 = arith.truncf %9 : vector<64x512xf32> to vector<64x512xbf16>
    %c0_7 = arith.constant 0 : index
    %c0_8 = arith.constant 0 : index
    %11 = vector.load %arg14[%c0_7, %c0_8] : memref<64x512xbf16, #tpu.memory_space<vmem>>, vector<64x512xbf16>
    tpu.vector_store %arg14[%c0_7, %c0_8], %10 {strides = array<i32>} : memref<64x512xbf16, #tpu.memory_space<vmem>>, vector<64x512xbf16>,
    %c3 = arith.constant 3 : index
    %c0_9 = arith.constant 0 : index
    %c0_10 = arith.constant 0 : index
    %12 = vector.load %arg2[%c3, %c0_9, %c0_10] : memref<4x16x128xbf16, #tpu.memory_space<vmem>>, vector<1x16x128xbf16>
    %13 = vector.shape_cast %12 : vector<1x16x128xbf16> to vector<16x128xbf16>
    %c0_11 = arith.constant 0 : index
    %c0_12 = arith.constant 0 : index
    %14 = vector.load %arg6[%c0_11, %c0_12] : memref<128x512xbf16, #tpu.memory_space<vmem>>, vector<128x512xbf16>
    %cst_13 = arith.constant dense<0.000000e+00> : vector<16x512xf32>
    %15 = tpu.matmul %13, %14, %cst_13 {dimension_numbers = #tpu.dot_dimension_numbers<[1], [0], [0], [1], [0, 0, 1, 1], [], []>} : vector<16x128xbf16>, vector<128x512xbf16>, vector<16x512xf32> -> vector<16x512xf32>
    %c0_14 = arith.constant 0 : index
    %c0_15 = arith.constant 0 : index
    %16 = vector.load %arg7[%c0_14, %c0_15] : memref<1x512xf32, #tpu.memory_space<vmem>>, vector<1x512xf32>
    %17 = vector.broadcast %16 : vector<1x512xf32> to vector<16x512xf32>
    %18 = arith.addf %15, %17 : vector<16x512xf32>
    %19 = vector.extract_strided_slice %18 {offsets = [0, 0], sizes = [16, 384], strides = [1, 1]} : vector<16x512xf32> to vector<16x384xf32>
    %cst_16 = arith.constant 5.000000e-01 : f32
    %20 = vector.broadcast %cst_16 : f32 to vector<16x384xf32>
    %21 = arith.mulf %20, %19 : vector<16x384xf32>
    %22 = math.tanh %21 : vector<16x384xf32>
    %cst_17 = arith.constant 1.000000e+00 : f32
    %23 = vector.broadcast %cst_17 : f32 to vector<16x384xf32>
    %24 = arith.addf %22, %23 : vector<16x384xf32>
    %cst_18 = arith.constant 5.000000e-01 : f32
    %25 = vector.broadcast %cst_18 : f32 to vector<16x384xf32>
    %26 = arith.mulf %25, %24 : vector<16x384xf32>
    %27 = vector.extract_strided_slice %26 {offsets = [0, 0], sizes = [16, 128], strides = [1, 1]} : vector<16x384xf32> to vector<16x128xf32>
    %28 = vector.extract_strided_slice %26 {offsets = [0, 256], sizes = [16, 128], strides = [1, 1]} : vector<16x384xf32> to vector<16x128xf32>
    %29 = vector.extract_strided_slice %18 {offsets = [0, 384], sizes = [16, 128], strides = [1, 1]} : vector<16x512xf32> to vector<16x128xf32>
    %30 = math.tanh %29 : vector<16x128xf32>
    %31 = arith.mulf %27, %30 : vector<16x128xf32>
    %32 = math.tanh %31 : vector<16x128xf32>
    %33 = arith.mulf %28, %32 : vector<16x128xf32>
    %34 = arith.truncf %33 : vector<16x128xf32> to vector<16x128xbf16>
    %c0_19 = arith.constant 0 : index
    %c0_20 = arith.constant 0 : index
    %35 = vector.load %arg9[%c0_19, %c0_20] : memref<128x128xbf16, #tpu.memory_space<vmem>>, vector<128x128xbf16>
    %cst_21 = arith.constant dense<0.000000e+00> : vector<16x128xf32>
    %36 = tpu.matmul %34, %35, %cst_21 {dimension_numbers = #tpu.dot_dimension_numbers<[1], [0], [0], [1], [0, 0, 1, 1], [], []>} : vector<16x128xbf16>, vector<128x128xbf16>, vector<16x128xf32> -> vector<16x128xf32>
    %c0_22 = arith.constant 0 : index
    %c0_23 = arith.constant 0 : index
    %37 = vector.load %arg10[%c0_22, %c0_23] : memref<1x128xf32, #tpu.memory_space<vmem>>, vector<1x128xf32>
    %38 = vector.broadcast %37 : vector<1x128xf32> to vector<16x128xf32>
    %39 = arith.addf %36, %38 : vector<16x128xf32>
    %c0_24 = arith.constant 0 : index
    %c0_25 = arith.constant 0 : index
    %40 = vector.load %arg15[%c0_24, %c0_25] : memref<16x128xf32, #tpu.memory_space<vmem>>, vector<16x128xf32>
    tpu.vector_store %arg15[%c0_24, %c0_25], %39 {strides = array<i32>} : memref<16x128xf32, #tpu.memory_space<vmem>>, vector<16x128xf32>,
    %c0_26 = arith.constant 0 : index
    %c0_27 = arith.constant 0 : index
    %41 = vector.load %arg4[%c0_26, %c0_27] : memref<128x512xbf16, #tpu.memory_space<vmem>>, vector<128x512xbf16>
    %c0_28 = arith.constant 0 : index
    %c0_29 = arith.constant 0 : index
    %42 = vector.load %arg12[%c0_28, %c0_29] : memref<16x128xf32, #tpu.memory_space<vmem>>, vector<16x128xf32>
    %c0_30 = arith.constant 0 : index
    %c0_31 = arith.constant 0 : index
    %43 = vector.load %arg13[%c0_30, %c0_31] : memref<16x128xf32, #tpu.memory_space<vmem>>, vector<16x128xf32>
    %c0_i32_32 = arith.constant 0 : i32
    %c16_i32 = arith.constant 16 : i32
    %44 = arith.muli %c0_i32_32, %c16_i32 : i32
    %45 = tpu.assume_multiple %44, 16 : i32
    %46 = arith.index_cast %45 : i32 to index
    %c0_33 = arith.constant 0 : index
    %47 = vector.load %arg14[%46, %c0_33] : memref<64x512xbf16, #tpu.memory_space<vmem>>, vector<16x512xbf16>
    %48 = arith.extf %47 : vector<16x512xbf16> to vector<16x512xf32>
    %49 = arith.truncf %42 : vector<16x128xf32> to vector<16x128xbf16>
    %cst_34 = arith.constant dense<0.000000e+00> : vector<16x512xf32>
    %50 = tpu.matmul %49, %41, %cst_34 {dimension_numbers = #tpu.dot_dimension_numbers<[1], [0], [0], [1], [0, 0, 1, 1], [], []>} : vector<16x128xbf16>, vector<128x512xbf16>, vector<16x512xf32> -> vector<16x512xf32>
    %51 = arith.addf %48, %50 : vector<16x512xf32>
    %52 = vector.extract_strided_slice %51 {offsets = [0, 0], sizes = [16, 384], strides = [1, 1]} : vector<16x512xf32> to vector<16x384xf32>
    %cst_35 = arith.constant 5.000000e-01 : f32
    %53 = vector.broadcast %cst_35 : f32 to vector<16x384xf32>
    %54 = arith.mulf %53, %52 : vector<16x384xf32>
    %55 = math.tanh %54 : vector<16x384xf32>
    %cst_36 = arith.constant 1.000000e+00 : f32
    %56 = vector.broadcast %cst_36 : f32 to vector<16x384xf32>
    %57 = arith.addf %55, %56 : vector<16x384xf32>
    %cst_37 = arith.constant 5.000000e-01 : f32
    %58 = vector.broadcast %cst_37 : f32 to vector<16x384xf32>
    %59 = arith.mulf %58, %57 : vector<16x384xf32>
    %60 = vector.extract_strided_slice %59 {offsets = [0, 0], sizes = [16, 128], strides = [1, 1]} : vector<16x384xf32> to vector<16x128xf32>
    %61 = vector.extract_strided_slice %59 {offsets = [0, 128], sizes = [16, 128], strides = [1, 1]} : vector<16x384xf32> to vector<16x128xf32>
    %62 = vector.extract_strided_slice %59 {offsets = [0, 256], sizes = [16, 128], strides = [1, 1]} : vector<16x384xf32> to vector<16x128xf32>
    %63 = vector.extract_strided_slice %51 {offsets = [0, 384], sizes = [16, 128], strides = [1, 1]} : vector<16x512xf32> to vector<16x128xf32>
    %64 = math.tanh %63 : vector<16x128xf32>
    %65 = arith.mulf %61, %43 : vector<16x128xf32>
    %66 = arith.mulf %60, %64 : vector<16x128xf32>
    %67 = arith.addf %65, %66 : vector<16x128xf32>
    %68 = math.tanh %67 : vector<16x128xf32>
    %69 = arith.mulf %62, %68 : vector<16x128xf32>
    %c1_i32 = arith.constant 1 : i32
    %c16_i32_38 = arith.constant 16 : i32
    %70 = arith.muli %c1_i32, %c16_i32_38 : i32
    %71 = tpu.assume_multiple %70, 16 : i32
    %72 = arith.index_cast %71 : i32 to index
    %c0_39 = arith.constant 0 : index
    %73 = vector.load %arg14[%72, %c0_39] : memref<64x512xbf16, #tpu.memory_space<vmem>>, vector<16x512xbf16>
    %74 = arith.extf %73 : vector<16x512xbf16> to vector<16x512xf32>
    %75 = arith.truncf %69 : vector<16x128xf32> to vector<16x128xbf16>
    %cst_40 = arith.constant dense<0.000000e+00> : vector<16x512xf32>
    %76 = tpu.matmul %75, %41, %cst_40 {dimension_numbers = #tpu.dot_dimension_numbers<[1], [0], [0], [1], [0, 0, 1, 1], [], []>} : vector<16x128xbf16>, vector<128x512xbf16>, vector<16x512xf32> -> vector<16x512xf32>
    %77 = arith.addf %74, %76 : vector<16x512xf32>
    %78 = vector.extract_strided_slice %77 {offsets = [0, 0], sizes = [16, 384], strides = [1, 1]} : vector<16x512xf32> to vector<16x384xf32>
    %cst_41 = arith.constant 5.000000e-01 : f32
    %79 = vector.broadcast %cst_41 : f32 to vector<16x384xf32>
    %80 = arith.mulf %79, %78 : vector<16x384xf32>
    %81 = math.tanh %80 : vector<16x384xf32>
    %cst_42 = arith.constant 1.000000e+00 : f32
    %82 = vector.broadcast %cst_42 : f32 to vector<16x384xf32>
    %83 = arith.addf %81, %82 : vector<16x384xf32>
    %cst_43 = arith.constant 5.000000e-01 : f32
    %84 = vector.broadcast %cst_43 : f32 to vector<16x384xf32>
    %85 = arith.mulf %84, %83 : vector<16x384xf32>
    %86 = vector.extract_strided_slice %85 {offsets = [0, 0], sizes = [16, 128], strides = [1, 1]} : vector<16x384xf32> to vector<16x128xf32>
    %87 = vector.extract_strided_slice %85 {offsets = [0, 128], sizes = [16, 128], strides = [1, 1]} : vector<16x384xf32> to vector<16x128xf32>
    %88 = vector.extract_strided_slice %85 {offsets = [0, 256], sizes = [16, 128], strides = [1, 1]} : vector<16x384xf32> to vector<16x128xf32>
    %89 = vector.extract_strided_slice %77 {offsets = [0, 384], sizes = [16, 128], strides = [1, 1]} : vector<16x512xf32> to vector<16x128xf32>
    %90 = math.tanh %89 : vector<16x128xf32>
    %91 = arith.mulf %87, %67 : vector<16x128xf32>
    %92 = arith.mulf %86, %90 : vector<16x128xf32>
    %93 = arith.addf %91, %92 : vector<16x128xf32>
    %94 = math.tanh %93 : vector<16x128xf32>
    %95 = arith.mulf %88, %94 : vector<16x128xf32>
    %c2_i32 = arith.constant 2 : i32
    %c16_i32_44 = arith.constant 16 : i32
    %96 = arith.muli %c2_i32, %c16_i32_44 : i32
    %97 = tpu.assume_multiple %96, 16 : i32
    %98 = arith.index_cast %97 : i32 to index
    %c0_45 = arith.constant 0 : index
    %99 = vector.load %arg14[%98, %c0_45] : memref<64x512xbf16, #tpu.memory_space<vmem>>, vector<16x512xbf16>
    %100 = arith.extf %99 : vector<16x512xbf16> to vector<16x512xf32>
    %101 = arith.truncf %95 : vector<16x128xf32> to vector<16x128xbf16>
    %cst_46 = arith.constant dense<0.000000e+00> : vector<16x512xf32>
    %102 = tpu.matmul %101, %41, %cst_46 {dimension_numbers = #tpu.dot_dimension_numbers<[1], [0], [0], [1], [0, 0, 1, 1], [], []>} : vector<16x128xbf16>, vector<128x512xbf16>, vector<16x512xf32> -> vector<16x512xf32>
    %103 = arith.addf %100, %102 : vector<16x512xf32>
    %104 = vector.extract_strided_slice %103 {offsets = [0, 0], sizes = [16, 384], strides = [1, 1]} : vector<16x512xf32> to vector<16x384xf32>
    %cst_47 = arith.constant 5.000000e-01 : f32
    %105 = vector.broadcast %cst_47 : f32 to vector<16x384xf32>
    %106 = arith.mulf %105, %104 : vector<16x384xf32>
    %107 = math.tanh %106 : vector<16x384xf32>
    %cst_48 = arith.constant 1.000000e+00 : f32
    %108 = vector.broadcast %cst_48 : f32 to vector<16x384xf32>
    %109 = arith.addf %107, %108 : vector<16x384xf32>
    %cst_49 = arith.constant 5.000000e-01 : f32
    %110 = vector.broadcast %cst_49 : f32 to vector<16x384xf32>
    %111 = arith.mulf %110, %109 : vector<16x384xf32>
    %112 = vector.extract_strided_slice %111 {offsets = [0, 0], sizes = [16, 128], strides = [1, 1]} : vector<16x384xf32> to vector<16x128xf32>
    %113 = vector.extract_strided_slice %111 {offsets = [0, 128], sizes = [16, 128], strides = [1, 1]} : vector<16x384xf32> to vector<16x128xf32>
    %114 = vector.extract_strided_slice %111 {offsets = [0, 256], sizes = [16, 128], strides = [1, 1]} : vector<16x384xf32> to vector<16x128xf32>
    %115 = vector.extract_strided_slice %103 {offsets = [0, 384], sizes = [16, 128], strides = [1, 1]} : vector<16x512xf32> to vector<16x128xf32>
    %116 = math.tanh %115 : vector<16x128xf32>
    %117 = arith.mulf %113, %93 : vector<16x128xf32>
    %118 = arith.mulf %112, %116 : vector<16x128xf32>
    %119 = arith.addf %117, %118 : vector<16x128xf32>
    %120 = math.tanh %119 : vector<16x128xf32>
    %121 = arith.mulf %114, %120 : vector<16x128xf32>
    %c3_i32 = arith.constant 3 : i32
    %c16_i32_50 = arith.constant 16 : i32
    %122 = arith.muli %c3_i32, %c16_i32_50 : i32
    %123 = tpu.assume_multiple %122, 16 : i32
    %124 = arith.index_cast %123 : i32 to index
    %c0_51 = arith.constant 0 : index
    %125 = vector.load %arg14[%124, %c0_51] : memref<64x512xbf16, #tpu.memory_space<vmem>>, vector<16x512xbf16>
    %126 = arith.extf %125 : vector<16x512xbf16> to vector<16x512xf32>
    %127 = arith.truncf %121 : vector<16x128xf32> to vector<16x128xbf16>
    %cst_52 = arith.constant dense<0.000000e+00> : vector<16x512xf32>
    %128 = tpu.matmul %127, %41, %cst_52 {dimension_numbers = #tpu.dot_dimension_numbers<[1], [0], [0], [1], [0, 0, 1, 1], [], []>} : vector<16x128xbf16>, vector<128x512xbf16>, vector<16x512xf32> -> vector<16x512xf32>
    %129 = arith.addf %126, %128 : vector<16x512xf32>
    %130 = vector.extract_strided_slice %129 {offsets = [0, 0], sizes = [16, 384], strides = [1, 1]} : vector<16x512xf32> to vector<16x384xf32>
    %cst_53 = arith.constant 5.000000e-01 : f32
    %131 = vector.broadcast %cst_53 : f32 to vector<16x384xf32>
    %132 = arith.mulf %131, %130 : vector<16x384xf32>
    %133 = math.tanh %132 : vector<16x384xf32>
    %cst_54 = arith.constant 1.000000e+00 : f32
    %134 = vector.broadcast %cst_54 : f32 to vector<16x384xf32>
    %135 = arith.addf %133, %134 : vector<16x384xf32>
    %cst_55 = arith.constant 5.000000e-01 : f32
    %136 = vector.broadcast %cst_55 : f32 to vector<16x384xf32>
    %137 = arith.mulf %136, %135 : vector<16x384xf32>
    %138 = vector.extract_strided_slice %137 {offsets = [0, 0], sizes = [16, 128], strides = [1, 1]} : vector<16x384xf32> to vector<16x128xf32>
    %139 = vector.extract_strided_slice %137 {offsets = [0, 128], sizes = [16, 128], strides = [1, 1]} : vector<16x384xf32> to vector<16x128xf32>
    %140 = vector.extract_strided_slice %137 {offsets = [0, 256], sizes = [16, 128], strides = [1, 1]} : vector<16x384xf32> to vector<16x128xf32>
    %141 = vector.extract_strided_slice %129 {offsets = [0, 384], sizes = [16, 128], strides = [1, 1]} : vector<16x512xf32> to vector<16x128xf32>
    %142 = math.tanh %141 : vector<16x128xf32>
    %143 = arith.mulf %139, %119 : vector<16x128xf32>
    %144 = arith.mulf %138, %142 : vector<16x128xf32>
    %145 = arith.addf %143, %144 : vector<16x128xf32>
    %146 = math.tanh %145 : vector<16x128xf32>
    %147 = arith.mulf %140, %146 : vector<16x128xf32>
    %c4_i32 = arith.constant 4 : i32
    %c0_56 = arith.constant 0 : index
    %c0_57 = arith.constant 0 : index
    %148 = vector.load %arg12[%c0_56, %c0_57] : memref<16x128xf32, #tpu.memory_space<vmem>>, vector<16x128xf32>
    tpu.vector_store %arg12[%c0_56, %c0_57], %147 {strides = array<i32>} : memref<16x128xf32, #tpu.memory_space<vmem>>, vector<16x128xf32>,
    %c0_58 = arith.constant 0 : index
    %c0_59 = arith.constant 0 : index
    %149 = vector.load %arg13[%c0_58, %c0_59] : memref<16x128xf32, #tpu.memory_space<vmem>>, vector<16x128xf32>
    tpu.vector_store %arg13[%c0_58, %c0_59], %145 {strides = array<i32>} : memref<16x128xf32, #tpu.memory_space<vmem>>, vector<16x128xf32>,
    %c1_i32_60 = arith.constant 1 : i32
    %150 = arith.cmpi eq, %arg1, %c1_i32_60 : i32
    %151 = arith.extui %150 : i1 to i32
    %c0_i32_61 = arith.constant 0 : i32
    %152 = arith.cmpi ne, %151, %c0_i32_61 : i32
    scf.if %152 {
      %153 = arith.truncf %147 : vector<16x128xf32> to vector<16x128xbf16>
      %c0_62 = arith.constant 0 : index
      %c0_63 = arith.constant 0 : index
      %154 = vector.load %arg8[%c0_62, %c0_63] : memref<128x128xbf16, #tpu.memory_space<vmem>>, vector<128x128xbf16>
      %cst_64 = arith.constant dense<0.000000e+00> : vector<16x128xf32>
      %155 = tpu.matmul %153, %154, %cst_64 {dimension_numbers = #tpu.dot_dimension_numbers<[1], [0], [0], [1], [0, 0, 1, 1], [], []>} : vector<16x128xbf16>, vector<128x128xbf16>, vector<16x128xf32> -> vector<16x128xf32>
      %c0_65 = arith.constant 0 : index
      %c0_66 = arith.constant 0 : index
      %156 = vector.load %arg15[%c0_65, %c0_66] : memref<16x128xf32, #tpu.memory_space<vmem>>, vector<16x128xf32>
      %157 = arith.addf %155, %156 : vector<16x128xf32>
      %cst_67 = arith.constant dense<0xFF800000> : vector<16xf32>
      %158 = vector.multi_reduction <maximumf>, %157, %cst_67 [1] : vector<16x128xf32> to vector<16xf32>
      %159 = vector.shape_cast %158 : vector<16xf32> to vector<16x1xf32>
      %160 = vector.broadcast %159 : vector<16x1xf32> to vector<16x128xf32>
      %161 = arith.subf %157, %160 : vector<16x128xf32>
      %162 = math.exp %161 : vector<16x128xf32>
      %cst_68 = arith.constant dense<0.000000e+00> : vector<16xf32>
      %163 = vector.multi_reduction <add>, %162, %cst_68 [1] : vector<16x128xf32> to vector<16xf32>
      %164 = vector.shape_cast %163 : vector<16xf32> to vector<16x1xf32>
      %165 = math.log %164 : vector<16x1xf32>
      %166 = vector.broadcast %165 : vector<16x1xf32> to vector<16x128xf32>
      %167 = arith.subf %161, %166 : vector<16x128xf32>
      %c0_69 = arith.constant 0 : index
      %c0_70 = arith.constant 0 : index
      %168 = vector.load %arg11[%c0_69, %c0_70] : memref<16x128xf32, #tpu.memory_space<vmem>>, vector<16x128xf32>
      tpu.vector_store %arg11[%c0_69, %c0_70], %167 {strides = array<i32>} : memref<16x128xf32, #tpu.memory_space<vmem>>, vector<16x128xf32>,
    } else {
    }
    return
  }
  func.func @transform_0(%arg0: i32, %arg1: i32) -> (i32, i32, i32) {
    %c0_i32 = arith.constant 0 : i32
    %c0_i32_0 = arith.constant 0 : i32
    return %arg1, %arg0, %c0_i32 : i32, i32, i32
  }
  func.func @transform_1(%arg0: i32, %arg1: i32) -> (i32, i32) {
    %c0_i32 = arith.constant 0 : i32
    %c0_i32_0 = arith.constant 0 : i32
    %c0_i32_1 = arith.constant 0 : i32
    return %c0_i32, %c0_i32_0 : i32, i32
  }
  func.func @transform_2(%arg0: i32, %arg1: i32) -> (i32, i32) {
    %c0_i32 = arith.constant 0 : i32
    %c0_i32_0 = arith.constant 0 : i32
    %c0_i32_1 = arith.constant 0 : i32
    return %c0_i32, %c0_i32_0 : i32, i32
  }
  func.func @transform_3(%arg0: i32, %arg1: i32) -> (i32, i32) {
    %c0_i32 = arith.constant 0 : i32
    %c0_i32_0 = arith.constant 0 : i32
    %c0_i32_1 = arith.constant 0 : i32
    return %c0_i32, %c0_i32_0 : i32, i32
  }
  func.func @transform_4(%arg0: i32, %arg1: i32) -> (i32, i32) {
    %c0_i32 = arith.constant 0 : i32
    %c0_i32_0 = arith.constant 0 : i32
    %c0_i32_1 = arith.constant 0 : i32
    return %c0_i32, %c0_i32_0 : i32, i32
  }
  func.func @transform_5(%arg0: i32, %arg1: i32) -> (i32, i32) {
    %c0_i32 = arith.constant 0 : i32
    %c0_i32_0 = arith.constant 0 : i32
    %c0_i32_1 = arith.constant 0 : i32
    return %c0_i32, %c0_i32_0 : i32, i32
  }
  func.func @transform_6(%arg0: i32, %arg1: i32) -> (i32, i32) {
    %c0_i32 = arith.constant 0 : i32
    %c0_i32_0 = arith.constant 0 : i32
    %c0_i32_1 = arith.constant 0 : i32
    return %c0_i32, %c0_i32_0 : i32, i32
  }
  func.func @transform_7(%arg0: i32, %arg1: i32) -> (i32, i32) {
    %c0_i32 = arith.constant 0 : i32
    %c0_i32_0 = arith.constant 0 : i32
    %c0_i32_1 = arith.constant 0 : i32
    return %c0_i32, %c0_i32_0 : i32, i32
  }
  func.func @transform_8(%arg0: i32, %arg1: i32) -> (i32, i32) {
    %c0_i32 = arith.constant 0 : i32
    %c0_i32_0 = arith.constant 0 : i32
    %c0_i32_1 = arith.constant 0 : i32
    return %c0_i32, %c0_i32_0 : i32, i32
  }
  func.func @transform_9(%arg0: i32, %arg1: i32) -> (i32, i32) {
    %c0_i32 = arith.constant 0 : i32
    %c0_i32_0 = arith.constant 0 : i32
    return %arg0, %c0_i32 : i32, i32
  }
}

module attributes {stable_mosaic.version = 11 : i64} {
  func.func @textrnn_kernel(%arg0: i32, %arg1: i32, %arg2: memref<4x16x128xbf16, #tpu.memory_space<vmem>>, %arg3: memref<128x512xbf16, #tpu.memory_space<vmem>>, %arg4: memref<128x512xbf16, #tpu.memory_space<vmem>>, %arg5: memref<1x512xf32, #tpu.memory_space<vmem>>, %arg6: memref<128x512xbf16, #tpu.memory_space<vmem>>, %arg7: memref<1x512xf32, #tpu.memory_space<vmem>>, %arg8: memref<128x128xbf16, #tpu.memory_space<vmem>>, %arg9: memref<128x128xbf16, #tpu.memory_space<vmem>>, %arg10: memref<1x128xf32, #tpu.memory_space<vmem>>, %arg11: memref<16x128xf32, #tpu.memory_space<vmem>>, %arg12: memref<16x128xf32, #tpu.memory_space<vmem>>, %arg13: memref<16x128xf32, #tpu.memory_space<vmem>>, %arg14: memref<64x512xbf16, #tpu.memory_space<vmem>>, %arg15: memref<16x128xf32, #tpu.memory_space<vmem>>) attributes {dimension_semantics = [#tpu.dimension_semantics<parallel>, #tpu.dimension_semantics<arbitrary>], iteration_bounds = array<i64: 1, 2>, scalar_prefetch = 0 : i64, scratch_operands = 4 : i64, tpu.core_type = #tpu.core_type<tc>, window_params = [{transform_indices = @transform_0, window_bounds = array<i64: 4, 16, 128>}, {pipeline_mode = #tpu.pipeline_mode<synchronous>, transform_indices = @transform_1, window_bounds = array<i64: 128, 512>}, {pipeline_mode = #tpu.pipeline_mode<synchronous>, transform_indices = @transform_2, window_bounds = array<i64: 128, 512>}, {pipeline_mode = #tpu.pipeline_mode<synchronous>, transform_indices = @transform_3, window_bounds = array<i64: 1, 512>}, {pipeline_mode = #tpu.pipeline_mode<synchronous>, transform_indices = @transform_4, window_bounds = array<i64: 128, 512>}, {pipeline_mode = #tpu.pipeline_mode<synchronous>, transform_indices = @transform_5, window_bounds = array<i64: 1, 512>}, {pipeline_mode = #tpu.pipeline_mode<synchronous>, transform_indices = @transform_6, window_bounds = array<i64: 128, 128>}, {pipeline_mode = #tpu.pipeline_mode<synchronous>, transform_indices = @transform_7, window_bounds = array<i64: 128, 128>}, {pipeline_mode = #tpu.pipeline_mode<synchronous>, transform_indices = @transform_8, window_bounds = array<i64: 1, 128>}, {transform_indices = @transform_9, window_bounds = array<i64: 16, 128>}]} {
    %c0_i32 = arith.constant 0 : i32
    %0 = arith.cmpi eq, %arg1, %c0_i32 : i32
    %1 = arith.extui %0 : i1 to i32
    %c0_i32_0 = arith.constant 0 : i32
    %2 = arith.cmpi ne, %1, %c0_i32_0 : i32
    scf.if %2 {
      %cst_62 = arith.constant 0.000000e+00 : f32
      %153 = vector.broadcast %cst_62 : f32 to vector<16x128xf32>
      %c0_63 = arith.constant 0 : index
      %c0_64 = arith.constant 0 : index
      %154 = vector.load %arg12[%c0_63, %c0_64] : memref<16x128xf32, #tpu.memory_space<vmem>>, vector<16x128xf32>
      tpu.vector_store %arg12[%c0_63, %c0_64], %153 {strides = array<i32>} : memref<16x128xf32, #tpu.memory_space<vmem>>, vector<16x128xf32>,
      %cst_65 = arith.constant 0.000000e+00 : f32
      %155 = vector.broadcast %cst_65 : f32 to vector<16x128xf32>
      %c0_66 = arith.constant 0 : index
      %c0_67 = arith.constant 0 : index
      %156 = vector.load %arg13[%c0_66, %c0_67] : memref<16x128xf32, #tpu.memory_space<vmem>>, vector<16x128xf32>
      tpu.vector_store %arg13[%c0_66, %c0_67], %155 {strides = array<i32>} : memref<16x128xf32, #tpu.memory_space<vmem>>, vector<16x128xf32>,
    } else {
    }
    %c0 = arith.constant 0 : index
    %c0_1 = arith.constant 0 : index
    %c0_2 = arith.constant 0 : index
    %3 = vector.load %arg2[%c0, %c0_1, %c0_2] : memref<4x16x128xbf16, #tpu.memory_space<vmem>>, vector<4x16x128xbf16>
    %4 = vector.shape_cast %3 : vector<4x16x128xbf16> to vector<64x128xbf16>
    %c0_3 = arith.constant 0 : index
    %c0_4 = arith.constant 0 : index
    %5 = vector.load %arg3[%c0_3, %c0_4] : memref<128x512xbf16, #tpu.memory_space<vmem>>, vector<128x512xbf16>
    %cst = arith.constant dense<0.000000e+00> : vector<64x512xf32>
    %6 = tpu.matmul %4, %5, %cst {dimension_numbers = #tpu.dot_dimension_numbers<[1], [0], [0], [1], [0, 0, 1, 1], [], []>} : vector<64x128xbf16>, vector<128x512xbf16>, vector<64x512xf32> -> vector<64x512xf32>
    %c0_5 = arith.constant 0 : index
    %c0_6 = arith.constant 0 : index
    %7 = vector.load %arg5[%c0_5, %c0_6] : memref<1x512xf32, #tpu.memory_space<vmem>>, vector<1x512xf32>
    %8 = vector.broadcast %7 : vector<1x512xf32> to vector<64x512xf32>
    %9 = arith.addf %6, %8 : vector<64x512xf32>
    %10 = arith.truncf %9 : vector<64x512xf32> to vector<64x512xbf16>
    %c0_7 = arith.constant 0 : index
    %c0_8 = arith.constant 0 : index
    %11 = vector.load %arg14[%c0_7, %c0_8] : memref<64x512xbf16, #tpu.memory_space<vmem>>, vector<64x512xbf16>
    tpu.vector_store %arg14[%c0_7, %c0_8], %10 {strides = array<i32>} : memref<64x512xbf16, #tpu.memory_space<vmem>>, vector<64x512xbf16>,
    %c3 = arith.constant 3 : index
    %c0_9 = arith.constant 0 : index
    %c0_10 = arith.constant 0 : index
    %12 = vector.load %arg2[%c3, %c0_9, %c0_10] : memref<4x16x128xbf16, #tpu.memory_space<vmem>>, vector<1x16x128xbf16>
    %13 = vector.shape_cast %12 : vector<1x16x128xbf16> to vector<16x128xbf16>
    %c0_11 = arith.constant 0 : index
    %c0_12 = arith.constant 0 : index
    %14 = vector.load %arg6[%c0_11, %c0_12] : memref<128x512xbf16, #tpu.memory_space<vmem>>, vector<128x512xbf16>
    %cst_13 = arith.constant dense<0.000000e+00> : vector<16x512xf32>
    %15 = tpu.matmul %13, %14, %cst_13 {dimension_numbers = #tpu.dot_dimension_numbers<[1], [0], [0], [1], [0, 0, 1, 1], [], []>} : vector<16x128xbf16>, vector<128x512xbf16>, vector<16x512xf32> -> vector<16x512xf32>
    %c0_14 = arith.constant 0 : index
    %c0_15 = arith.constant 0 : index
    %16 = vector.load %arg7[%c0_14, %c0_15] : memref<1x512xf32, #tpu.memory_space<vmem>>, vector<1x512xf32>
    %17 = vector.broadcast %16 : vector<1x512xf32> to vector<16x512xf32>
    %18 = arith.addf %15, %17 : vector<16x512xf32>
    %19 = vector.extract_strided_slice %18 {offsets = [0, 0], sizes = [16, 384], strides = [1, 1]} : vector<16x512xf32> to vector<16x384xf32>
    %cst_16 = arith.constant 5.000000e-01 : f32
    %20 = vector.broadcast %cst_16 : f32 to vector<16x384xf32>
    %21 = arith.mulf %20, %19 : vector<16x384xf32>
    %22 = math.tanh %21 : vector<16x384xf32>
    %cst_17 = arith.constant 1.000000e+00 : f32
    %23 = vector.broadcast %cst_17 : f32 to vector<16x384xf32>
    %24 = arith.addf %22, %23 : vector<16x384xf32>
    %cst_18 = arith.constant 5.000000e-01 : f32
    %25 = vector.broadcast %cst_18 : f32 to vector<16x384xf32>
    %26 = arith.mulf %25, %24 : vector<16x384xf32>
    %27 = vector.extract_strided_slice %26 {offsets = [0, 0], sizes = [16, 128], strides = [1, 1]} : vector<16x384xf32> to vector<16x128xf32>
    %28 = vector.extract_strided_slice %26 {offsets = [0, 256], sizes = [16, 128], strides = [1, 1]} : vector<16x384xf32> to vector<16x128xf32>
    %29 = vector.extract_strided_slice %18 {offsets = [0, 384], sizes = [16, 128], strides = [1, 1]} : vector<16x512xf32> to vector<16x128xf32>
    %30 = math.tanh %29 : vector<16x128xf32>
    %31 = arith.mulf %27, %30 : vector<16x128xf32>
    %32 = math.tanh %31 : vector<16x128xf32>
    %33 = arith.mulf %28, %32 : vector<16x128xf32>
    %34 = arith.truncf %33 : vector<16x128xf32> to vector<16x128xbf16>
    %c0_19 = arith.constant 0 : index
    %c0_20 = arith.constant 0 : index
    %35 = vector.load %arg9[%c0_19, %c0_20] : memref<128x128xbf16, #tpu.memory_space<vmem>>, vector<128x128xbf16>
    %cst_21 = arith.constant dense<0.000000e+00> : vector<16x128xf32>
    %36 = tpu.matmul %34, %35, %cst_21 {dimension_numbers = #tpu.dot_dimension_numbers<[1], [0], [0], [1], [0, 0, 1, 1], [], []>} : vector<16x128xbf16>, vector<128x128xbf16>, vector<16x128xf32> -> vector<16x128xf32>
    %c0_22 = arith.constant 0 : index
    %c0_23 = arith.constant 0 : index
    %37 = vector.load %arg10[%c0_22, %c0_23] : memref<1x128xf32, #tpu.memory_space<vmem>>, vector<1x128xf32>
    %38 = vector.broadcast %37 : vector<1x128xf32> to vector<16x128xf32>
    %39 = arith.addf %36, %38 : vector<16x128xf32>
    %c0_24 = arith.constant 0 : index
    %c0_25 = arith.constant 0 : index
    %40 = vector.load %arg15[%c0_24, %c0_25] : memref<16x128xf32, #tpu.memory_space<vmem>>, vector<16x128xf32>
    tpu.vector_store %arg15[%c0_24, %c0_25], %39 {strides = array<i32>} : memref<16x128xf32, #tpu.memory_space<vmem>>, vector<16x128xf32>,
    %c0_26 = arith.constant 0 : index
    %c0_27 = arith.constant 0 : index
    %41 = vector.load %arg4[%c0_26, %c0_27] : memref<128x512xbf16, #tpu.memory_space<vmem>>, vector<128x512xbf16>
    %c0_28 = arith.constant 0 : index
    %c0_29 = arith.constant 0 : index
    %42 = vector.load %arg12[%c0_28, %c0_29] : memref<16x128xf32, #tpu.memory_space<vmem>>, vector<16x128xf32>
    %c0_30 = arith.constant 0 : index
    %c0_31 = arith.constant 0 : index
    %43 = vector.load %arg13[%c0_30, %c0_31] : memref<16x128xf32, #tpu.memory_space<vmem>>, vector<16x128xf32>
    %c0_i32_32 = arith.constant 0 : i32
    %c16_i32 = arith.constant 16 : i32
    %44 = arith.muli %c0_i32_32, %c16_i32 : i32
    %45 = tpu.assume_multiple %44, 16 : i32
    %46 = arith.index_cast %45 : i32 to index
    %c0_33 = arith.constant 0 : index
    %47 = vector.load %arg14[%46, %c0_33] : memref<64x512xbf16, #tpu.memory_space<vmem>>, vector<16x512xbf16>
    %48 = arith.extf %47 : vector<16x512xbf16> to vector<16x512xf32>
    %49 = arith.truncf %42 : vector<16x128xf32> to vector<16x128xbf16>
    %cst_34 = arith.constant dense<0.000000e+00> : vector<16x512xf32>
    %50 = tpu.matmul %49, %41, %cst_34 {dimension_numbers = #tpu.dot_dimension_numbers<[1], [0], [0], [1], [0, 0, 1, 1], [], []>} : vector<16x128xbf16>, vector<128x512xbf16>, vector<16x512xf32> -> vector<16x512xf32>
    %51 = arith.addf %48, %50 : vector<16x512xf32>
    %52 = vector.extract_strided_slice %51 {offsets = [0, 0], sizes = [16, 384], strides = [1, 1]} : vector<16x512xf32> to vector<16x384xf32>
    %cst_35 = arith.constant 5.000000e-01 : f32
    %53 = vector.broadcast %cst_35 : f32 to vector<16x384xf32>
    %54 = arith.mulf %53, %52 : vector<16x384xf32>
    %55 = math.tanh %54 : vector<16x384xf32>
    %cst_36 = arith.constant 1.000000e+00 : f32
    %56 = vector.broadcast %cst_36 : f32 to vector<16x384xf32>
    %57 = arith.addf %55, %56 : vector<16x384xf32>
    %cst_37 = arith.constant 5.000000e-01 : f32
    %58 = vector.broadcast %cst_37 : f32 to vector<16x384xf32>
    %59 = arith.mulf %58, %57 : vector<16x384xf32>
    %60 = vector.extract_strided_slice %59 {offsets = [0, 0], sizes = [16, 128], strides = [1, 1]} : vector<16x384xf32> to vector<16x128xf32>
    %61 = vector.extract_strided_slice %59 {offsets = [0, 128], sizes = [16, 128], strides = [1, 1]} : vector<16x384xf32> to vector<16x128xf32>
    %62 = vector.extract_strided_slice %59 {offsets = [0, 256], sizes = [16, 128], strides = [1, 1]} : vector<16x384xf32> to vector<16x128xf32>
    %63 = vector.extract_strided_slice %51 {offsets = [0, 384], sizes = [16, 128], strides = [1, 1]} : vector<16x512xf32> to vector<16x128xf32>
    %64 = math.tanh %63 : vector<16x128xf32>
    %65 = arith.mulf %61, %43 : vector<16x128xf32>
    %66 = arith.mulf %60, %64 : vector<16x128xf32>
    %67 = arith.addf %65, %66 : vector<16x128xf32>
    %68 = math.tanh %67 : vector<16x128xf32>
    %69 = arith.mulf %62, %68 : vector<16x128xf32>
    %c1_i32 = arith.constant 1 : i32
    %c16_i32_38 = arith.constant 16 : i32
    %70 = arith.muli %c1_i32, %c16_i32_38 : i32
    %71 = tpu.assume_multiple %70, 16 : i32
    %72 = arith.index_cast %71 : i32 to index
    %c0_39 = arith.constant 0 : index
    %73 = vector.load %arg14[%72, %c0_39] : memref<64x512xbf16, #tpu.memory_space<vmem>>, vector<16x512xbf16>
    %74 = arith.extf %73 : vector<16x512xbf16> to vector<16x512xf32>
    %75 = arith.truncf %69 : vector<16x128xf32> to vector<16x128xbf16>
    %cst_40 = arith.constant dense<0.000000e+00> : vector<16x512xf32>
    %76 = tpu.matmul %75, %41, %cst_40 {dimension_numbers = #tpu.dot_dimension_numbers<[1], [0], [0], [1], [0, 0, 1, 1], [], []>} : vector<16x128xbf16>, vector<128x512xbf16>, vector<16x512xf32> -> vector<16x512xf32>
    %77 = arith.addf %74, %76 : vector<16x512xf32>
    %78 = vector.extract_strided_slice %77 {offsets = [0, 0], sizes = [16, 384], strides = [1, 1]} : vector<16x512xf32> to vector<16x384xf32>
    %cst_41 = arith.constant 5.000000e-01 : f32
    %79 = vector.broadcast %cst_41 : f32 to vector<16x384xf32>
    %80 = arith.mulf %79, %78 : vector<16x384xf32>
    %81 = math.tanh %80 : vector<16x384xf32>
    %cst_42 = arith.constant 1.000000e+00 : f32
    %82 = vector.broadcast %cst_42 : f32 to vector<16x384xf32>
    %83 = arith.addf %81, %82 : vector<16x384xf32>
    %cst_43 = arith.constant 5.000000e-01 : f32
    %84 = vector.broadcast %cst_43 : f32 to vector<16x384xf32>
    %85 = arith.mulf %84, %83 : vector<16x384xf32>
    %86 = vector.extract_strided_slice %85 {offsets = [0, 0], sizes = [16, 128], strides = [1, 1]} : vector<16x384xf32> to vector<16x128xf32>
    %87 = vector.extract_strided_slice %85 {offsets = [0, 128], sizes = [16, 128], strides = [1, 1]} : vector<16x384xf32> to vector<16x128xf32>
    %88 = vector.extract_strided_slice %85 {offsets = [0, 256], sizes = [16, 128], strides = [1, 1]} : vector<16x384xf32> to vector<16x128xf32>
    %89 = vector.extract_strided_slice %77 {offsets = [0, 384], sizes = [16, 128], strides = [1, 1]} : vector<16x512xf32> to vector<16x128xf32>
    %90 = math.tanh %89 : vector<16x128xf32>
    %91 = arith.mulf %87, %67 : vector<16x128xf32>
    %92 = arith.mulf %86, %90 : vector<16x128xf32>
    %93 = arith.addf %91, %92 : vector<16x128xf32>
    %94 = math.tanh %93 : vector<16x128xf32>
    %95 = arith.mulf %88, %94 : vector<16x128xf32>
    %c2_i32 = arith.constant 2 : i32
    %c16_i32_44 = arith.constant 16 : i32
    %96 = arith.muli %c2_i32, %c16_i32_44 : i32
    %97 = tpu.assume_multiple %96, 16 : i32
    %98 = arith.index_cast %97 : i32 to index
    %c0_45 = arith.constant 0 : index
    %99 = vector.load %arg14[%98, %c0_45] : memref<64x512xbf16, #tpu.memory_space<vmem>>, vector<16x512xbf16>
    %100 = arith.extf %99 : vector<16x512xbf16> to vector<16x512xf32>
    %101 = arith.truncf %95 : vector<16x128xf32> to vector<16x128xbf16>
    %cst_46 = arith.constant dense<0.000000e+00> : vector<16x512xf32>
    %102 = tpu.matmul %101, %41, %cst_46 {dimension_numbers = #tpu.dot_dimension_numbers<[1], [0], [0], [1], [0, 0, 1, 1], [], []>} : vector<16x128xbf16>, vector<128x512xbf16>, vector<16x512xf32> -> vector<16x512xf32>
    %103 = arith.addf %100, %102 : vector<16x512xf32>
    %104 = vector.extract_strided_slice %103 {offsets = [0, 0], sizes = [16, 384], strides = [1, 1]} : vector<16x512xf32> to vector<16x384xf32>
    %cst_47 = arith.constant 5.000000e-01 : f32
    %105 = vector.broadcast %cst_47 : f32 to vector<16x384xf32>
    %106 = arith.mulf %105, %104 : vector<16x384xf32>
    %107 = math.tanh %106 : vector<16x384xf32>
    %cst_48 = arith.constant 1.000000e+00 : f32
    %108 = vector.broadcast %cst_48 : f32 to vector<16x384xf32>
    %109 = arith.addf %107, %108 : vector<16x384xf32>
    %cst_49 = arith.constant 5.000000e-01 : f32
    %110 = vector.broadcast %cst_49 : f32 to vector<16x384xf32>
    %111 = arith.mulf %110, %109 : vector<16x384xf32>
    %112 = vector.extract_strided_slice %111 {offsets = [0, 0], sizes = [16, 128], strides = [1, 1]} : vector<16x384xf32> to vector<16x128xf32>
    %113 = vector.extract_strided_slice %111 {offsets = [0, 128], sizes = [16, 128], strides = [1, 1]} : vector<16x384xf32> to vector<16x128xf32>
    %114 = vector.extract_strided_slice %111 {offsets = [0, 256], sizes = [16, 128], strides = [1, 1]} : vector<16x384xf32> to vector<16x128xf32>
    %115 = vector.extract_strided_slice %103 {offsets = [0, 384], sizes = [16, 128], strides = [1, 1]} : vector<16x512xf32> to vector<16x128xf32>
    %116 = math.tanh %115 : vector<16x128xf32>
    %117 = arith.mulf %113, %93 : vector<16x128xf32>
    %118 = arith.mulf %112, %116 : vector<16x128xf32>
    %119 = arith.addf %117, %118 : vector<16x128xf32>
    %120 = math.tanh %119 : vector<16x128xf32>
    %121 = arith.mulf %114, %120 : vector<16x128xf32>
    %c3_i32 = arith.constant 3 : i32
    %c16_i32_50 = arith.constant 16 : i32
    %122 = arith.muli %c3_i32, %c16_i32_50 : i32
    %123 = tpu.assume_multiple %122, 16 : i32
    %124 = arith.index_cast %123 : i32 to index
    %c0_51 = arith.constant 0 : index
    %125 = vector.load %arg14[%124, %c0_51] : memref<64x512xbf16, #tpu.memory_space<vmem>>, vector<16x512xbf16>
    %126 = arith.extf %125 : vector<16x512xbf16> to vector<16x512xf32>
    %127 = arith.truncf %121 : vector<16x128xf32> to vector<16x128xbf16>
    %cst_52 = arith.constant dense<0.000000e+00> : vector<16x512xf32>
    %128 = tpu.matmul %127, %41, %cst_52 {dimension_numbers = #tpu.dot_dimension_numbers<[1], [0], [0], [1], [0, 0, 1, 1], [], []>} : vector<16x128xbf16>, vector<128x512xbf16>, vector<16x512xf32> -> vector<16x512xf32>
    %129 = arith.addf %126, %128 : vector<16x512xf32>
    %130 = vector.extract_strided_slice %129 {offsets = [0, 0], sizes = [16, 384], strides = [1, 1]} : vector<16x512xf32> to vector<16x384xf32>
    %cst_53 = arith.constant 5.000000e-01 : f32
    %131 = vector.broadcast %cst_53 : f32 to vector<16x384xf32>
    %132 = arith.mulf %131, %130 : vector<16x384xf32>
    %133 = math.tanh %132 : vector<16x384xf32>
    %cst_54 = arith.constant 1.000000e+00 : f32
    %134 = vector.broadcast %cst_54 : f32 to vector<16x384xf32>
    %135 = arith.addf %133, %134 : vector<16x384xf32>
    %cst_55 = arith.constant 5.000000e-01 : f32
    %136 = vector.broadcast %cst_55 : f32 to vector<16x384xf32>
    %137 = arith.mulf %136, %135 : vector<16x384xf32>
    %138 = vector.extract_strided_slice %137 {offsets = [0, 0], sizes = [16, 128], strides = [1, 1]} : vector<16x384xf32> to vector<16x128xf32>
    %139 = vector.extract_strided_slice %137 {offsets = [0, 128], sizes = [16, 128], strides = [1, 1]} : vector<16x384xf32> to vector<16x128xf32>
    %140 = vector.extract_strided_slice %137 {offsets = [0, 256], sizes = [16, 128], strides = [1, 1]} : vector<16x384xf32> to vector<16x128xf32>
    %141 = vector.extract_strided_slice %129 {offsets = [0, 384], sizes = [16, 128], strides = [1, 1]} : vector<16x512xf32> to vector<16x128xf32>
    %142 = math.tanh %141 : vector<16x128xf32>
    %143 = arith.mulf %139, %119 : vector<16x128xf32>
    %144 = arith.mulf %138, %142 : vector<16x128xf32>
    %145 = arith.addf %143, %144 : vector<16x128xf32>
    %146 = math.tanh %145 : vector<16x128xf32>
    %147 = arith.mulf %140, %146 : vector<16x128xf32>
    %c4_i32 = arith.constant 4 : i32
    %c0_56 = arith.constant 0 : index
    %c0_57 = arith.constant 0 : index
    %148 = vector.load %arg12[%c0_56, %c0_57] : memref<16x128xf32, #tpu.memory_space<vmem>>, vector<16x128xf32>
    tpu.vector_store %arg12[%c0_56, %c0_57], %147 {strides = array<i32>} : memref<16x128xf32, #tpu.memory_space<vmem>>, vector<16x128xf32>,
    %c0_58 = arith.constant 0 : index
    %c0_59 = arith.constant 0 : index
    %149 = vector.load %arg13[%c0_58, %c0_59] : memref<16x128xf32, #tpu.memory_space<vmem>>, vector<16x128xf32>
    tpu.vector_store %arg13[%c0_58, %c0_59], %145 {strides = array<i32>} : memref<16x128xf32, #tpu.memory_space<vmem>>, vector<16x128xf32>,
    %c1_i32_60 = arith.constant 1 : i32
    %150 = arith.cmpi eq, %arg1, %c1_i32_60 : i32
    %151 = arith.extui %150 : i1 to i32
    %c0_i32_61 = arith.constant 0 : i32
    %152 = arith.cmpi ne, %151, %c0_i32_61 : i32
    scf.if %152 {
      %153 = arith.truncf %147 : vector<16x128xf32> to vector<16x128xbf16>
      %c0_62 = arith.constant 0 : index
      %c0_63 = arith.constant 0 : index
      %154 = vector.load %arg8[%c0_62, %c0_63] : memref<128x128xbf16, #tpu.memory_space<vmem>>, vector<128x128xbf16>
      %cst_64 = arith.constant dense<0.000000e+00> : vector<16x128xf32>
      %155 = tpu.matmul %153, %154, %cst_64 {dimension_numbers = #tpu.dot_dimension_numbers<[1], [0], [0], [1], [0, 0, 1, 1], [], []>} : vector<16x128xbf16>, vector<128x128xbf16>, vector<16x128xf32> -> vector<16x128xf32>
      %c0_65 = arith.constant 0 : index
      %c0_66 = arith.constant 0 : index
      %156 = vector.load %arg15[%c0_65, %c0_66] : memref<16x128xf32, #tpu.memory_space<vmem>>, vector<16x128xf32>
      %157 = arith.addf %155, %156 : vector<16x128xf32>
      %cst_67 = arith.constant dense<0xFF800000> : vector<16xf32>
      %158 = vector.multi_reduction <maximumf>, %157, %cst_67 [1] : vector<16x128xf32> to vector<16xf32>
      %159 = vector.shape_cast %158 : vector<16xf32> to vector<16x1xf32>
      %160 = vector.broadcast %159 : vector<16x1xf32> to vector<16x128xf32>
      %161 = arith.subf %157, %160 : vector<16x128xf32>
      %162 = math.exp %161 : vector<16x128xf32>
      %cst_68 = arith.constant dense<0.000000e+00> : vector<16xf32>
      %163 = vector.multi_reduction <add>, %162, %cst_68 [1] : vector<16x128xf32> to vector<16xf32>
      %164 = vector.shape_cast %163 : vector<16xf32> to vector<16x1xf32>
      %165 = math.log %164 : vector<16x1xf32>
      %166 = vector.broadcast %165 : vector<16x1xf32> to vector<16x128xf32>
      %167 = arith.subf %161, %166 : vector<16x128xf32>
      %c0_69 = arith.constant 0 : index
      %c0_70 = arith.constant 0 : index
      %168 = vector.load %arg11[%c0_69, %c0_70] : memref<16x128xf32, #tpu.memory_space<vmem>>, vector<16x128xf32>
      tpu.vector_store %arg11[%c0_69, %c0_70], %167 {strides = array<i32>} : memref<16x128xf32, #tpu.memory_space<vmem>>, vector<16x128xf32>,
    } else {
    }
    return
  }
  func.func @transform_0(%arg0: i32, %arg1: i32) -> (i32, i32, i32) {
    %c0_i32 = arith.constant 0 : i32
    %c0_i32_0 = arith.constant 0 : i32
    return %arg1, %arg0, %c0_i32 : i32, i32, i32
  }
  func.func @transform_1(%arg0: i32, %arg1: i32) -> (i32, i32) {
    %c0_i32 = arith.constant 0 : i32
    %c0_i32_0 = arith.constant 0 : i32
    %c0_i32_1 = arith.constant 0 : i32
    return %c0_i32, %c0_i32_0 : i32, i32
  }
  func.func @transform_2(%arg0: i32, %arg1: i32) -> (i32, i32) {
    %c0_i32 = arith.constant 0 : i32
    %c0_i32_0 = arith.constant 0 : i32
    %c0_i32_1 = arith.constant 0 : i32
    return %c0_i32, %c0_i32_0 : i32, i32
  }
  func.func @transform_3(%arg0: i32, %arg1: i32) -> (i32, i32) {
    %c0_i32 = arith.constant 0 : i32
    %c0_i32_0 = arith.constant 0 : i32
    %c0_i32_1 = arith.constant 0 : i32
    return %c0_i32, %c0_i32_0 : i32, i32
  }
  func.func @transform_4(%arg0: i32, %arg1: i32) -> (i32, i32) {
    %c0_i32 = arith.constant 0 : i32
    %c0_i32_0 = arith.constant 0 : i32
    %c0_i32_1 = arith.constant 0 : i32
    return %c0_i32, %c0_i32_0 : i32, i32
  }
  func.func @transform_5(%arg0: i32, %arg1: i32) -> (i32, i32) {
    %c0_i32 = arith.constant 0 : i32
    %c0_i32_0 = arith.constant 0 : i32
    %c0_i32_1 = arith.constant 0 : i32
    return %c0_i32, %c0_i32_0 : i32, i32
  }
  func.func @transform_6(%arg0: i32, %arg1: i32) -> (i32, i32) {
    %c0_i32 = arith.constant 0 : i32
    %c0_i32_0 = arith.constant 0 : i32
    %c0_i32_1 = arith.constant 0 : i32
    return %c0_i32, %c0_i32_0 : i32, i32
  }
  func.func @transform_7(%arg0: i32, %arg1: i32) -> (i32, i32) {
    %c0_i32 = arith.constant 0 : i32
    %c0_i32_0 = arith.constant 0 : i32
    %c0_i32_1 = arith.constant 0 : i32
    return %c0_i32, %c0_i32_0 : i32, i32
  }
  func.func @transform_8(%arg0: i32, %arg1: i32) -> (i32, i32) {
    %c0_i32 = arith.constant 0 : i32
    %c0_i32_0 = arith.constant 0 : i32
    %c0_i32_1 = arith.constant 0 : i32
    return %c0_i32, %c0_i32_0 : i32, i32
  }
  func.func @transform_9(%arg0: i32, %arg1: i32) -> (i32, i32) {
    %c0_i32 = arith.constant 0 : i32
    %c0_i32_0 = arith.constant 0 : i32
    return %arg0, %c0_i32 : i32, i32
  }
}

</mosaic_0001>

<bundles_post_ra>
// kernel: tpu_custom_call.1
= control target key start
LH: loop header
LB: loop body
LE: loop exit
PB: predicated region body
PF: predicated region fallthrough
CT: control target
= control target key end

     0   :  { %s3959_s0 = inlined_call_operand.hbm [shape: bf16[8,16,128], index: 0, kind: input, shape index: {}]   ;;  %s3960_s1 = inlined_call_operand.hbm [shape: bf16[128,512], index: 1, kind: input, shape index: {}]   ;;  %s3961_s2 = inlined_call_operand.hbm [shape: bf16[128,512], index: 2, kind: input, shape index: {}]   ;;  %s3962_s3 = inlined_call_operand.vmem [shape: f32[1,512], index: 3, kind: input, shape index: {}]   ;;  %s3963_s4 = inlined_call_operand.hbm [shape: bf16[128,512], index: 4, kind: input, shape index: {}]   ;;  %s3964_s5 = inlined_call_operand.vmem [shape: f32[1,512], index: 5, kind: input, shape index: {}]   ;;  %s3965_s6 = inlined_call_operand.hbm [shape: bf16[128,128], index: 6, kind: input, shape index: {}]   ;;  %s3966_s7 = inlined_call_operand.hbm [shape: bf16[128,128], index: 7, kind: input, shape index: {}]   ;;  %s3967_s8 = inlined_call_operand.vmem [shape: f32[1,128], index: 8, kind: input, shape index: {}]   ;;  %s3968_s9 = inlined_call_operand.hbm [shape: f32[16,128], index: 9, kind: output, shape index: {}]  }
   0x1   :  { %3981 = sst [smem:[#allocation27_spill]] %s3960_s1 }
   0x2   :  { %3982 = sst [smem:[#allocation28_spill]] %s3961_s2 }
   0x3   :  { %3983 = sst [smem:[#allocation29_spill]] %s3963_s4 }
   0x4   :  { %14 = vsyncpa [#allocation7], 0 }
   0x5   :  { %16 = vsyncpa [#allocation7 + $0x1], 0 }
   0x6   :  { %17 = vsyncpa [#allocation10], 0 }
   0x7   :  { %18 = vsyncpa [#allocation13], 0 }
   0x8   :  { %19 = vsyncpa [#allocation16], 0 }
   0x9   :  { %20 = vsyncpa [#allocation8], 0  ;;  %s3386_s30 = smov 0   ;;  %s3388_s10 = smov 0  }
   0xa   :  { %s3390_s11 = smov 0   ;;  %s3392_s12 = smov 0  }
   0xb   :  { %s3394_s13 = smov 0   ;;  %s3396_s14 = smov 0  }
   0xc LB: > { %s3972_s15 = sadd.s32 4294967295, %s3315_s14   ;;  %p2437_p0 = scmp.ge.s32.totalorder %s3315_s14, 1  ;;  %s3315_s14 = sphi %s3396_s14, %s26_s14   ;;  %s3311_s13 = sphi %s3394_s13, %s4014_s13   ;;  %s3307_s12 = sphi %s3392_s12, %s4013_s12   ;;  %s3303_s11 = sphi %s3390_s11, %s4012_s11   ;;  %s3299_s10 = sphi %s3388_s10, %s4011_s10   ;;  %s3295_s30 = sphi %s3386_s30, %s4010_s30  }
   0xd   : > { %p3420_p1 = scmp.eq.s32.totalorder %s3972_s15, 0  ;;  %p265_p2 = scmp.lt.s32.totalorder %s3315_s14, 3 }
   0xe   : > { %s3317_s18 = smov [#allocation9]   ;;  %s3318_s21 = smov [#allocation12]  }
   0xf   : > { %s3984_s16 = scalar_select %p3420_p1, 1, 0 }
  0x10   : > { %p3425_p3 = pnand %p2437_p0, %p265_p2  ;;  %s277_s19 = sshll.u32 %s3317_s18, 4  ;;  %s278_s19 = int_to_ptr.vmem [resolvable:$true] %s277_s19 }
  0x11   : > { %s306_s22 = sshll.u32 %s3318_s21, 4  ;;  %s3319_s23 = smov [#allocation11]   ;;  %s307_s22 = int_to_ptr.vmem [resolvable:$true] %s306_s22 }
  0x12   : > { %s3985_s17 = scalar_select %p3425_p3, 1, 0 }
  0x13   : > { %p2699_p4 = pneg %p3425_p3  ;;  %s290_s24 = sshll.u32 %s3319_s23, 4  ;;  %s291_s24 = int_to_ptr.vmem [resolvable:$true] %s290_s24 }
  0x14   : > { %s3078_s26 = scalar_lea.vmem %s278_s19, 4096  ;;  %p3086_p10 = scmp.lt.s32.totalorder %s278_s19, %s278_s19 }
  0x15   : > { %p3433_p5 = pnand %p2699_p4, %p3420_p1  ;;  %p3079_p7 = scmp.ne.s32.totalorder %s278_s19, %s3078_s26 }
  0x16   : > { %p3087_p11 = scmp.lt.s32.totalorder %s3078_s26, %s3078_s26 }
  0x17   : > { %p3439_p6 = pneg %p3433_p5 }
  0x18   : > { %p3088_p12 = por %p3087_p11, %p3086_p10 }
  0x19   : > { %p3081_p8 = pnand %p3079_p7, %p3439_p6 }
  0x1b   : > { %p3082_p9 = pneg %p3081_p8 }
  0x1d   : > { %p3089_p13 = pnand %p3088_p12, %p3082_p9 }
  0x1f   : > { %3092 = shalt.err (!%p3089_p13)
}
  0x20   : > { %s3320_s27 = smov 256   ;;  %s3321_s28 = smov 16  }
  0x21   : > { %s3988_s1 = sld [smem:[#allocation27_spill]]  ;;  %s3104_s21 = scalar_lea.vmem %s307_s22, 4096 }
  0x22   : > { %p3105_p0 = scmp.ne.s32.totalorder %s307_s22, %s3104_s21  ;;  %p3112_p7 = scmp.lt.s32.totalorder %s307_s22, %s307_s22 }
  0x23   : > { %p3113_p8 = scmp.lt.s32.totalorder %s3104_s21, %s3104_s21 }
  0x24   : > { %p3107_p2 = pnand %p3105_p0, %p3439_p6 }
  0x25   : > { %p3114_p3 = por %p3113_p8, %p3112_p7 }
  0x26   : > { %p3108_p4 = pneg %p3107_p2 }
  0x27   : > { %2702 = dma.hbm_to_vmem [thread:$0]  (!%p3433_p5), %s3988_s1, 4096, %s278_s19, [#allocation10], %s3320_s27, %s3320_s27, %s3321_s28  }
  0x28   : > { %p3115_p10 = pnand %p3114_p3, %p3108_p4 }
  0x2a   : > { %3118 = shalt.err (!%p3115_p10)
}
  0x2b   : > { %s3989_s4 = sld [smem:[#allocation29_spill]]  ;;  %s3130_s29 = scalar_lea.vmem %s291_s24, 4096 }
  0x2c   : > { %p3131_p9 = scmp.ne.s32.totalorder %s291_s24, %s3130_s29  ;;  %p3138_p13 = scmp.lt.s32.totalorder %s291_s24, %s291_s24 }
  0x2d   : > { %p3139_p0 = scmp.lt.s32.totalorder %s3130_s29, %s3130_s29 }
  0x2e   : > { %p3133_p11 = pnand %p3131_p9, %p3439_p6 }
  0x2f   : > { %p3140_p2 = por %p3139_p0, %p3138_p13 }
  0x30   : > { %p3134_p12 = pneg %p3133_p11 }
  0x31   : > { %2708 = dma.hbm_to_vmem [thread:$0]  (!%p3433_p5), %s3989_s4, 4096, %s307_s22, [#allocation13], %s3320_s27, %s3320_s27, %s3321_s28  }
  0x32   : > { %p3141_p1 = pnand %p3140_p2, %p3134_p12 }
  0x34   : > { %3144 = shalt.err (!%p3141_p1)
}
  0x35   : > { %s3990_s2 = sld [smem:[#allocation28_spill]]  ;;  %s3322_s21 = smov [#allocation14]  }
  0x36   : > { %s322_s22 = sshll.u32 %s3322_s21, 4  ;;  %s323_s22 = int_to_ptr.vmem [resolvable:$true] %s322_s22 }
  0x37   : > { %s3156_s23 = scalar_lea.vmem %s323_s22, 1024  ;;  %p3164_p8 = scmp.lt.s32.totalorder %s323_s22, %s323_s22 }
  0x38   : > { %p3157_p3 = scmp.ne.s32.totalorder %s323_s22, %s3156_s23  ;;  %p3165_p10 = scmp.lt.s32.totalorder %s3156_s23, %s3156_s23 }
  0x3a   : > { %p3159_p4 = pnand %p3157_p3, %p3439_p6  ;;  %p3166_p9 = por %p3165_p10, %p3164_p8 }
  0x3b   : > { %2705 = dma.hbm_to_vmem [thread:$0]  (!%p3433_p5), %s3990_s2, 4096, %s291_s24, [#allocation10], %s3320_s27, %s3320_s27, %s3321_s28  }
  0x3c   : > { %p3160_p7 = pneg %p3159_p4 }
  0x3e   : > { %p3167_p11 = pnand %p3166_p9, %p3160_p7 }
  0x40   : > { %3170 = shalt.err (!%p3167_p11)
}
  0x41   : > { %s3973_s26 = smov 64   ;;  %s3974_s29 = smov 4  }
  0x42   : > { %2711 = dma.hbm_to_vmem [thread:$0]  (!%p3433_p5), %s3965_s6, 1024, %s323_s22, [#allocation13], %s3973_s26, %s3973_s26, %s3974_s29  }
  0x43   : > { %s3325_s28 = smov [#allocation15]  }
  0x44   : > { %s335_s19 = sshll.u32 %s3325_s28, 4  ;;  %s336_s19 = int_to_ptr.vmem [resolvable:$true] %s335_s19 }
  0x45   : > { %s3182_s18 = scalar_lea.vmem %s336_s19, 1024  ;;  %p3190_p0 = scmp.lt.s32.totalorder %s336_s19, %s336_s19 }
  0x46   : > { %p3183_p1 = scmp.ne.s32.totalorder %s336_s19, %s3182_s18  ;;  %p3191_p2 = scmp.lt.s32.totalorder %s3182_s18, %s3182_s18 }
  0x48   : > { %p3185_p12 = pnand %p3183_p1, %p3439_p6  ;;  %p3192_p3 = por %p3191_p2, %p3190_p0 }
  0x4a   : > { %p3186_p13 = pneg %p3185_p12 }
  0x4c   : > { %p3193_p4 = pnand %p3192_p3, %p3186_p13 }
  0x4e   : > { %3196 = shalt.err (!%p3193_p4)
}
  0x4f   : > { %2714 = dma.hbm_to_vmem [thread:$0]  (!%p3433_p5), %s3966_s7, 1024, %s336_s19, [#allocation16], %s3973_s26, %s3973_s26, %s3974_s29  }
  0x50   : > { %s35_s20 = sadd.s32 1, %s3311_s13  ;;  %s47_s25 = sadd.s32 1, %s3303_s11 }
  0x51   : > { %p36_p6 = scmp.ge.s32.totalorder %s35_s20, 2  ;;  %p54_p7 = scmp.ne.s32.totalorder %s3303_s11, %s3299_s10 }
  0x52   : > { %p55_p8 = scmp.eq.s32.totalorder %s3315_s14, 0  ;;  %p60_p9 = scmp.ne.s32.totalorder %s3299_s10, %s3295_s30 }
  0x53   : > { %s4016_s20 = smov (%p36_p6, %s35_s20), 0  ;;  %p2724_p11 = scmp.lt.s32.totalorder %s3315_s14, 2 }
  0x54   : > { %p3491_p10 = por %p55_p8, %p54_p7  ;;  %s42_s24 = ssub.s32 %s3311_s13, %s4016_s20 }
  0x55   : > { %p45_p1 = scmp.eq.s32.totalorder %s42_s24, 0  ;;  %p3992_p12 = scmp.ne.s32.totalorder %s3984_s16, 0 }
  0x56   : > { %s352_s28 = sand.u32 1, %s3303_s11   ;;  %s2598_s19 = sshll.u32 %s3311_s13, 9 }
  0x57   : > { %p3502_p13 = por %p3992_p12, %p60_p9  ;;  %s2444_s21 = sshll.u32 %s352_s28, 5 }
  0x58   : > { %s3509_s18 = scalar_select %p45_p1, %s3303_s11, %s47_s25  }
  0x59   : > { %s365_s26 = scalar_lea.hbm %s3959_s0, %s2598_s19  ;;  %s356_s29 = scalar_lea.vmem [#allocation6], %s2444_s21 }
  0x5a   : > { %s366_s1 = sshll.u32 %s356_s29, 4  ;;  %p3516_p5 = pnand %p2724_p11, %p3491_p10  ;;  %s367_s1 = int_to_ptr.vmem [resolvable:$true] %s366_s1 }
  0x5b   : > { %s353_s24 = scalar_lea.sflag [#allocation7], %s352_s28  ;;  %s3210_s2 = scalar_lea.vmem %s367_s1, 512 }
  0x5c   : > { %p3199_p0 = pneg %p3516_p5  ;;  %p3211_p2 = scmp.ne.s32.totalorder %s367_s1, %s3210_s2 }
  0x5d   : > { %s3326_s25 = smov [#allocation6]  }
  0x5e   : > { %p3213_p3 = pnand %p3211_p2, %p3199_p0  ;;  %s3215_s4 = sshll.u32 %s3326_s25, 4  ;;  %s3216_s4 = int_to_ptr.vmem [resolvable:$false] %s3215_s4 }
  0x5f   : > { %s3217_s15 = scalar_lea.vmem %s3216_s4, 1024  ;;  %p3218_p6 = scmp.lt.s32.totalorder %s367_s1, %s3216_s4 }
  0x60   : > { %p3214_p4 = pneg %p3213_p3  ;;  %p3219_p7 = scmp.lt.s32.totalorder %s3217_s15, %s3210_s2 }
  0x62   : > { %p3220_p8 = por %p3219_p7, %p3218_p6 }
  0x64   : > { %p3221_p10 = pnand %p3220_p8, %p3214_p4 }
  0x66   : > { %3224 = shalt.err (!%p3221_p10)
}
  0x67   : > { %s3995_s29 = smov 4   ;;  %s3996_s23 = smov 64  }
  0x68   : > { %2718 = dma.hbm_to_vmem [thread:$0]  (!%p3516_p5), %s365_s26, 512, %s367_s1, %s353_s24, %s3996_s23, %s3996_s23, %s3995_s29  }
  0x69   : > { %p3997_p9 = scmp.ne.s32.totalorder %s3985_s17, 0 }
  0x6b   : > { %378 = sbr.rel (%p3997_p9) target bundleno = 1996 (0x7cc), region = 56 }
  0x70   : > { %s380_s28 = sand.u32 1, %s3299_s10  }
  0x71   : > { %s2449_s19 = sshll.u32 %s380_s28, 5  ;;  %s381_s21 = scalar_lea.sflag [#allocation7], %s380_s28 }
  0x72   : > { %s3530_s22 = scalar_lea.vmem [#allocation6], %s2449_s19 }
  0x73   : > { %3274 = dma.done.wait (%p3502_p13), %s381_s21, 512  }
  0x74   : > { %3276 = vsyncadd (%p3502_p13), %s381_s21, 4294966784  ;;  %p3998_p11 = scmp.ne.s32.totalorder %s3984_s16, 0 }
  0x76   : > { %3278 = dma.done.wait (%p3998_p11), [#allocation10], 8192  }
  0x77   : > { %3280 = vsyncadd (%p3998_p11), [#allocation10], 4294959104 }
  0x78   : > { %3282 = dma.done.wait (%p3998_p11), [#allocation13], 5120  }
  0x79   : > { %3284 = vsyncadd (%p3998_p11), [#allocation13], 4294962176 }
  0x7a   : > { %3286 = dma.done.wait (%p3998_p11), [#allocation16], 1024  }
  0x7b   : > { %3288 = vsyncadd (%p3998_p11), [#allocation16], 4294966272  ;;  %p2455_p1 = scmp.ne.s32.totalorder %s3307_s12, 0 }
  0x7d   : > { %441 = sbr.rel (%p2455_p1) target bundleno = 133 (0x85), region = 84 }
  0x82   : > { %v3327_v0 = vmov 0.0  }
  0x83   : > { %442 = vst [vmem:[#allocation2] sm:$0xff] %v3327_v0  ;;  %443 = vst [vmem:[#allocation2 + $0x8] sm:$0xff] %v3327_v0 }
  0x84   : > { %444 = vst [vmem:[#allocation3 + $0x8] sm:$0xff] %v3327_v0  ;;  %445 = vst [vmem:[#allocation3] sm:$0xff] %v3327_v0 }
  0x85 PF: > { %v2798_v1 = vld [vmem:[#allocation9 + $0xe4] ss:$16 sps:$4 sm:$0xff]   ;;  %v2800_v2 = vld [vmem:[#allocation9 + $0xec] ss:$16 sps:$4 sm:$0xff]   ;;  %v3975_v3 = vmov 0   ;;  %vm3330_vm0 = vmmov 0  }
  0x86   : > { %724 = vmatprep.mubr.bf16.mxu0 %v3975_v3  ;;  %797 = vmatprep.mubr.bf16.mxu1 %v3975_v3  ;;  %v2802_v4 = vld [vmem:[#allocation9 + $0xe0] ss:$16 sps:$4 sm:$0xff]   ;;  %v2803_v5 = vld [vmem:[#allocation9 + $0xe8] ss:$16 sps:$4 sm:$0xff]   ;;  %v2804_v6 = vld [vmem:[#allocation9 + $0xc4] ss:$16 sps:$4 sm:$0xff]  }
  0x87   : > { %692 = vmatprep.subr.bf16.mxu0 %v2798_v1  ;;  %765 = vmatprep.subr.bf16.mxu1 %v2800_v2  ;;  %v2806_v7 = vld [vmem:[#allocation9 + $0xcc] ss:$16 sps:$4 sm:$0xff]   ;;  %v2808_v8 = vld [vmem:[#allocation9 + $0xc0] ss:$16 sps:$4 sm:$0xff]   ;;  %v2809_v9 = vld [vmem:[#allocation9 + $0xc8] ss:$16 sps:$4 sm:$0xff]  }
  0x88   : > { %693 = vmatpush1.bf16.msra.mxu0 %v2802_v4  ;;  %766 = vmatpush1.bf16.msra.mxu1 %v2803_v5  ;;  %v2810_v10 = vld [vmem:[#allocation9 + $0xa4] ss:$16 sps:$4 sm:$0xff]   ;;  %v2812_v11 = vld [vmem:[#allocation9 + $0xac] ss:$16 sps:$4 sm:$0xff]   ;;  %v2814_v12 = vld [vmem:[#allocation9 + $0xa0] ss:$16 sps:$4 sm:$0xff]  }
  0x89   : > { %694 = vmatprep.subr.bf16.mxu0 %v2804_v6  ;;  %767 = vmatprep.subr.bf16.mxu1 %v2806_v7  ;;  %v2815_v13 = vld [vmem:[#allocation9 + $0xa8] ss:$16 sps:$4 sm:$0xff]   ;;  %v2816_v14 = vld [vmem:[#allocation9 + $0x84] ss:$16 sps:$4 sm:$0xff]   ;;  %v2818_v15 = vld [vmem:[#allocation9 + $0x8c] ss:$16 sps:$4 sm:$0xff]  }
  0x8a   : > { %v2820_v16 = vld [vmem:[#allocation9 + $0x80] ss:$16 sps:$4 sm:$0xff]   ;;  %v2821_v17 = vld [vmem:[#allocation9 + $0x88] ss:$16 sps:$4 sm:$0xff]   ;;  %v2822_v18 = vld [vmem:[#allocation9 + $0x64] ss:$16 sps:$4 sm:$0xff]  }
  0x8b   : > { %v2824_v19 = vld [vmem:[#allocation9 + $0x6c] ss:$16 sps:$4 sm:$0xff]   ;;  %v2826_v20 = vld [vmem:[#allocation9 + $0x60] ss:$16 sps:$4 sm:$0xff]   ;;  %v2827_v21 = vld [vmem:[#allocation9 + $0x68] ss:$16 sps:$4 sm:$0xff]  }
  0x8c   : > { %695 = vmatpush1.bf16.msra.mxu0 %v2808_v8  ;;  %768 = vmatpush1.bf16.msra.mxu1 %v2809_v9  ;;  %v2828_v22 = vld [vmem:[#allocation9 + $0x44] ss:$16 sps:$4 sm:$0xff]   ;;  %v2830_v23 = vld [vmem:[#allocation9 + $0x4c] ss:$16 sps:$4 sm:$0xff]   ;;  %v2832_v24 = vld [vmem:[#allocation9 + $0x40] ss:$16 sps:$4 sm:$0xff]  }
  0x8d   : > { %696 = vmatprep.subr.bf16.mxu0 %v2810_v10  ;;  %769 = vmatprep.subr.bf16.mxu1 %v2812_v11  ;;  %v2833_v25 = vld [vmem:[#allocation9 + $0x48] ss:$16 sps:$4 sm:$0xff]   ;;  %v2834_v26 = vld [vmem:[#allocation9 + $0x24] ss:$16 sps:$4 sm:$0xff]   ;;  %v2836_v27 = vld [vmem:[#allocation9 + $0x2c] ss:$16 sps:$4 sm:$0xff]  }
  0x8e   : > { %v2838_v28 = vld [vmem:[#allocation9 + $0x20] ss:$16 sps:$4 sm:$0xff]   ;;  %v2839_v29 = vld [vmem:[#allocation9 + $0x28] ss:$16 sps:$4 sm:$0xff]   ;;  %v2840_v30 = vld [vmem:[#allocation9 + $0x4] ss:$16 sps:$4 sm:$0xff]  }
  0x8f   : > { %v2842_v31 = vld [vmem:[#allocation9 + $0xc] ss:$16 sps:$4 sm:$0xff]   ;;  %v2844_v32 = vld [vmem:[#allocation9] ss:$16 sps:$4 sm:$0xff]   ;;  %v2845_v33 = vld [vmem:[#allocation9 + $0x8] ss:$16 sps:$4 sm:$0xff]  }
  0x90   : > { %697 = vmatpush1.bf16.msra.mxu0 %v2814_v12  ;;  %770 = vmatpush1.bf16.msra.mxu1 %v2815_v13  ;;  %v2849_v34 = vld [vmem:[#allocation12 + $0xe4] ss:$16 sps:$4 sm:$0xff]   ;;  %v2852_v35 = vld [vmem:[#allocation12 + $0xec] ss:$16 sps:$4 sm:$0xff]   ;;  %v2847_v37 = vld [vmem:[#allocation12 + $0xe0] ss:$16 sps:$4 sm:$0xff]  }
  0x91   : > { %698 = vmatprep.subr.bf16.mxu0 %v2816_v14  ;;  %771 = vmatprep.subr.bf16.mxu1 %v2818_v15  ;;  %v2846_v36 = vld [vmem:[%s3530_s22] sm:$0xff]   ;;  %v2850_v38 = vld [vmem:[#allocation12 + $0xe8] ss:$16 sps:$4 sm:$0xff]   ;;  %v2858_v40 = vld [vmem:[#allocation12 + $0xcc] ss:$16 sps:$4 sm:$0xff]   ;;  %p2584_p12 = scmp.ne.s32.totalorder %s3307_s12, 1 }
  0x92   : > { %v2855_v39 = vld [vmem:[#allocation12 + $0xc4] ss:$16 sps:$4 sm:$0xff]   ;;  %v2853_v41 = vld [vmem:[#allocation12 + $0xc0] ss:$16 sps:$4 sm:$0xff]   ;;  %v2856_v42 = vld [vmem:[#allocation12 + $0xc8] ss:$16 sps:$4 sm:$0xff]  }
  0x93   : > { %v2862_v43 = vld [vmem:[#allocation12 + $0xa4] ss:$16 sps:$4 sm:$0xff]   ;;  %v2865_v44 = vld [vmem:[#allocation12 + $0xac] ss:$16 sps:$4 sm:$0xff]   ;;  %v2860_v46 = vld [vmem:[#allocation12 + $0xa0] ss:$16 sps:$4 sm:$0xff]  }
  0x94   : > { %699 = vmatpush1.bf16.msra.mxu0 %v2820_v16  ;;  %772 = vmatpush1.bf16.msra.mxu1 %v2821_v17  ;;  %v2859_v45 = vld [vmem:[%s3530_s22 + $0x8] sm:$0xff]   ;;  %v2868_v48 = vld [vmem:[#allocation12 + $0x84] ss:$16 sps:$4 sm:$0xff]   ;;  %v2866_v50 = vld [vmem:[#allocation12 + $0x80] ss:$16 sps:$4 sm:$0xff]  }
  0x95   : > { %700 = vmatprep.subr.bf16.mxu0 %v2822_v18  ;;  %773 = vmatprep.subr.bf16.mxu1 %v2824_v19  ;;  %v2863_v47 = vld [vmem:[#allocation12 + $0xa8] ss:$16 sps:$4 sm:$0xff]   ;;  %v2871_v49 = vld [vmem:[#allocation12 + $0x8c] ss:$16 sps:$4 sm:$0xff]   ;;  %v2875_v52 = vld [vmem:[#allocation12 + $0x64] ss:$16 sps:$4 sm:$0xff]  }
  0x96   : > { %v2869_v51 = vld [vmem:[#allocation12 + $0x88] ss:$16 sps:$4 sm:$0xff]   ;;  %v2878_v53 = vld [vmem:[#allocation12 + $0x6c] ss:$16 sps:$4 sm:$0xff]   ;;  %v2872_v54 = vld [vmem:[%s3530_s22 + $0x10] sm:$0xff]  }
  0x97   : > { %v2873_v55 = vld [vmem:[#allocation12 + $0x60] ss:$16 sps:$4 sm:$0xff]   ;;  %v2876_v56 = vld [vmem:[#allocation12 + $0x68] ss:$16 sps:$4 sm:$0xff]   ;;  %v2881_v57 = vld [vmem:[#allocation12 + $0x44] ss:$16 sps:$4 sm:$0xff]  }
  0x98   : > { %701 = vmatpush1.bf16.msra.mxu0 %v2826_v20  ;;  %774 = vmatpush1.bf16.msra.mxu1 %v2827_v21  ;;  %v2884_v58 = vld [vmem:[#allocation12 + $0x4c] ss:$16 sps:$4 sm:$0xff]   ;;  %v2879_v59 = vld [vmem:[#allocation12 + $0x40] ss:$16 sps:$4 sm:$0xff]   ;;  %v2882_v60 = vld [vmem:[#allocation12 + $0x48] ss:$16 sps:$4 sm:$0xff]  }
  0x99   : > { %702 = vmatprep.subr.bf16.mxu0 %v2828_v22  ;;  %775 = vmatprep.subr.bf16.mxu1 %v2830_v23  ;;  %v2888_v61 = vld [vmem:[#allocation12 + $0x24] ss:$16 sps:$4 sm:$0xff]   ;;  %v2891_v62 = vld [vmem:[#allocation12 + $0x2c] ss:$16 sps:$4 sm:$0xff]   ;;  %v2886_v0 = vld [vmem:[#allocation12 + $0x20] ss:$16 sps:$4 sm:$0xff]  }
  0x9a   : > { %v2885_v63 = vld [vmem:[%s3530_s22 + $0x18] sm:$0xff]   ;;  %v2894_v2 = vld [vmem:[#allocation12 + $0x4] ss:$16 sps:$4 sm:$0xff]   ;;  %v2892_v5 = vld [vmem:[#allocation12] ss:$16 sps:$4 sm:$0xff]  }
  0x9b   : > { %v2889_v1 = vld [vmem:[#allocation12 + $0x28] ss:$16 sps:$4 sm:$0xff]   ;;  %v2897_v4 = vld [vmem:[#allocation12 + $0xc] ss:$16 sps:$4 sm:$0xff]   ;;  %v3561_v7 = vld [vmem:[#allocation11 + $0xe4] ss:$16 sps:$4 sm:$0xff]  }
  0x9c   : > { %703 = vmatpush1.bf16.msra.mxu0 %v2832_v24  ;;  %776 = vmatpush1.bf16.msra.mxu1 %v2833_v25  ;;  %v2895_v6 = vld [vmem:[#allocation12 + $0x8] ss:$16 sps:$4 sm:$0xff]   ;;  %v3566_v9 = vld [vmem:[#allocation11 + $0xe0] ss:$16 sps:$4 sm:$0xff]   ;;  %v3568_v10 = vld [vmem:[#allocation11 + $0xc4] ss:$16 sps:$4 sm:$0xff]  }
  0x9d   : > { %704 = vmatprep.subr.bf16.mxu0 %v2834_v26  ;;  %777 = vmatprep.subr.bf16.mxu1 %v2836_v27  ;;  %v2898_v8 = vld [vmem:[%s3530_s22 + $0x18] sm:$0xff]   ;;  %v3571_v11 = vld [vmem:[#allocation11 + $0xc0] ss:$16 sps:$4 sm:$0xff]   ;;  %v3573_v12 = vld [vmem:[#allocation11 + $0xa4] ss:$16 sps:$4 sm:$0xff]  }
  0x9e   : > { %v3579_v13 = vld [vmem:[#allocation11 + $0xa0] ss:$16 sps:$4 sm:$0xff]   ;;  %v3582_v14 = vld [vmem:[#allocation11 + $0x84] ss:$16 sps:$4 sm:$0xff]   ;;  %v1424_v25 = vld [vmem:[#allocation2 + $0x8] sm:$0xff] }
  0x9f   : > { %v3585_v15 = vld [vmem:[#allocation11 + $0x80] ss:$16 sps:$4 sm:$0xff]   ;;  %v3588_v16 = vld [vmem:[#allocation11 + $0x64] ss:$16 sps:$4 sm:$0xff]   ;;  %v2923_v27 = vld [vmem:[#allocation15 + $0x38] sm:$0xff]  }
  0xa0   : > { %705 = vmatpush1.bf16.msra.mxu0 %v2838_v28  ;;  %778 = vmatpush1.bf16.msra.mxu1 %v2839_v29  ;;  %v3591_v17 = vld [vmem:[#allocation11 + $0x60] ss:$16 sps:$4 sm:$0xff]   ;;  %v3594_v18 = vld [vmem:[#allocation11 + $0x44] ss:$16 sps:$4 sm:$0xff]   ;;  %v3329_v28 = vmov 0.0  }
  0xa1   : > { %706 = vmatprep.subr.bf16.mxu0 %v2840_v30  ;;  %779 = vmatprep.subr.bf16.mxu1 %v2842_v31  ;;  %v3597_v19 = vld [vmem:[#allocation11 + $0x40] ss:$16 sps:$4 sm:$0xff]   ;;  %v3600_v20 = vld [vmem:[#allocation11 + $0x24] ss:$16 sps:$4 sm:$0xff]   ;;  %v2925_v30 = vld [vmem:[#allocation15 + $0x28] sm:$0xff]  }
  0xa2   : > { %v3603_v21 = vld [vmem:[#allocation11 + $0x20] ss:$16 sps:$4 sm:$0xff]   ;;  %v3606_v22 = vld [vmem:[#allocation11 + $0x4] ss:$16 sps:$4 sm:$0xff]  }
  0xa3   : > { %v3609_v23 = vld [vmem:[#allocation11] ss:$16 sps:$4 sm:$0xff]  }
  0xa4   : > { %707 = vmatpush1.bf16.msra.mxu0 %v2844_v32  ;;  %780 = vmatpush1.bf16.msra.mxu1 %v2845_v33  ;;  %v1423_v24 = vld [vmem:[#allocation2] sm:$0xff]  ;;  %v2926_v31 = vld [vmem:[#allocation15 + $0x20] sm:$0xff]   ;;  %v2927_v32 = vld [vmem:[#allocation15 + $0x18] sm:$0xff]  }
  0xa5   : > { %1168 = vmatprep.subr.bf16.mxu0 %v2849_v34  ;;  %1209 = vmatprep.subr.bf16.mxu1 %v2852_v35  ;;  %v3612_v26 = vpack.c.bf16 %v1424_v25, %v1423_v24  ;;  %v2924_v29 = vld [vmem:[#allocation15 + $0x30] sm:$0xff]   ;;  %v2929_v34 = vld [vmem:[#allocation15 + $0x8] sm:$0xff]   ;;  %v2930_v35 = vld [vmem:[#allocation15] sm:$0xff]  }
  0xa6   : > { %v2928_v33 = vld [vmem:[#allocation15 + $0x10] sm:$0xff]  }
  0xa7   : > { %725 = vmatmul.mubr.bf16.vlgmr.msra.gmra.mxu0 %v2846_v36  ;;  %798 = vmatmul.mubr.bf16.vlgmr.msra.gmra.mxu1 %v2846_v36  ;;  %v3634_v36 = vld [vmem:[#allocation11 + $0xec] ss:$16 sps:$4 sm:$0xff]  }
  0xa8   : > { %1169 = vmatpush1.bf16.msra.mxu0 %v2847_v37  ;;  %1210 = vmatpush1.bf16.msra.mxu1 %v2850_v38  ;;  %v488_v37 = vlaneseq }
  0xa9   : > { %1170 = vmatprep.subr.bf16.mxu0 %v2855_v39  ;;  %1211 = vmatprep.subr.bf16.mxu1 %v2858_v40 }
  0xaa   : > { %734 = vmatprep.mubr.bf16.mxu0 %v3975_v3  ;;  %807 = vmatprep.mubr.bf16.mxu1 %v3975_v3  ;;  %v3637_v38 = vshrl.u32 %v488_v37, 7 }
  0xac   : > { %1171 = vmatpush1.bf16.msra.mxu0 %v2853_v41  ;;  %1212 = vmatpush1.bf16.msra.mxu1 %v2856_v42  ;;  %v498_v39 = vsub.s32 2, %v3637_v38  ;;  %v490_v40 = vsub.s32 0, %v3637_v38  ;;  %v494_v41 = vsub.s32 1, %v3637_v38  ;;  %v502_v42 = vsub.s32 3, %v3637_v38 }
  0xad   : > { %1172 = vmatprep.subr.bf16.mxu0 %v2862_v43  ;;  %1213 = vmatprep.subr.bf16.mxu1 %v2865_v44  ;;  %v486_v43 = vld [vmem:[%s3962_s3] sm:$0xf] }
  0xae   : > { %v3648_v44 = vrot.slane %v486_v43, %v498_v39 }
  0xaf   : > { %735 = vmatmul.mubr.bf16.gmra.mxu0 %v2859_v45  ;;  %808 = vmatmul.mubr.bf16.gmra.mxu1 %v2859_v45  ;;  %v3652_v45 = vrot.slane %v486_v43, %v490_v40 }
  0xb0   : > { %1173 = vmatpush1.bf16.msra.mxu0 %v2860_v46  ;;  %1214 = vmatpush1.bf16.msra.mxu1 %v2863_v47  ;;  %v3654_v46 = vrot.slane %v486_v43, %v494_v41  ;;  %v3658_v47 = vrot.slane %v486_v43, %v502_v42 }
  0xb1   : > { %1174 = vmatprep.subr.bf16.mxu0 %v2868_v48  ;;  %1215 = vmatprep.subr.bf16.mxu1 %v2871_v49 }
  0xb2   : > { %744 = vmatprep.mubr.bf16.mxu0 %v3975_v3  ;;  %817 = vmatprep.mubr.bf16.mxu1 %v3975_v3 }
  0xb4   : > { %1175 = vmatpush1.bf16.msra.mxu0 %v2866_v50  ;;  %1216 = vmatpush1.bf16.msra.mxu1 %v2869_v51 }
  0xb5   : > { %1176 = vmatprep.subr.bf16.mxu0 %v2875_v52  ;;  %1217 = vmatprep.subr.bf16.mxu1 %v2878_v53 }
  0xb7   : > { %745 = vmatmul.mubr.bf16.gmra.mxu0 %v2872_v54  ;;  %818 = vmatmul.mubr.bf16.gmra.mxu1 %v2872_v54 }
  0xb8   : > { %1177 = vmatpush1.bf16.msra.mxu0 %v2873_v55  ;;  %1218 = vmatpush1.bf16.msra.mxu1 %v2876_v56 }
  0xb9   : > { %1178 = vmatprep.subr.bf16.mxu0 %v2881_v57  ;;  %1219 = vmatprep.subr.bf16.mxu1 %v2884_v58 }
  0xba   : > { %754 = vmatprep.mubr.bf16.mxu0 %v3975_v3  ;;  %827 = vmatprep.mubr.bf16.mxu1 %v3975_v3 }
  0xbc   : > { %1179 = vmatpush1.bf16.msra.mxu0 %v2879_v59  ;;  %1220 = vmatpush1.bf16.msra.mxu1 %v2882_v60 }
  0xbd   : > { %1180 = vmatprep.subr.bf16.mxu0 %v2888_v61  ;;  %1221 = vmatprep.subr.bf16.mxu1 %v2891_v62 }
  0xbf   : > { %755 = vmatmul.mubr.bf16.gmra.mxu0 %v2885_v63  ;;  %828 = vmatmul.mubr.bf16.gmra.mxu1 %v2885_v63 }
  0xc0   : > { %1181 = vmatpush1.bf16.msra.mxu0 %v2886_v0  ;;  %1222 = vmatpush1.bf16.msra.mxu1 %v2889_v1 }
  0xc1   : > { %1182 = vmatprep.subr.bf16.mxu0 %v2894_v2  ;;  %1223 = vmatprep.subr.bf16.mxu1 %v2897_v4 }
  0xc2   : > { %1200 = vmatprep.mubr.bf16.mxu0 %v3975_v3  ;;  %1241 = vmatprep.mubr.bf16.mxu1 %v3975_v3 }
  0xc4   : > { %1183 = vmatpush1.bf16.msra.mxu0 %v2892_v5  ;;  %1224 = vmatpush1.bf16.msra.mxu1 %v2895_v6 }
  0xc5   : > { %1603 = vmatprep.subr.bf16.mxu1 %v3561_v7  ;;  %2633 = vmatprep.subr.bf16.mxu0 %v3329_v28 }
  0xc7   : > { %1201 = vmatmul.mubr.bf16.vlgmr.msra.gmra.mxu0 %v2898_v8  ;;  %1242 = vmatmul.mubr.bf16.vlgmr.msra.gmra.mxu1 %v2898_v8 }
  0xc8   : > { %1604 = vmatpush1.bf16.msra.mxu1 %v3566_v9  ;;  %1635 = vmatprep.mubr.bf16.mxu1 %v3975_v3 }
  0xc9   : > { %1605 = vmatprep.subr.bf16.mxu1 %v3568_v10  ;;  %2634 = vmatpush3.bf16.msra.mxu0 %v2923_v27 }
  0xca   : > { %2635 = vmatprep.subr.bf16.mxu0 %v3329_v28  ;;  %2649 = vmatprep.mubr.msk.bf16.mxu0 %vm3330_vm0, %v3329_v28 }
  0xcc   : > { %1606 = vmatpush1.bf16.msra.mxu1 %v3571_v11 }
  0xcd   : > { %1607 = vmatprep.subr.bf16.mxu1 %v3573_v12  ;;  %2636 = vmatpush3.bf16.msra.mxu0 %v2924_v29 }
  0xce   : > { %2637 = vmatprep.subr.bf16.mxu0 %v3329_v28 }
  0xd0   : > { %1608 = vmatpush1.bf16.msra.mxu1 %v3579_v13 }
  0xd1   : > { %1609 = vmatprep.subr.bf16.mxu1 %v3582_v14  ;;  %2638 = vmatpush3.bf16.msra.mxu0 %v2925_v30 }
  0xd2   : > { %2639 = vmatprep.subr.bf16.mxu0 %v3329_v28 }
  0xd4   : > { %1610 = vmatpush1.bf16.msra.mxu1 %v3585_v15 }
  0xd5   : > { %1611 = vmatprep.subr.bf16.mxu1 %v3588_v16  ;;  %2640 = vmatpush3.bf16.msra.mxu0 %v2926_v31 }
  0xd6   : > { %2641 = vmatprep.subr.bf16.mxu0 %v3329_v28 }
  0xd8   : > { %1612 = vmatpush1.bf16.msra.mxu1 %v3591_v17 }
  0xd9   : > { %1613 = vmatprep.subr.bf16.mxu1 %v3594_v18  ;;  %2642 = vmatpush3.bf16.msra.mxu0 %v2927_v32 }
  0xda   : > { %2643 = vmatprep.subr.bf16.mxu0 %v3329_v28 }
  0xdc   : > { %1614 = vmatpush1.bf16.msra.mxu1 %v3597_v19 }
  0xdd   : > { %1615 = vmatprep.subr.bf16.mxu1 %v3600_v20  ;;  %2644 = vmatpush3.bf16.msra.mxu0 %v2928_v33 }
  0xde   : > { %2645 = vmatprep.subr.bf16.mxu0 %v3329_v28 }
  0xe0   : > { %1616 = vmatpush1.bf16.msra.mxu1 %v3603_v21 }
  0xe1   : > { %1617 = vmatprep.subr.bf16.mxu1 %v3606_v22  ;;  %2646 = vmatpush3.bf16.msra.mxu0 %v2929_v34 }
  0xe2   : > { %2647 = vmatprep.subr.bf16.mxu0 %v3329_v28 }
  0xe4   : > { %1618 = vmatpush1.bf16.msra.mxu1 %v3609_v23 }
  0xe5   : > { %1749 = vmatprep.subr.bf16.mxu1 %v3561_v7  ;;  %2648 = vmatpush3.bf16.msra.mxu0 %v2930_v35 }
  0xe6   : > { %1646 = vmatprep.subr.bf16.mxu0 %v3634_v36 }
  0xe7   : > { %1636 = vmatmul.mubr.bf16.vlgmr.msra.gmra.mxu1 %v3612_v26 }
  0xe8   : > { %1750 = vmatpush1.bf16.msra.mxu1 %v3566_v9  ;;  %1781 = vmatprep.mubr.bf16.mxu1 %v3975_v3 }
  0xe9   : > { %1751 = vmatprep.subr.bf16.mxu1 %v3568_v10 }
  0xec   : > { %1752 = vmatpush1.bf16.msra.mxu1 %v3571_v11 }
  0xed   : > { %1753 = vmatprep.subr.bf16.mxu1 %v3573_v12 }
  0xf0   : > { %1754 = vmatpush1.bf16.msra.mxu1 %v3579_v13 }
  0xf1   : > { %1755 = vmatprep.subr.bf16.mxu1 %v3582_v14 }
  0xf4   : > { %1756 = vmatpush1.bf16.msra.mxu1 %v3585_v15 }
  0xf5   : > { %1757 = vmatprep.subr.bf16.mxu1 %v3588_v16 }
  0xf8   : > { %1758 = vmatpush1.bf16.msra.mxu1 %v3591_v17 }
  0xf9   : > { %1759 = vmatprep.subr.bf16.mxu1 %v3594_v18 }
  0xfc   : > { %1760 = vmatpush1.bf16.msra.mxu1 %v3597_v19 }
  0xfd   : > { %1761 = vmatprep.subr.bf16.mxu1 %v3600_v20 }
 0x100   : > { %1762 = vmatpush1.bf16.msra.mxu1 %v3603_v21 }
 0x101   : > { %1763 = vmatprep.subr.bf16.mxu1 %v3606_v22 }
 0x104   : > { %1764 = vmatpush1.bf16.msra.mxu1 %v3609_v23 }
 0x105   : > { %1895 = vmatprep.subr.bf16.mxu1 %v3561_v7 }
 0x167   : > { %v726_v48 = vpop.f32.mrf.mxu0  ;;  %v799_v49 = vpop.f32.mrf.mxu1 }
 0x168   : > { %v800_v50 = vadd.f32 %v799_v49, %v3648_v44  ;;  %v727_v53 = vadd.f32 %v726_v48, %v3652_v45 }
 0x169   : > { %v728_v51 = vpop.f32.mrf.mxu0  ;;  %v801_v52 = vpop.f32.mrf.mxu1 }
 0x16a   : > { %v729_v54 = vadd.f32 %v728_v51, %v3654_v46  ;;  %v802_v55 = vadd.f32 %v801_v52, %v3658_v47 }
 0x16b   : > { %v730_v56 = vpop.f32.mrf.mxu0  ;;  %v803_v57 = vpop.f32.mrf.mxu1 }
 0x16c   : > { %v3664_v58 = vpack.c.bf16 %v729_v54, %v727_v53  ;;  %v3666_v59 = vpack.c.bf16 %v802_v55, %v800_v50  ;;  %v804_v60 = vadd.f32 %v803_v57, %v3648_v44  ;;  %v731_v63 = vadd.f32 %v730_v56, %v3652_v45 }
 0x16d   : > { %v732_v61 = vpop.f32.mrf.mxu0  ;;  %v805_v62 = vpop.f32.mrf.mxu1 }
 0x16e   : > { %v733_v0 = vadd.f32 %v732_v61, %v3654_v46  ;;  %v806_v1 = vadd.f32 %v805_v62, %v3658_v47 }
 0x16f   : > { %v736_v2 = vpop.f32.mrf.mxu0  ;;  %v809_v4 = vpop.f32.mrf.mxu1 }
 0x170   : > { %v3672_v5 = vpack.c.bf16 %v733_v0, %v731_v63  ;;  %v3674_v6 = vpack.c.bf16 %v806_v1, %v804_v60  ;;  %v737_v8 = vadd.f32 %v736_v2, %v3652_v45  ;;  %v810_v24 = vadd.f32 %v809_v4, %v3648_v44 }
 0x171   : > { %v738_v25 = vpop.f32.mrf.mxu0  ;;  %v811_v27 = vpop.f32.mrf.mxu1 }
 0x172   : > { %v739_v28 = vadd.f32 %v738_v25, %v3654_v46  ;;  %v812_v29 = vadd.f32 %v811_v27, %v3658_v47 }
 0x173   : > { %v740_v30 = vpop.f32.mrf.mxu0  ;;  %v813_v31 = vpop.f32.mrf.mxu1 }
 0x174   : > { %v3680_v32 = vpack.c.bf16 %v739_v28, %v737_v8  ;;  %v3682_v33 = vpack.c.bf16 %v812_v29, %v810_v24  ;;  %v741_v34 = vadd.f32 %v740_v30, %v3652_v45  ;;  %v814_v35 = vadd.f32 %v813_v31, %v3648_v44 }
 0x175   : > { %v742_v37 = vpop.f32.mrf.mxu0  ;;  %v815_v41 = vpop.f32.mrf.mxu1 }
 0x176   : > { %v743_v43 = vadd.f32 %v742_v37, %v3654_v46  ;;  %v816_v48 = vadd.f32 %v815_v41, %v3658_v47 }
 0x177   : > { %v746_v49 = vpop.f32.mrf.mxu0  ;;  %v819_v50 = vpop.f32.mrf.mxu1 }
 0x178   : > { %v3688_v51 = vpack.c.bf16 %v743_v43, %v741_v34  ;;  %v3690_v52 = vpack.c.bf16 %v816_v48, %v814_v35  ;;  %v747_v53 = vadd.f32 %v746_v49, %v3652_v45  ;;  %v820_v54 = vadd.f32 %v819_v50, %v3648_v44  ;;  %v985_v35 = vld [vmem:[%s3964_s5] sm:$0xf] }
 0x179   : > { %v748_v55 = vpop.f32.mrf.mxu0  ;;  %v821_v56 = vpop.f32.mrf.mxu1 }
 0x17a   : > { %v749_v57 = vadd.f32 %v748_v55, %v3654_v46  ;;  %v822_v60 = vadd.f32 %v821_v56, %v3658_v47 }
 0x17b   : > { %v750_v61 = vpop.f32.mrf.mxu0  ;;  %v823_v62 = vpop.f32.mrf.mxu1 }
 0x17c   : > { %v3696_v63 = vpack.c.bf16 %v749_v57, %v747_v53  ;;  %v3698_v0 = vpack.c.bf16 %v822_v60, %v820_v54  ;;  %v751_v1 = vadd.f32 %v750_v61, %v3652_v45  ;;  %v824_v2 = vadd.f32 %v823_v62, %v3648_v44 }
 0x17d   : > { %v752_v4 = vpop.f32.mrf.mxu0  ;;  %v825_v8 = vpop.f32.mrf.mxu1  ;;  %v990_v53 = vrot.slane %v985_v35, %v490_v40 }
 0x17e   : > { %v753_v24 = vadd.f32 %v752_v4, %v3654_v46  ;;  %v826_v25 = vadd.f32 %v825_v8, %v3658_v47  ;;  %v998_v8 = vrot.slane %v985_v35, %v502_v42 }
 0x17f   : > { %v756_v27 = vpop.f32.mrf.mxu0  ;;  %v829_v28 = vpop.f32.mrf.mxu1 }
 0x180   : > { %v3704_v29 = vpack.c.bf16 %v753_v24, %v751_v1  ;;  %v3706_v30 = vpack.c.bf16 %v826_v25, %v824_v2  ;;  %v757_v31 = vadd.f32 %v756_v27, %v3652_v45  ;;  %v830_v34 = vadd.f32 %v829_v28, %v3648_v44 }
 0x181   : > { %v758_v37 = vpop.f32.mrf.mxu0  ;;  %v831_v41 = vpop.f32.mrf.mxu1 }
 0x182   : > { %v759_v43 = vadd.f32 %v758_v37, %v3654_v46  ;;  %v832_v48 = vadd.f32 %v831_v41, %v3658_v47 }
 0x183   : > { %v760_v49 = vpop.f32.mrf.mxu0  ;;  %v833_v50 = vpop.f32.mrf.mxu1 }
 0x184   : > { %v3717_v54 = vpack.c.bf16 %v759_v43, %v757_v31  ;;  %v3719_v55 = vpack.c.bf16 %v832_v48, %v830_v34  ;;  %v761_v56 = vadd.f32 %v760_v49, %v3652_v45  ;;  %v834_v57 = vadd.f32 %v833_v50, %v3648_v44 }
 0x185   : > { %v762_v60 = vpop.f32.mrf.mxu0  ;;  %v835_v61 = vpop.f32.mrf.mxu1  ;;  %v994_v43 = vrot.slane %v985_v35, %v498_v39 }
 0x186   : > { %3999 = vst [vmem:[#allocation23_spill] sm:$0xff] %v3717_v54  ;;  %4000 = vst [vmem:[#allocation24_spill] sm:$0xff] %v3719_v55  ;;  %v763_v62 = vadd.f32 %v762_v60, %v3654_v46  ;;  %v836_v1 = vadd.f32 %v835_v61, %v3658_v47 }
 0x187   : > { %v1202_v2 = vpop.f32.mrf.mxu0  ;;  %v1243_v4 = vpop.f32.mrf.mxu1 }
 0x188   : > { %v3727_v40 = vpack.c.bf16 %v763_v62, %v761_v56  ;;  %v3729_v24 = vpack.c.bf16 %v836_v1, %v834_v57  ;;  %v1203_v25 = vadd.f32 %v1202_v2, %v990_v53  ;;  %v1244_v48 = vadd.f32 %v1243_v4, %v994_v43 }
 0x189   : > { %v1204_v27 = vpop.f32.mrf.mxu0  ;;  %v1245_v45 = vpop.f32.mrf.mxu1 }
 0x18a   : > { %4001 = vst [vmem:[#allocation25_spill] sm:$0xff] %v3727_v40  ;;  %4002 = vst [vmem:[#allocation26_spill] sm:$0xff] %v3729_v24  ;;  %v1252_v28 = vmul.f32 0.5, %v1203_v25  ;;  %v1246_v44 = vadd.f32 %v1245_v45, %v998_v8  ;;  %v1253_v50 = vmul.f32 0.5, %v1244_v48  ;;  %v3745_v48 = vld [vmem:[#allocation11 + $0xa8] ss:$16 sps:$4 sm:$0xff]   ;;  %v1437_v40 = vunpack.c.h.bf16 %v3666_v59 }
 0x18b   : > { %v1205_v31 = vpop.f32.mrf.mxu0  ;;  %v1247_v34 = vpop.f32.mrf.mxu1 }
 0x18c   : > { %2955 = vtanh.f32 %v1252_v28  ;;  %v1206_v46 = vadd.f32 %v1205_v31, %v990_v53  ;;  %v1248_v49 = vadd.f32 %v1247_v34, %v994_v43  ;;  %v3738_v43 = vld [vmem:[#allocation11 + $0xc8] ss:$16 sps:$4 sm:$0xff]  }
 0x18d   : > { %v1207_v37 = vpop.f32.mrf.mxu0  ;;  %v1249_v47 = vpop.f32.mrf.mxu1  ;;  %2957 = vtanh.f32 %v1246_v44 }
 0x18e   : > { %v1254_v41 = vmul.f32 0.5, %v1206_v46  ;;  %v1250_v42 = vadd.f32 %v1249_v47, %v998_v8  ;;  %v1255_v56 = vmul.f32 0.5, %v1248_v49  ;;  %v3733_v37 = vld [vmem:[#allocation11 + $0xe8] ss:$16 sps:$4 sm:$0xff]   ;;  %v3748_v49 = vld [vmem:[#allocation11 + $0x8c] ss:$16 sps:$4 sm:$0xff]  }
 0x190   : > { %2959 = vtanh.f32 %v1254_v41  ;;  %v3735_v41 = vld [vmem:[#allocation11 + $0xcc] ss:$16 sps:$4 sm:$0xff]  }
 0x191   : > { %2961 = vtanh.f32 %v1250_v42  ;;  %v3742_v42 = vld [vmem:[#allocation11 + $0xac] ss:$16 sps:$4 sm:$0xff]  }
 0x192   : > { %2963 = vtanh.f32 %v1253_v50  ;;  %v3751_v50 = vld [vmem:[#allocation11 + $0x88] ss:$16 sps:$4 sm:$0xff]  }
 0x193   : > { %2965 = vtanh.f32 %v1255_v56  ;;  %v3754_v56 = vld [vmem:[#allocation11 + $0x6c] ss:$16 sps:$4 sm:$0xff]  }
 0x199   : > { %v2956_v57 = vpop.eup %2955 }
 0x19a   : > { %v1260_v60 = vadd.f32 1.0, %v2956_v57  ;;  %v2958_v61 = vpop.eup %2957  ;;  %v3757_v57 = vld [vmem:[#allocation11 + $0x68] ss:$16 sps:$4 sm:$0xff]  }
 0x19c   : > { %v1264_v62 = vmul.f32 0.5, %v1260_v60  ;;  %v3760_v60 = vld [vmem:[#allocation11 + $0x4c] ss:$16 sps:$4 sm:$0xff]  }
 0x19d   : > { %v2960_v53 = vpop.eup %2959 }
 0x19e   : > { %v1270_v1 = vmul.f32 %v2958_v61, %v1264_v62  ;;  %v1262_v2 = vadd.f32 1.0, %v2960_v53  ;;  %v2962_v38 = vpop.eup %2961  ;;  %v3763_v61 = vld [vmem:[#allocation11 + $0x48] ss:$16 sps:$4 sm:$0xff]   ;;  %v3766_v62 = vld [vmem:[#allocation11 + $0x2c] ss:$16 sps:$4 sm:$0xff]  }
 0x19f   : > { %v2964_v35 = vpop.eup %2963  ;;  %v3769_v53 = vld [vmem:[#allocation11 + $0x28] ss:$16 sps:$4 sm:$0xff]  }
 0x1a0   : > { %v1266_v25 = vmul.f32 0.5, %v1262_v2  ;;  %2967 = vtanh.f32 %v1270_v1  ;;  %v2966_v4 = vpop.eup %2965  ;;  %v1261_v8 = vadd.f32 1.0, %v2964_v35  ;;  %v3772_v1 = vld [vmem:[#allocation11 + $0xc] ss:$16 sps:$4 sm:$0xff]   ;;  %v3775_v2 = vld [vmem:[#allocation11 + $0x8] ss:$16 sps:$4 sm:$0xff]  }
 0x1a1   : > { %v1263_v27 = vadd.f32 1.0, %v2966_v4 }
 0x1a2   : > { %v1271_v39 = vmul.f32 %v2962_v38, %v1266_v25  ;;  %v1265_v28 = vmul.f32 0.5, %v1261_v8 }
 0x1a3   : > { %v1267_v44 = vmul.f32 0.5, %v1263_v27 }
 0x1a4   : > { %2969 = vtanh.f32 %v1271_v39 }
 0x1a7   : > { %v1637_v27 = vpop.f32.mrf.mxu1 }
 0x1ad   : > { %v2968_v45 = vpop.eup %2967 }
 0x1ae   : > { %v1274_v34 = vmul.f32 %v2968_v45, %v1265_v28  ;;  %v1639_v45 = vpop.f32.mrf.mxu1 }
 0x1b0   : > { %v1641_v28 = vpop.f32.mrf.mxu1 }
 0x1b1   : > { %v2970_v31 = vpop.eup %2969 }
 0x1b2   : > { %v1275_v46 = vmul.f32 %v2970_v31, %v1267_v44  ;;  %v1435_v44 = vunpack.c.h.bf16 %v3664_v58  ;;  %v1434_v31 = vunpack.c.l.bf16 %v3664_v58 }
 0x1b4   : > { %v1276_v47 = vpack.c.bf16 %v1275_v46, %v1274_v34  ;;  %v1690_v34 = vadd.f32 %v1639_v45, %v1435_v44  ;;  %v1643_v46 = vpop.f32.mrf.mxu1  ;;  %v1441_v44 = vunpack.c.h.bf16 %v3674_v6 }
 0x1b6   : > { %2650 = vmatmul.mubr.bf16.vlgmr.msra.gmra.mxu0 %v1276_v47  ;;  %v1689_v47 = vadd.f32 %v1637_v27, %v1434_v31  ;;  %v1698_v24 = vmul.f32 0.5, %v1690_v34 }
 0x1b7   : > { %1647 = vmatpush1.bf16.msra.mxu0 %v3733_v37  ;;  %1678 = vmatprep.mubr.bf16.mxu0 %v3975_v3 }
 0x1b8   : > { %1648 = vmatprep.subr.bf16.mxu0 %v3735_v41  ;;  %2971 = vtanh.f32 %v1698_v24  ;;  %v1440_v24 = vunpack.c.l.bf16 %v3674_v6 }
 0x1bb   : > { %1649 = vmatpush1.bf16.msra.mxu0 %v3738_v43 }
 0x1bc   : > { %1650 = vmatprep.subr.bf16.mxu0 %v3742_v42 }
 0x1bf   : > { %1651 = vmatpush1.bf16.msra.mxu0 %v3745_v48 }
 0x1c0   : > { %1652 = vmatprep.subr.bf16.mxu0 %v3748_v49 }
 0x1c3   : > { %1653 = vmatpush1.bf16.msra.mxu0 %v3751_v50 }
 0x1c4   : > { %1654 = vmatprep.subr.bf16.mxu0 %v3754_v56 }
 0x1c7   : > { %1655 = vmatpush1.bf16.msra.mxu0 %v3757_v57 }
 0x1c8   : > { %1656 = vmatprep.subr.bf16.mxu0 %v3760_v60 }
 0x1cb   : > { %1657 = vmatpush1.bf16.msra.mxu0 %v3763_v61 }
 0x1cc   : > { %1658 = vmatprep.subr.bf16.mxu0 %v3766_v62 }
 0x1cf   : > { %1659 = vmatpush1.bf16.msra.mxu0 %v3769_v53 }
 0x1d0   : > { %1660 = vmatprep.subr.bf16.mxu0 %v3772_v1 }
 0x1d3   : > { %1661 = vmatpush1.bf16.msra.mxu0 %v3775_v2 }
 0x1d4   : > { %1792 = vmatprep.subr.bf16.mxu0 %v3634_v36 }
 0x1d6   : > { %1679 = vmatmul.mubr.bf16.vlgmr.msra.gmra.mxu0 %v3612_v26  ;;  %v2543_v26 = vld [vmem:[%s3967_s8] ss:$0 sm:$0xff] }
 0x1d7   : > { %1793 = vmatpush1.bf16.msra.mxu0 %v3733_v37  ;;  %1824 = vmatprep.mubr.bf16.mxu0 %v3975_v3  ;;  %v1439_v3 = vunpack.c.h.bf16 %v3672_v5 }
 0x1d8   : > { %1794 = vmatprep.subr.bf16.mxu0 %v3735_v41 }
 0x1db   : > { %1795 = vmatpush1.bf16.msra.mxu0 %v3738_v43 }
 0x1dc   : > { %1796 = vmatprep.subr.bf16.mxu0 %v3742_v42 }
 0x1df   : > { %1797 = vmatpush1.bf16.msra.mxu0 %v3745_v48 }
 0x1e0   : > { %1798 = vmatprep.subr.bf16.mxu0 %v3748_v49 }
 0x1e3   : > { %1799 = vmatpush1.bf16.msra.mxu0 %v3751_v50 }
 0x1e4   : > { %1800 = vmatprep.subr.bf16.mxu0 %v3754_v56 }
 0x1e7   : > { %1801 = vmatpush1.bf16.msra.mxu0 %v3757_v57 }
 0x1e8   : > { %1802 = vmatprep.subr.bf16.mxu0 %v3760_v60 }
 0x1eb   : > { %1803 = vmatpush1.bf16.msra.mxu0 %v3763_v61 }
 0x1ec   : > { %1804 = vmatprep.subr.bf16.mxu0 %v3766_v62 }
 0x1ef   : > { %1805 = vmatpush1.bf16.msra.mxu0 %v3769_v53 }
 0x1f0   : > { %1806 = vmatprep.subr.bf16.mxu0 %v3772_v1 }
 0x1f3   : > { %1807 = vmatpush1.bf16.msra.mxu0 %v3775_v2 }
 0x1f4   : > { %1938 = vmatprep.subr.bf16.mxu0 %v3634_v36 }
 0x276   : > { %v1382_v25 = vpop.f32.mrf.mxu0 }
 0x277   : > { %v1383_v38 = vadd.f32 %v2543_v26, %v1382_v25  ;;  %v1438_v25 = vunpack.c.l.bf16 %v3672_v5 }
 0x278   : > { %v2651_v39 = vpop.f32.mrf.mxu0 }
 0x279   : > { %1389 = vst [vmem:[#allocation5 + $0x8] sm:$0xff] %v1383_v38  ;;  %v1694_v38 = vadd.f32 %v1643_v46, %v1439_v3  ;;  %v1697_v39 = vmul.f32 0.5, %v1689_v47  ;;  %v2972_v3 = vpop.eup %2971 }
 0x27a   : > { %v1385_v35 = vpop.f32.mrf.mxu0  ;;  %v1710_v47 = vadd.f32 1.0, %v2972_v3 }
 0x27b   : > { %v1386_v4 = vadd.f32 %v2543_v26, %v1385_v35  ;;  %v1693_v26 = vadd.f32 %v1641_v28, %v1438_v25  ;;  %v1701_v35 = vmul.f32 0.5, %v1694_v38  ;;  %2973 = vtanh.f32 %v1697_v39 }
 0x27c   : > { %v2652_v8 = vpop.f32.mrf.mxu0  ;;  %v1436_v28 = vunpack.c.l.bf16 %v3666_v59 }
 0x27d   : > { %1390 = vst [vmem:[#allocation5] sm:$0xff] %v1386_v4  ;;  %v1700_v4 = vmul.f32 0.5, %v1693_v26  ;;  %2975 = vtanh.f32 %v1701_v35  ;;  %v1716_v35 = vmul.f32 0.5, %v1710_v47 }
 0x27f   : > { %2977 = vtanh.f32 %v1700_v4 }
 0x288   : > { %v2974_v34 = vpop.eup %2973 }
 0x289   : > { %v1709_v39 = vadd.f32 1.0, %v2974_v34 }
 0x28a   : > { %v2976_v38 = vpop.eup %2975 }
 0x28b   : > { %v1713_v4 = vadd.f32 1.0, %v2976_v38  ;;  %v1715_v55 = vmul.f32 0.5, %v1709_v39 }
 0x28c   : > { %v2978_v26 = vpop.eup %2977 }
 0x28d   : > { %v1719_v54 = vmul.f32 0.5, %v1713_v4 }
 0x296   : > { %v1680_v8 = vpop.f32.mrf.mxu0 }
 0x297   : > { %v1691_v46 = vadd.f32 %v1680_v8, %v1436_v28 }
 0x298   : > { %v1682_v58 = vpop.f32.mrf.mxu0 }
 0x299   : > { %v1692_v45 = vadd.f32 %v1682_v58, %v1437_v40  ;;  %v1699_v40 = vmul.f32 0.5, %v1691_v46 }
 0x29a   : > { %v1684_v27 = vpop.f32.mrf.mxu0 }
 0x29b   : > { %2979 = vtanh.f32 %v1692_v45  ;;  %v1695_v25 = vadd.f32 %v1684_v27, %v1440_v24  ;;  %v1425_v45 = vld [vmem:[#allocation3 + $0x8] sm:$0xff] }
 0x29c   : > { %v1686_v31 = vpop.f32.mrf.mxu0  ;;  %v1723_v59 = vmul.f32 %v1716_v35, %v1425_v45  ;;  %v1740_v45 = vunpack.c.l.bf16 %v3680_v32 }
 0x29d   : > { %v1696_v5 = vadd.f32 %v1686_v31, %v1441_v44  ;;  %v1702_v58 = vmul.f32 0.5, %v1695_v25  ;;  %v1712_v44 = vadd.f32 1.0, %v2978_v26 }
 0x29f   : > { %2981 = vtanh.f32 %v1696_v5  ;;  %v1426_v5 = vld [vmem:[#allocation3] sm:$0xff]  ;;  %v1718_v8 = vmul.f32 0.5, %v1712_v44 }
 0x2a0   : > { %2983 = vtanh.f32 %v1699_v40  ;;  %v1724_v28 = vmul.f32 %v1719_v54, %v1426_v5  ;;  %v4003_v54 = vmov 0  }
 0x2a1   : > { %2985 = vtanh.f32 %v1702_v58 }
 0x2a8   : > { %v2980_v31 = vpop.eup %2979 }
 0x2a9   : > { %v1725_v6 = vmul.f32 %v2980_v31, %v1715_v55 }
 0x2ab   : > { %v3809_v3 = vadd.f32 %v1725_v6, %v1723_v59  ;;  %v1741_v6 = vunpack.c.h.bf16 %v3680_v32 }
 0x2ac   : > { %v2982_v27 = vpop.eup %2981 }
 0x2ad   : > { %v1726_v24 = vmul.f32 %v2982_v27, %v1718_v8  ;;  %2987 = vtanh.f32 %v3809_v3  ;;  %v2984_v46 = vpop.eup %2983  ;;  %v1743_v8 = vunpack.c.h.bf16 %v3682_v33 }
 0x2ae   : > { %v2986_v47 = vpop.eup %2985  ;;  %v1711_v25 = vadd.f32 1.0, %v2984_v46  ;;  %v1744_v46 = vunpack.c.l.bf16 %v3688_v51 }
 0x2af   : > { %v3812_v34 = vadd.f32 %v1726_v24, %v1724_v28  ;;  %v1714_v38 = vadd.f32 1.0, %v2986_v47 }
 0x2b0   : > { %v1717_v55 = vmul.f32 0.5, %v1711_v25 }
 0x2b1   : > { %2989 = vtanh.f32 %v3812_v34  ;;  %v1720_v26 = vmul.f32 0.5, %v1714_v38 }
 0x2ba   : > { %v2988_v39 = vpop.eup %2987 }
 0x2bb   : > { %v1731_v35 = vmul.f32 %v2988_v39, %v1717_v55  ;;  %v1745_v39 = vunpack.c.h.bf16 %v3688_v51 }
 0x2be   : > { %v2990_v40 = vpop.eup %2989 }
 0x2bf   : > { %v1732_v4 = vmul.f32 %v2990_v40, %v1720_v26 }
 0x2c1   : > { %v1748_v58 = vpack.c.bf16 %v1732_v4, %v1731_v35  ;;  %v1747_v35 = vunpack.c.h.bf16 %v3690_v52 }
 0x2c3   : > { %1782 = vmatmul.mubr.bf16.vlgmr.msra.gmra.mxu1 %v1748_v58  ;;  %1825 = vmatmul.mubr.bf16.vlgmr.msra.gmra.mxu0 %v1748_v58 }
 0x2c4   : > { %1896 = vmatpush1.bf16.msra.mxu1 %v3566_v9  ;;  %1939 = vmatpush1.bf16.msra.mxu0 %v3733_v37 }
 0x2c5   : > { %1897 = vmatprep.subr.bf16.mxu1 %v3568_v10  ;;  %1940 = vmatprep.subr.bf16.mxu0 %v3735_v41 }
 0x2c6   : > { %1927 = vmatprep.mubr.bf16.mxu1 %v4003_v54  ;;  %1970 = vmatprep.mubr.bf16.mxu0 %v4003_v54 }
 0x2c8   : > { %1898 = vmatpush1.bf16.msra.mxu1 %v3571_v11  ;;  %1941 = vmatpush1.bf16.msra.mxu0 %v3738_v43 }
 0x2c9   : > { %1899 = vmatprep.subr.bf16.mxu1 %v3573_v12  ;;  %1942 = vmatprep.subr.bf16.mxu0 %v3742_v42 }
 0x2cc   : > { %1900 = vmatpush1.bf16.msra.mxu1 %v3579_v13  ;;  %1943 = vmatpush1.bf16.msra.mxu0 %v3745_v48 }
 0x2cd   : > { %1901 = vmatprep.subr.bf16.mxu1 %v3582_v14  ;;  %1944 = vmatprep.subr.bf16.mxu0 %v3748_v49 }
 0x2d0   : > { %1902 = vmatpush1.bf16.msra.mxu1 %v3585_v15  ;;  %1945 = vmatpush1.bf16.msra.mxu0 %v3751_v50 }
 0x2d1   : > { %1903 = vmatprep.subr.bf16.mxu1 %v3588_v16  ;;  %1946 = vmatprep.subr.bf16.mxu0 %v3754_v56 }
 0x2d4   : > { %1904 = vmatpush1.bf16.msra.mxu1 %v3591_v17  ;;  %1947 = vmatpush1.bf16.msra.mxu0 %v3757_v57 }
 0x2d5   : > { %1905 = vmatprep.subr.bf16.mxu1 %v3594_v18  ;;  %1948 = vmatprep.subr.bf16.mxu0 %v3760_v60 }
 0x2d8   : > { %1906 = vmatpush1.bf16.msra.mxu1 %v3597_v19  ;;  %1949 = vmatpush1.bf16.msra.mxu0 %v3763_v61 }
 0x2d9   : > { %1907 = vmatprep.subr.bf16.mxu1 %v3600_v20  ;;  %1950 = vmatprep.subr.bf16.mxu0 %v3766_v62 }
 0x2dc   : > { %1908 = vmatpush1.bf16.msra.mxu1 %v3603_v21  ;;  %1951 = vmatpush1.bf16.msra.mxu0 %v3769_v53 }
 0x2dd   : > { %1909 = vmatprep.subr.bf16.mxu1 %v3606_v22  ;;  %1952 = vmatprep.subr.bf16.mxu0 %v3772_v1 }
 0x2e0   : > { %1910 = vmatpush1.bf16.msra.mxu1 %v3609_v23  ;;  %1953 = vmatpush1.bf16.msra.mxu0 %v3775_v2 }
 0x2e1   : > { %2041 = vmatprep.subr.bf16.mxu1 %v3561_v7  ;;  %2084 = vmatprep.subr.bf16.mxu0 %v3634_v36 }
 0x383   : > { %v1783_v44 = vpop.f32.mrf.mxu1  ;;  %v1826_v31 = vpop.f32.mrf.mxu0 }
 0x384   : > { %v1835_v59 = vadd.f32 %v1783_v44, %v1740_v45  ;;  %v1742_v45 = vunpack.c.l.bf16 %v3682_v33  ;;  %v1746_v44 = vunpack.c.l.bf16 %v3690_v52 }
 0x385   : > { %v1785_v5 = vpop.f32.mrf.mxu1  ;;  %v1828_v27 = vpop.f32.mrf.mxu0 }
 0x386   : > { %v1843_v28 = vmul.f32 0.5, %v1835_v59  ;;  %v1836_v24 = vadd.f32 %v1785_v5, %v1741_v6  ;;  %v1838_v47 = vadd.f32 %v1828_v27, %v1743_v8  ;;  %v1837_v59 = vadd.f32 %v1826_v31, %v1742_v45 }
 0x387   : > { %v1787_v25 = vpop.f32.mrf.mxu1  ;;  %v1830_v7 = vpop.f32.mrf.mxu0 }
 0x388   : > { %2991 = vtanh.f32 %v1843_v28  ;;  %v1844_v36 = vmul.f32 0.5, %v1836_v24  ;;  %v1839_v38 = vadd.f32 %v1787_v25, %v1744_v46  ;;  %v1841_v6 = vadd.f32 %v1830_v7, %v1746_v44 }
 0x389   : > { %v1789_v55 = vpop.f32.mrf.mxu1  ;;  %v1832_v26 = vpop.f32.mrf.mxu0  ;;  %v1845_v27 = vmul.f32 0.5, %v1837_v59 }
 0x38a   : > { %2993 = vtanh.f32 %v1844_v36  ;;  %v1846_v32 = vmul.f32 0.5, %v1839_v38  ;;  %v1840_v40 = vadd.f32 %v1789_v55, %v1745_v39  ;;  %v1842_v58 = vadd.f32 %v1832_v26, %v1747_v35 }
 0x38b   : > { %2995 = vtanh.f32 %v1838_v47  ;;  %v1848_v25 = vmul.f32 0.5, %v1841_v6 }
 0x38c   : > { %2997 = vtanh.f32 %v1846_v32  ;;  %v1847_v4 = vmul.f32 0.5, %v1840_v40 }
 0x38e   : > { %2999 = vtanh.f32 %v1847_v4 }
 0x38f   : > { %3001 = vtanh.f32 %v1842_v58 }
 0x390   : > { %3003 = vtanh.f32 %v1845_v27 }
 0x391   : > { %3005 = vtanh.f32 %v1848_v25 }
 0x395   : > { %v2992_v51 = vpop.eup %2991 }
 0x396   : > { %v1855_v5 = vadd.f32 1.0, %v2992_v51 }
 0x397   : > { %v2994_v8 = vpop.eup %2993 }
 0x398   : > { %v2996_v28 = vpop.eup %2995  ;;  %v1861_v24 = vmul.f32 0.5, %v1855_v5  ;;  %v1856_v46 = vadd.f32 1.0, %v2994_v8 }
 0x399   : > { %v2998_v47 = vpop.eup %2997 }
 0x39a   : > { %v1862_v36 = vmul.f32 0.5, %v1856_v46  ;;  %v1871_v38 = vmul.f32 %v2996_v28, %v1861_v24  ;;  %v1858_v39 = vadd.f32 1.0, %v2998_v47 }
 0x39b   : > { %v3000_v55 = vpop.eup %2999 }
 0x39c   : > { %v1869_v33 = vmul.f32 %v1862_v36, %v3809_v3  ;;  %v1864_v26 = vmul.f32 0.5, %v1858_v39  ;;  %v1859_v52 = vadd.f32 1.0, %v3000_v55  ;;  %v3002_v31 = vpop.eup %3001 }
 0x39d   : > { %v3004_v58 = vpop.eup %3003 }
 0x39e   : > { %v3858_v7 = vadd.f32 %v1871_v38, %v1869_v33  ;;  %v1865_v32 = vmul.f32 0.5, %v1859_v52  ;;  %v1872_v40 = vmul.f32 %v3002_v31, %v1864_v26  ;;  %v3006_v45 = vpop.eup %3005  ;;  %v1857_v44 = vadd.f32 1.0, %v3004_v58 }
 0x39f   : > { %v1860_v3 = vadd.f32 1.0, %v3006_v45 }
 0x3a0   : > { %v1870_v35 = vmul.f32 %v1865_v32, %v3812_v34  ;;  %3007 = vtanh.f32 %v3858_v7  ;;  %v1863_v6 = vmul.f32 0.5, %v1857_v44 }
 0x3a1   : > { %v1866_v51 = vmul.f32 0.5, %v1860_v3 }
 0x3a2   : > { %v3862_v4 = vadd.f32 %v1872_v40, %v1870_v35 }
 0x3a4   : > { %3009 = vtanh.f32 %v3862_v4 }
 0x3ad   : > { %v3008_v59 = vpop.eup %3007 }
 0x3ae   : > { %v1877_v8 = vmul.f32 %v3008_v59, %v1863_v6 }
 0x3b1   : > { %v3010_v5 = vpop.eup %3009 }
 0x3b2   : > { %v1878_v27 = vmul.f32 %v3010_v5, %v1866_v51 }
 0x3b4   : > { %v1894_v28 = vpack.c.bf16 %v1878_v27, %v1877_v8 }
 0x3b6   : > { %1928 = vmatmul.mubr.bf16.vlgmr.msra.gmra.mxu1 %v1894_v28  ;;  %1971 = vmatmul.mubr.bf16.vlgmr.msra.gmra.mxu0 %v1894_v28 }
 0x3b7   : > { %2042 = vmatpush1.bf16.msra.mxu1 %v3566_v9  ;;  %2085 = vmatpush1.bf16.msra.mxu0 %v3733_v37  ;;  %v1886_v9 = vunpack.c.l.bf16 %v3696_v63 }
 0x3b8   : > { %2043 = vmatprep.subr.bf16.mxu1 %v3568_v10  ;;  %2086 = vmatprep.subr.bf16.mxu0 %v3735_v41  ;;  %v1891_v41 = vunpack.c.h.bf16 %v3704_v29 }
 0x3b9   : > { %2073 = vmatprep.mubr.bf16.mxu1 %v4003_v54  ;;  %2116 = vmatprep.mubr.bf16.mxu0 %v4003_v54 }
 0x3bb   : > { %2044 = vmatpush1.bf16.msra.mxu1 %v3571_v11  ;;  %2087 = vmatpush1.bf16.msra.mxu0 %v3738_v43 }
 0x3bc   : > { %2045 = vmatprep.subr.bf16.mxu1 %v3573_v12  ;;  %2088 = vmatprep.subr.bf16.mxu0 %v3742_v42 }
 0x3bf   : > { %2046 = vmatpush1.bf16.msra.mxu1 %v3579_v13  ;;  %2089 = vmatpush1.bf16.msra.mxu0 %v3745_v48  ;;  %v1887_v13 = vunpack.c.h.bf16 %v3696_v63 }
 0x3c0   : > { %2047 = vmatprep.subr.bf16.mxu1 %v3582_v14  ;;  %2090 = vmatprep.subr.bf16.mxu0 %v3748_v49  ;;  %v1893_v49 = vunpack.c.h.bf16 %v3706_v30 }
 0x3c3   : > { %2048 = vmatpush1.bf16.msra.mxu1 %v3585_v15  ;;  %2091 = vmatpush1.bf16.msra.mxu0 %v3751_v50  ;;  %v1889_v15 = vunpack.c.h.bf16 %v3698_v0 }
 0x3c4   : > { %2049 = vmatprep.subr.bf16.mxu1 %v3588_v16  ;;  %2092 = vmatprep.subr.bf16.mxu0 %v3754_v56 }
 0x3c7   : > { %2050 = vmatpush1.bf16.msra.mxu1 %v3591_v17  ;;  %2093 = vmatpush1.bf16.msra.mxu0 %v3757_v57  ;;  %v1888_v57 = vunpack.c.l.bf16 %v3698_v0 }
 0x3c8   : > { %2051 = vmatprep.subr.bf16.mxu1 %v3594_v18  ;;  %2094 = vmatprep.subr.bf16.mxu0 %v3760_v60  ;;  %v1892_v60 = vunpack.c.l.bf16 %v3706_v30 }
 0x3cb   : > { %2052 = vmatpush1.bf16.msra.mxu1 %v3597_v19  ;;  %2095 = vmatpush1.bf16.msra.mxu0 %v3763_v61  ;;  %v1890_v19 = vunpack.c.l.bf16 %v3704_v29 }
 0x3cc   : > { %2053 = vmatprep.subr.bf16.mxu1 %v3600_v20  ;;  %2096 = vmatprep.subr.bf16.mxu0 %v3766_v62 }
 0x3cf   : > { %2054 = vmatpush1.bf16.msra.mxu1 %v3603_v21  ;;  %2097 = vmatpush1.bf16.msra.mxu0 %v3769_v53 }
 0x3d0   : > { %2055 = vmatprep.subr.bf16.mxu1 %v3606_v22  ;;  %2098 = vmatprep.subr.bf16.mxu0 %v3772_v1 }
 0x3d3   : > { %2056 = vmatpush1.bf16.msra.mxu1 %v3609_v23  ;;  %2099 = vmatpush1.bf16.msra.mxu0 %v3775_v2 }
 0x476   : > { %v1929_v10 = vpop.f32.mrf.mxu1  ;;  %v1972_v11 = vpop.f32.mrf.mxu0 }
 0x477   : > { %v1981_v12 = vadd.f32 %v1929_v10, %v1886_v9  ;;  %v1983_v61 = vadd.f32 %v1972_v11, %v1888_v57 }
 0x478   : > { %v1931_v14 = vpop.f32.mrf.mxu1  ;;  %v1974_v16 = vpop.f32.mrf.mxu0 }
 0x479   : > { %v1989_v17 = vmul.f32 0.5, %v1981_v12  ;;  %v1982_v18 = vadd.f32 %v1931_v14, %v1887_v13  ;;  %v1984_v20 = vadd.f32 %v1974_v16, %v1889_v15  ;;  %v1991_v2 = vmul.f32 0.5, %v1983_v61  ;;  %v4005_v13 = vld [vmem:[#allocation24_spill] sm:$0xff] }
 0x47a   : > { %v1933_v21 = vpop.f32.mrf.mxu1  ;;  %v1976_v22 = vpop.f32.mrf.mxu0  ;;  %v2035_v14 = vunpack.c.h.bf16 %v4005_v13 }
 0x47b   : > { %3011 = vtanh.f32 %v1989_v17  ;;  %v1990_v23 = vmul.f32 0.5, %v1982_v18  ;;  %v1985_v37 = vadd.f32 %v1933_v21, %v1890_v19  ;;  %v1987_v62 = vadd.f32 %v1976_v22, %v1892_v60  ;;  %v4006_v18 = vld [vmem:[#allocation25_spill] sm:$0xff] }
 0x47c   : > { %v1935_v43 = vpop.f32.mrf.mxu1  ;;  %v1978_v42 = vpop.f32.mrf.mxu0  ;;  %v2036_v19 = vunpack.c.l.bf16 %v4006_v18  ;;  %v2034_v60 = vunpack.c.l.bf16 %v4005_v13 }
 0x47d   : > { %3013 = vtanh.f32 %v1990_v23  ;;  %v1992_v63 = vmul.f32 0.5, %v1985_v37  ;;  %v1986_v48 = vadd.f32 %v1935_v43, %v1891_v41  ;;  %v1988_v56 = vadd.f32 %v1978_v42, %v1893_v49  ;;  %v4007_v49 = vld [vmem:[#allocation26_spill] sm:$0xff] }
 0x47e   : > { %3015 = vtanh.f32 %v1984_v20  ;;  %v1994_v46 = vmul.f32 0.5, %v1987_v62  ;;  %v2037_v41 = vunpack.c.h.bf16 %v4006_v18  ;;  %v2038_v62 = vunpack.c.l.bf16 %v4007_v49 }
 0x47f   : > { %3017 = vtanh.f32 %v1992_v63  ;;  %v1993_v50 = vmul.f32 0.5, %v1986_v48 }
 0x481   : > { %3019 = vtanh.f32 %v1993_v50  ;;  %v2039_v50 = vunpack.c.h.bf16 %v4007_v49 }
 0x482   : > { %3021 = vtanh.f32 %v1988_v56 }
 0x483   : > { %3023 = vtanh.f32 %v1991_v2 }
 0x484   : > { %3025 = vtanh.f32 %v1994_v46 }
 0x488   : > { %v3012_v29 = vpop.eup %3011 }
 0x489   : > { %v2001_v53 = vadd.f32 1.0, %v3012_v29 }
 0x48a   : > { %v3014_v1 = vpop.eup %3013 }
 0x48b   : > { %v3016_v34 = vpop.eup %3015  ;;  %v2007_v54 = vmul.f32 0.5, %v2001_v53  ;;  %v2002_v24 = vadd.f32 1.0, %v3014_v1 }
 0x48c   : > { %v3018_v25 = vpop.eup %3017 }
 0x48d   : > { %v2008_v47 = vmul.f32 0.5, %v2002_v24  ;;  %v2017_v36 = vmul.f32 %v3016_v34, %v2007_v54  ;;  %v2004_v38 = vadd.f32 1.0, %v3018_v25 }
 0x48e   : > { %v3020_v39 = vpop.eup %3019 }
 0x48f   : > { %v2015_v0 = vmul.f32 %v2008_v47, %v3858_v7  ;;  %v2010_v55 = vmul.f32 0.5, %v2004_v38  ;;  %v2005_v30 = vadd.f32 1.0, %v3020_v39  ;;  %v3022_v33 = vpop.eup %3021 }
 0x490   : > { %v3024_v35 = vpop.eup %3023 }
 0x491   : > { %v3906_v26 = vadd.f32 %v2017_v36, %v2015_v0  ;;  %v2011_v52 = vmul.f32 0.5, %v2005_v30  ;;  %v2018_v31 = vmul.f32 %v3022_v33, %v2010_v55  ;;  %v3026_v58 = vpop.eup %3025  ;;  %v2003_v45 = vadd.f32 1.0, %v3024_v35 }
 0x492   : > { %v2006_v7 = vadd.f32 1.0, %v3026_v58 }
 0x493   : > { %v2016_v32 = vmul.f32 %v2011_v52, %v3862_v4  ;;  %3027 = vtanh.f32 %v3906_v26  ;;  %v2009_v3 = vmul.f32 0.5, %v2003_v45  ;;  %v4004_v4 = vld [vmem:[#allocation23_spill] sm:$0xff] }
 0x494   : > { %v2012_v59 = vmul.f32 0.5, %v2006_v7  ;;  %v2032_v27 = vunpack.c.l.bf16 %v4004_v4  ;;  %v2033_v11 = vunpack.c.h.bf16 %v4004_v4 }
 0x495   : > { %v3910_v40 = vadd.f32 %v2018_v31, %v2016_v32 }
 0x497   : > { %3029 = vtanh.f32 %v3910_v40 }
 0x4a0   : > { %v3028_v44 = vpop.eup %3027 }
 0x4a1   : > { %v2023_v51 = vmul.f32 %v3028_v44, %v2009_v3 }
 0x4a4   : > { %v3030_v6 = vpop.eup %3029 }
 0x4a5   : > { %v2024_v5 = vmul.f32 %v3030_v6, %v2012_v59 }
 0x4a7   : > { %v2040_v8 = vpack.c.bf16 %v2024_v5, %v2023_v51 }
 0x4a9   : > { %2074 = vmatmul.mubr.bf16.vlgmr.msra.gmra.mxu1 %v2040_v8  ;;  %2117 = vmatmul.mubr.bf16.vlgmr.msra.gmra.mxu0 %v2040_v8 }
 0x569   : > { %v2075_v28 = vpop.f32.mrf.mxu1  ;;  %v2118_v9 = vpop.f32.mrf.mxu0 }
 0x56a   : > { %v2127_v10 = vadd.f32 %v2075_v28, %v2032_v27  ;;  %v2129_v61 = vadd.f32 %v2118_v9, %v2034_v60 }
 0x56b   : > { %v2077_v12 = vpop.f32.mrf.mxu1  ;;  %v2120_v15 = vpop.f32.mrf.mxu0 }
 0x56c   : > { %v2135_v16 = vmul.f32 0.5, %v2127_v10  ;;  %v2128_v17 = vadd.f32 %v2077_v12, %v2033_v11  ;;  %v2130_v20 = vadd.f32 %v2120_v15, %v2035_v14  ;;  %v2137_v29 = vmul.f32 0.5, %v2129_v61 }
 0x56d   : > { %v2079_v21 = vpop.f32.mrf.mxu1  ;;  %v2122_v22 = vpop.f32.mrf.mxu0 }
 0x56e   : > { %3031 = vtanh.f32 %v2135_v16  ;;  %v2136_v23 = vmul.f32 0.5, %v2128_v17  ;;  %v2131_v37 = vadd.f32 %v2079_v21, %v2036_v19  ;;  %v2133_v53 = vadd.f32 %v2122_v22, %v2038_v62 }
 0x56f   : > { %v2081_v43 = vpop.f32.mrf.mxu1  ;;  %v2124_v42 = vpop.f32.mrf.mxu0 }
 0x570   : > { %3033 = vtanh.f32 %v2136_v23  ;;  %v2138_v63 = vmul.f32 0.5, %v2131_v37  ;;  %v2132_v48 = vadd.f32 %v2081_v43, %v2037_v41  ;;  %v2134_v57 = vadd.f32 %v2124_v42, %v2039_v50 }
 0x571   : > { %3035 = vtanh.f32 %v2130_v20  ;;  %v2140_v25 = vmul.f32 0.5, %v2133_v53 }
 0x572   : > { %3037 = vtanh.f32 %v2138_v63  ;;  %v2139_v56 = vmul.f32 0.5, %v2132_v48 }
 0x574   : > { %3039 = vtanh.f32 %v2139_v56 }
 0x575   : > { %3041 = vtanh.f32 %v2134_v57 }
 0x576   : > { %3043 = vtanh.f32 %v2137_v29 }
 0x577   : > { %3045 = vtanh.f32 %v2140_v25 }
 0x57b   : > { %v3032_v1 = vpop.eup %3031 }
 0x57c   : > { %v2147_v2 = vadd.f32 1.0, %v3032_v1 }
 0x57d   : > { %v3034_v34 = vpop.eup %3033 }
 0x57e   : > { %v3036_v54 = vpop.eup %3035  ;;  %v2153_v24 = vmul.f32 0.5, %v2147_v2  ;;  %v2148_v46 = vadd.f32 1.0, %v3034_v34 }
 0x57f   : > { %v3038_v47 = vpop.eup %3037 }
 0x580   : > { %v2154_v36 = vmul.f32 0.5, %v2148_v46  ;;  %v2163_v38 = vmul.f32 %v3036_v54, %v2153_v24  ;;  %v2150_v39 = vadd.f32 1.0, %v3038_v47 }
 0x581   : > { %v3040_v0 = vpop.eup %3039 }
 0x582   : > { %v2161_v55 = vmul.f32 %v2154_v36, %v3906_v26  ;;  %v2156_v30 = vmul.f32 0.5, %v2150_v39  ;;  %v2151_v33 = vadd.f32 1.0, %v3040_v0  ;;  %v3042_v52 = vpop.eup %3041 }
 0x583   : > { %v3044_v7 = vpop.eup %3043 }
 0x584   : > { %v2165_v31 = vadd.f32 %v2163_v38, %v2161_v55  ;;  %v2157_v32 = vmul.f32 0.5, %v2151_v33  ;;  %v2164_v35 = vmul.f32 %v3042_v52, %v2156_v30  ;;  %v2149_v44 = vadd.f32 1.0, %v3044_v7  ;;  %v3046_v3 = vpop.eup %3045 }
 0x585   : > { %v2152_v6 = vadd.f32 1.0, %v3046_v3 }
 0x586   : > { %3047 = vtanh.f32 %v2165_v31  ;;  %2173 = vst [vmem:[#allocation3 + $0x8] sm:$0xff] %v2165_v31  ;;  %v2162_v58 = vmul.f32 %v2157_v32, %v3910_v40  ;;  %v2155_v59 = vmul.f32 0.5, %v2149_v44 }
 0x587   : > { %v2158_v5 = vmul.f32 0.5, %v2152_v6 }
 0x588   : > { %v2166_v45 = vadd.f32 %v2164_v35, %v2162_v58 }
 0x58a   : > { %3049 = vtanh.f32 %v2166_v45  ;;  %2174 = vst [vmem:[#allocation3] sm:$0xff] %v2166_v45 }
 0x593   : > { %v3048_v26 = vpop.eup %3047 }
 0x594   : > { %v2169_v51 = vmul.f32 %v3048_v26, %v2155_v59 }
 0x596   : > { %2171 = vst [vmem:[#allocation2] sm:$0xff] %v2169_v51  ;;  %2178 = sbr.rel (%p2584_p12) target bundleno = 1980 (0x7bc), region = 88 }
 0x597   : > { %v3050_v8 = vpop.eup %3049 }
 0x598   : > { %v2170_v4 = vmul.f32 %v3050_v8, %v2158_v5 }
 0x59a   : > { %2172 = vst [vmem:[#allocation2 + $0x8] sm:$0xff] %v2170_v4 }
 0x59b   : > { %v3051_v27 = vld [vmem:[#allocation14 + $0x38] sm:$0xff]   ;;  %v3331_v40 = vmov 0.0   ;;  %v3052_v28 = vld [vmem:[#allocation14 + $0x30] sm:$0xff]   ;;  %vm3332_vm1 = vmmov 0   ;;  %v3053_v9 = vld [vmem:[#allocation14 + $0x28] sm:$0xff]   ;;  %v2179_v15 = vpack.c.bf16 %v2170_v4, %v2169_v51 }
 0x59c   : > { %2653 = vmatprep.subr.bf16.mxu0 %v3331_v40  ;;  %2669 = vmatprep.mubr.msk.bf16.mxu0 %vm3332_vm1, %v3331_v40  ;;  %v3054_v10 = vld [vmem:[#allocation14 + $0x20] sm:$0xff]   ;;  %v3055_v11 = vld [vmem:[#allocation14 + $0x18] sm:$0xff]   ;;  %v3056_v12 = vld [vmem:[#allocation14 + $0x10] sm:$0xff]  }
 0x59d   : > { %2654 = vmatpush3.bf16.msra.mxu0 %v3051_v27  ;;  %v3057_v13 = vld [vmem:[#allocation14 + $0x8] sm:$0xff]   ;;  %v3058_v14 = vld [vmem:[#allocation14] sm:$0xff]   ;;  %v2196_v16 = vld [vmem:[#allocation5 + $0x8] sm:$0xff] }
 0x59e   : > { %2655 = vmatprep.subr.bf16.mxu0 %v3331_v40  ;;  %v2197_v20 = vld [vmem:[#allocation5] sm:$0xff] }
 0x5a1   : > { %2656 = vmatpush3.bf16.msra.mxu0 %v3052_v28 }
 0x5a2   : > { %2657 = vmatprep.subr.bf16.mxu0 %v3331_v40 }
 0x5a5   : > { %2658 = vmatpush3.bf16.msra.mxu0 %v3053_v9 }
 0x5a6   : > { %2659 = vmatprep.subr.bf16.mxu0 %v3331_v40 }
 0x5a9   : > { %2660 = vmatpush3.bf16.msra.mxu0 %v3054_v10 }
 0x5aa   : > { %2661 = vmatprep.subr.bf16.mxu0 %v3331_v40 }
 0x5ad   : > { %2662 = vmatpush3.bf16.msra.mxu0 %v3055_v11 }
 0x5ae   : > { %2663 = vmatprep.subr.bf16.mxu0 %v3331_v40 }
 0x5b1   : > { %2664 = vmatpush3.bf16.msra.mxu0 %v3056_v12 }
 0x5b2   : > { %2665 = vmatprep.subr.bf16.mxu0 %v3331_v40 }
 0x5b5   : > { %2666 = vmatpush3.bf16.msra.mxu0 %v3057_v13 }
 0x5b6   : > { %2667 = vmatprep.subr.bf16.mxu0 %v3331_v40 }
 0x5b9   : > { %2668 = vmatpush3.bf16.msra.mxu0 %v3058_v14 }
 0x5bc   : > { %2670 = vmatmul.mubr.bf16.vlgmr.msra.gmra.mxu0 %v2179_v15 }
 0x67c   : > { %v2280_v17 = vpop.f32.mrf.mxu0 }
 0x67d   : > { %v2281_v18 = vadd.f32 %v2280_v17, %v2196_v16 }
 0x67e   : > { %v2671_v19 = vpop.f32.mrf.mxu0 }
 0x67f   : > { %2287 = vmax.xlane.f32.xlu0 %v2281_v18 }
 0x680   : > { %v2283_v21 = vpop.f32.mrf.mxu0 }
 0x681   : > { %v2284_v22 = vadd.f32 %v2283_v21, %v2197_v20 }
 0x682   : > { %v2672_v23 = vpop.f32.mrf.mxu0 }
 0x683   : > { %2289 = vmax.xlane.f32.xlu0 %v2284_v22 }
 0x708   : > { %v2288_v37 = vpop.xlane.xlu0 %2287 }
 0x709   : > { %v2291_v41 = vsub.f32 %v2281_v18, %v2288_v37 }
 0x70b   : > { %v2293_v43 = vmul.f32 1.442695, %v2291_v41 }
 0x70c   : > { %v2290_v42 = vpop.xlane.xlu0 %2289 }
 0x70d   : > { %v2292_v63 = vsub.f32 %v2284_v22, %v2290_v42  ;;  %3059 = vpow2.f32 %v2293_v43 }
 0x70f   : > { %v2295_v48 = vmul.f32 1.442695, %v2292_v63 }
 0x711   : > { %3061 = vpow2.f32 %v2295_v48 }
 0x71a   : > { %v3060_v49 = vpop.eup %3059 }
 0x71b   : > { %2297 = vadd.xlane.f32.xlu1 %v3060_v49 }
 0x71e   : > { %v3062_v50 = vpop.eup %3061 }
 0x71f   : > { %2299 = vadd.xlane.f32.xlu1 %v3062_v50 }
 0x7a4   : > { %v2298_v56 = vpop.xlane.xlu1 %2297 }
 0x7a5   : > { %3063 = vlog2.f32 %v2298_v56 }
 0x7a8   : > { %v2300_v57 = vpop.xlane.xlu1 %2299 }
 0x7a9   : > { %3065 = vlog2.f32 %v2300_v57 }
 0x7b2   : > { %v3064_v60 = vpop.eup %3063 }
 0x7b3   : > { %v2302_v61 = vmul.f32 0.6931472, %v3064_v60 }
 0x7b5   : > { %v2305_v62 = vsub.f32 %v2291_v41, %v2302_v61 }
 0x7b6   : > { %v3066_v29 = vpop.eup %3065 }
 0x7b7   : > { %2307 = vst [vmem:[#allocation17] sm:$0xff] %v2305_v62  ;;  %v2304_v53 = vmul.f32 0.6931472, %v3066_v29 }
 0x7b9   : > { %v2306_v1 = vsub.f32 %v2292_v63, %v2304_v53 }
 0x7bb   : > { %2308 = vst [vmem:[#allocation17 + $0x8] sm:$0xff] %v2306_v1 }
 0x7bc PF: > { %s4008_s12 = sadd.s32 4294967295, %s3315_s14   ;;  %s3333_s30 = smov [#allocation17]  }
 0x7bd   : > { %p3926_p13 = scmp.eq.s32.totalorder %s4008_s12, 1  ;;  %s2318_s24 = sshll.u32 %s3333_s30, 4  ;;  %s2319_s24 = int_to_ptr.vmem [resolvable:$true] %s2318_s24 }
 0x7be   : > { %s3225_s25 = scalar_lea.vmem %s2319_s24, 256  ;;  %p3232_p3 = scmp.lt.s32.totalorder %s2319_s24, %s2319_s24 }
 0x7bf   : > { %p3226_p5 = scmp.ne.s32.totalorder %s2319_s24, %s3225_s25  ;;  %p3233_p4 = scmp.lt.s32.totalorder %s3225_s25, %s3225_s25 }
 0x7c1   : > { %p3227_p0 = pnand %p3226_p5, %p3926_p13  ;;  %p3234_p6 = por %p3233_p4, %p3232_p3 }
 0x7c3   : > { %p3228_p2 = pneg %p3227_p0 }
 0x7c5   : > { %p3235_p7 = pnand %p3234_p6, %p3228_p2 }
 0x7c7   : > { %3238 = shalt.err (!%p3235_p7)
}
 0x7c8   : > { %s3334_s15 = smov 128   ;;  %s3335_s29 = smov 8  }
 0x7c9   : > { %2696 = dma.vmem_to_hbm [thread:$0]  (%p3926_p13), %s2319_s24, 256, %s3968_s9, [#allocation8], %s3334_s15, %s3334_s15, %s3335_s29  }
 0x7ca   : > { %3290 = dma.done.wait (%p3926_p13), [#allocation8], 256  }
 0x7cb   : > { %3292 = vsyncadd (%p3926_p13), [#allocation8], 4294967040 }
 0x7cc PF: > { %s26_s14 = sadd.s32 1, %s3315_s14   ;;  %s4010_s30 = smov %s3299_s10 }
 0x7cd   : > { %p23_p8 = scmp.ge.s32.totalorder %s26_s14, 4   ;;  %s4011_s10 = smov %s3303_s11 }
 0x7ce   : > { %s4012_s11 = smov %s3509_s18  ;;  %s4013_s12 = smov %s3311_s13 }
 0x7cf   : > { %s4014_s13 = smov %s4016_s20  ;;  %25 = sbr.rel (!%p23_p8) target bundleno = 12 (0xc), region = 127 }
 0x7d4   :  { %2334 = vsyncpa [#allocation7], 1 }
 0x7d5   :  { %2336 = vsyncpa [#allocation7 + $0x1], 1 }
 0x7d6   :  { %2337 = vsyncpa [#allocation10], 1 }
 0x7d7   :  { %2338 = vsyncpa [#allocation13], 1 }
 0x7d8   :  { %2339 = vsyncpa [#allocation16], 1 }
 0x7d9   :  { %2340 = vsyncpa [#allocation8], 1 }
 0x7da   :  { %2342 = vsyncpa [#allocation8 + $0x1], 1 }

// kernel: tpu_custom_call.1
= control target key start
LH: loop header
LB: loop body
LE: loop exit
PB: predicated region body
PF: predicated region fallthrough
CT: control target
= control target key end

     0   :  { %s3959_s0 = inlined_call_operand.hbm [shape: bf16[8,16,128], index: 0, kind: input, shape index: {}]   ;;  %s3960_s1 = inlined_call_operand.hbm [shape: bf16[128,512], index: 1, kind: input, shape index: {}]   ;;  %s3961_s2 = inlined_call_operand.hbm [shape: bf16[128,512], index: 2, kind: input, shape index: {}]   ;;  %s3962_s3 = inlined_call_operand.vmem [shape: f32[1,512], index: 3, kind: input, shape index: {}]   ;;  %s3963_s4 = inlined_call_operand.hbm [shape: bf16[128,512], index: 4, kind: input, shape index: {}]   ;;  %s3964_s5 = inlined_call_operand.vmem [shape: f32[1,512], index: 5, kind: input, shape index: {}]   ;;  %s3965_s6 = inlined_call_operand.hbm [shape: bf16[128,128], index: 6, kind: input, shape index: {}]   ;;  %s3966_s7 = inlined_call_operand.hbm [shape: bf16[128,128], index: 7, kind: input, shape index: {}]   ;;  %s3967_s8 = inlined_call_operand.vmem [shape: f32[1,128], index: 8, kind: input, shape index: {}]   ;;  %s3968_s9 = inlined_call_operand.hbm [shape: f32[16,128], index: 9, kind: output, shape index: {}]  }
   0x1   :  { %3981 = sst [smem:[#allocation27_spill]] %s3960_s1 }
   0x2   :  { %3982 = sst [smem:[#allocation28_spill]] %s3961_s2 }
   0x3   :  { %3983 = sst [smem:[#allocation29_spill]] %s3963_s4 }
   0x4   :  { %14 = vsyncpa [#allocation7], 0 }
   0x5   :  { %16 = vsyncpa [#allocation7 + $0x1], 0 }
   0x6   :  { %17 = vsyncpa [#allocation10], 0 }
   0x7   :  { %18 = vsyncpa [#allocation13], 0 }
   0x8   :  { %19 = vsyncpa [#allocation16], 0 }
   0x9   :  { %20 = vsyncpa [#allocation8], 0  ;;  %s3386_s30 = smov 0   ;;  %s3388_s10 = smov 0  }
   0xa   :  { %s3390_s11 = smov 0   ;;  %s3392_s12 = smov 0  }
   0xb   :  { %s3394_s13 = smov 0   ;;  %s3396_s14 = smov 0  }
   0xc LB: > { %s3972_s15 = sadd.s32 4294967295, %s3315_s14   ;;  %p2437_p0 = scmp.ge.s32.totalorder %s3315_s14, 1  ;;  %s3315_s14 = sphi %s3396_s14, %s26_s14   ;;  %s3311_s13 = sphi %s3394_s13, %s4014_s13   ;;  %s3307_s12 = sphi %s3392_s12, %s4013_s12   ;;  %s3303_s11 = sphi %s3390_s11, %s4012_s11   ;;  %s3299_s10 = sphi %s3388_s10, %s4011_s10   ;;  %s3295_s30 = sphi %s3386_s30, %s4010_s30  }
   0xd   : > { %p3420_p1 = scmp.eq.s32.totalorder %s3972_s15, 0  ;;  %p265_p2 = scmp.lt.s32.totalorder %s3315_s14, 3 }
   0xe   : > { %s3317_s18 = smov [#allocation9]   ;;  %s3318_s21 = smov [#allocation12]  }
   0xf   : > { %s3984_s16 = scalar_select %p3420_p1, 1, 0 }
  0x10   : > { %p3425_p3 = pnand %p2437_p0, %p265_p2  ;;  %s277_s19 = sshll.u32 %s3317_s18, 4  ;;  %s278_s19 = int_to_ptr.vmem [resolvable:$true] %s277_s19 }
  0x11   : > { %s306_s22 = sshll.u32 %s3318_s21, 4  ;;  %s3319_s23 = smov [#allocation11]   ;;  %s307_s22 = int_to_ptr.vmem [resolvable:$true] %s306_s22 }
  0x12   : > { %s3985_s17 = scalar_select %p3425_p3, 1, 0 }
  0x13   : > { %p2699_p4 = pneg %p3425_p3  ;;  %s290_s24 = sshll.u32 %s3319_s23, 4  ;;  %s291_s24 = int_to_ptr.vmem [resolvable:$true] %s290_s24 }
  0x14   : > { %s3078_s26 = scalar_lea.vmem %s278_s19, 4096  ;;  %p3086_p10 = scmp.lt.s32.totalorder %s278_s19, %s278_s19 }
  0x15   : > { %p3433_p5 = pnand %p2699_p4, %p3420_p1  ;;  %p3079_p7 = scmp.ne.s32.totalorder %s278_s19, %s3078_s26 }
  0x16   : > { %p3087_p11 = scmp.lt.s32.totalorder %s3078_s26, %s3078_s26 }
  0x17   : > { %p3439_p6 = pneg %p3433_p5 }
  0x18   : > { %p3088_p12 = por %p3087_p11, %p3086_p10 }
  0x19   : > { %p3081_p8 = pnand %p3079_p7, %p3439_p6 }
  0x1b   : > { %p3082_p9 = pneg %p3081_p8 }
  0x1d   : > { %p3089_p13 = pnand %p3088_p12, %p3082_p9 }
  0x1f   : > { %3092 = shalt.err (!%p3089_p13)
}
  0x20   : > { %s3320_s27 = smov 256   ;;  %s3321_s28 = smov 16  }
  0x21   : > { %s3988_s1 = sld [smem:[#allocation27_spill]]  ;;  %s3104_s21 = scalar_lea.vmem %s307_s22, 4096 }
  0x22   : > { %p3105_p0 = scmp.ne.s32.totalorder %s307_s22, %s3104_s21  ;;  %p3112_p7 = scmp.lt.s32.totalorder %s307_s22, %s307_s22 }
  0x23   : > { %p3113_p8 = scmp.lt.s32.totalorder %s3104_s21, %s3104_s21 }
  0x24   : > { %p3107_p2 = pnand %p3105_p0, %p3439_p6 }
  0x25   : > { %p3114_p3 = por %p3113_p8, %p3112_p7 }
  0x26   : > { %p3108_p4 = pneg %p3107_p2 }
  0x27   : > { %2702 = dma.hbm_to_vmem [thread:$0]  (!%p3433_p5), %s3988_s1, 4096, %s278_s19, [#allocation10], %s3320_s27, %s3320_s27, %s3321_s28  }
  0x28   : > { %p3115_p10 = pnand %p3114_p3, %p3108_p4 }
  0x2a   : > { %3118 = shalt.err (!%p3115_p10)
}
  0x2b   : > { %s3989_s4 = sld [smem:[#allocation29_spill]]  ;;  %s3130_s29 = scalar_lea.vmem %s291_s24, 4096 }
  0x2c   : > { %p3131_p9 = scmp.ne.s32.totalorder %s291_s24, %s3130_s29  ;;  %p3138_p13 = scmp.lt.s32.totalorder %s291_s24, %s291_s24 }
  0x2d   : > { %p3139_p0 = scmp.lt.s32.totalorder %s3130_s29, %s3130_s29 }
  0x2e   : > { %p3133_p11 = pnand %p3131_p9, %p3439_p6 }
  0x2f   : > { %p3140_p2 = por %p3139_p0, %p3138_p13 }
  0x30   : > { %p3134_p12 = pneg %p3133_p11 }
  0x31   : > { %2708 = dma.hbm_to_vmem [thread:$0]  (!%p3433_p5), %s3989_s4, 4096, %s307_s22, [#allocation13], %s3320_s27, %s3320_s27, %s3321_s28  }
  0x32   : > { %p3141_p1 = pnand %p3140_p2, %p3134_p12 }
  0x34   : > { %3144 = shalt.err (!%p3141_p1)
}
  0x35   : > { %s3990_s2 = sld [smem:[#allocation28_spill]]  ;;  %s3322_s21 = smov [#allocation14]  }
  0x36   : > { %s322_s22 = sshll.u32 %s3322_s21, 4  ;;  %s323_s22 = int_to_ptr.vmem [resolvable:$true] %s322_s22 }
  0x37   : > { %s3156_s23 = scalar_lea.vmem %s323_s22, 1024  ;;  %p3164_p8 = scmp.lt.s32.totalorder %s323_s22, %s323_s22 }
  0x38   : > { %p3157_p3 = scmp.ne.s32.totalorder %s323_s22, %s3156_s23  ;;  %p3165_p10 = scmp.lt.s32.totalorder %s3156_s23, %s3156_s23 }
  0x3a   : > { %p3159_p4 = pnand %p3157_p3, %p3439_p6  ;;  %p3166_p9 = por %p3165_p10, %p3164_p8 }
  0x3b   : > { %2705 = dma.hbm_to_vmem [thread:$0]  (!%p3433_p5), %s3990_s2, 4096, %s291_s24, [#allocation10], %s3320_s27, %s3320_s27, %s3321_s28  }
  0x3c   : > { %p3160_p7 = pneg %p3159_p4 }
  0x3e   : > { %p3167_p11 = pnand %p3166_p9, %p3160_p7 }
  0x40   : > { %3170 = shalt.err (!%p3167_p11)
}
  0x41   : > { %s3973_s26 = smov 64   ;;  %s3974_s29 = smov 4  }
  0x42   : > { %2711 = dma.hbm_to_vmem [thread:$0]  (!%p3433_p5), %s3965_s6, 1024, %s323_s22, [#allocation13], %s3973_s26, %s3973_s26, %s3974_s29  }
  0x43   : > { %s3325_s28 = smov [#allocation15]  }
  0x44   : > { %s335_s19 = sshll.u32 %s3325_s28, 4  ;;  %s336_s19 = int_to_ptr.vmem [resolvable:$true] %s335_s19 }
  0x45   : > { %s3182_s18 = scalar_lea.vmem %s336_s19, 1024  ;;  %p3190_p0 = scmp.lt.s32.totalorder %s336_s19, %s336_s19 }
  0x46   : > { %p3183_p1 = scmp.ne.s32.totalorder %s336_s19, %s3182_s18  ;;  %p3191_p2 = scmp.lt.s32.totalorder %s3182_s18, %s3182_s18 }
  0x48   : > { %p3185_p12 = pnand %p3183_p1, %p3439_p6  ;;  %p3192_p3 = por %p3191_p2, %p3190_p0 }
  0x4a   : > { %p3186_p13 = pneg %p3185_p12 }
  0x4c   : > { %p3193_p4 = pnand %p3192_p3, %p3186_p13 }
  0x4e   : > { %3196 = shalt.err (!%p3193_p4)
}
  0x4f   : > { %2714 = dma.hbm_to_vmem [thread:$0]  (!%p3433_p5), %s3966_s7, 1024, %s336_s19, [#allocation16], %s3973_s26, %s3973_s26, %s3974_s29  }
  0x50   : > { %s35_s20 = sadd.s32 1, %s3311_s13  ;;  %s47_s25 = sadd.s32 1, %s3303_s11 }
  0x51   : > { %p36_p6 = scmp.ge.s32.totalorder %s35_s20, 2  ;;  %p54_p7 = scmp.ne.s32.totalorder %s3303_s11, %s3299_s10 }
  0x52   : > { %p55_p8 = scmp.eq.s32.totalorder %s3315_s14, 0  ;;  %p60_p9 = scmp.ne.s32.totalorder %s3299_s10, %s3295_s30 }
  0x53   : > { %s4016_s20 = smov (%p36_p6, %s35_s20), 0  ;;  %p2724_p11 = scmp.lt.s32.totalorder %s3315_s14, 2 }
  0x54   : > { %p3491_p10 = por %p55_p8, %p54_p7  ;;  %s42_s24 = ssub.s32 %s3311_s13, %s4016_s20 }
  0x55   : > { %p45_p1 = scmp.eq.s32.totalorder %s42_s24, 0  ;;  %p3992_p12 = scmp.ne.s32.totalorder %s3984_s16, 0 }
  0x56   : > { %s352_s28 = sand.u32 1, %s3303_s11   ;;  %s2598_s19 = sshll.u32 %s3311_s13, 9 }
  0x57   : > { %p3502_p13 = por %p3992_p12, %p60_p9  ;;  %s2444_s21 = sshll.u32 %s352_s28, 5 }
  0x58   : > { %s3509_s18 = scalar_select %p45_p1, %s3303_s11, %s47_s25  }
  0x59   : > { %s365_s26 = scalar_lea.hbm %s3959_s0, %s2598_s19  ;;  %s356_s29 = scalar_lea.vmem [#allocation6], %s2444_s21 }
  0x5a   : > { %s366_s1 = sshll.u32 %s356_s29, 4  ;;  %p3516_p5 = pnand %p2724_p11, %p3491_p10  ;;  %s367_s1 = int_to_ptr.vmem [resolvable:$true] %s366_s1 }
  0x5b   : > { %s353_s24 = scalar_lea.sflag [#allocation7], %s352_s28  ;;  %s3210_s2 = scalar_lea.vmem %s367_s1, 512 }
  0x5c   : > { %p3199_p0 = pneg %p3516_p5  ;;  %p3211_p2 = scmp.ne.s32.totalorder %s367_s1, %s3210_s2 }
  0x5d   : > { %s3326_s25 = smov [#allocation6]  }
  0x5e   : > { %p3213_p3 = pnand %p3211_p2, %p3199_p0  ;;  %s3215_s4 = sshll.u32 %s3326_s25, 4  ;;  %s3216_s4 = int_to_ptr.vmem [resolvable:$false] %s3215_s4 }
  0x5f   : > { %s3217_s15 = scalar_lea.vmem %s3216_s4, 1024  ;;  %p3218_p6 = scmp.lt.s32.totalorder %s367_s1, %s3216_s4 }
  0x60   : > { %p3214_p4 = pneg %p3213_p3  ;;  %p3219_p7 = scmp.lt.s32.totalorder %s3217_s15, %s3210_s2 }
  0x62   : > { %p3220_p8 = por %p3219_p7, %p3218_p6 }
  0x64   : > { %p3221_p10 = pnand %p3220_p8, %p3214_p4 }
  0x66   : > { %3224 = shalt.err (!%p3221_p10)
}
  0x67   : > { %s3995_s29 = smov 4   ;;  %s3996_s23 = smov 64  }
  0x68   : > { %2718 = dma.hbm_to_vmem [thread:$0]  (!%p3516_p5), %s365_s26, 512, %s367_s1, %s353_s24, %s3996_s23, %s3996_s23, %s3995_s29  }
  0x69   : > { %p3997_p9 = scmp.ne.s32.totalorder %s3985_s17, 0 }
  0x6b   : > { %378 = sbr.rel (%p3997_p9) target bundleno = 1996 (0x7cc), region = 56 }
  0x70   : > { %s380_s28 = sand.u32 1, %s3299_s10  }
  0x71   : > { %s2449_s19 = sshll.u32 %s380_s28, 5  ;;  %s381_s21 = scalar_lea.sflag [#allocation7], %s380_s28 }
  0x72   : > { %s3530_s22 = scalar_lea.vmem [#allocation6], %s2449_s19 }
  0x73   : > { %3274 = dma.done.wait (%p3502_p13), %s381_s21, 512  }
  0x74   : > { %3276 = vsyncadd (%p3502_p13), %s381_s21, 4294966784  ;;  %p3998_p11 = scmp.ne.s32.totalorder %s3984_s16, 0 }
  0x76   : > { %3278 = dma.done.wait (%p3998_p11), [#allocation10], 8192  }
  0x77   : > { %3280 = vsyncadd (%p3998_p11), [#allocation10], 4294959104 }
  0x78   : > { %3282 = dma.done.wait (%p3998_p11), [#allocation13], 5120  }
  0x79   : > { %3284 = vsyncadd (%p3998_p11), [#allocation13], 4294962176 }
  0x7a   : > { %3286 = dma.done.wait (%p3998_p11), [#allocation16], 1024  }
  0x7b   : > { %3288 = vsyncadd (%p3998_p11), [#allocation16], 4294966272  ;;  %p2455_p1 = scmp.ne.s32.totalorder %s3307_s12, 0 }
  0x7d   : > { %441 = sbr.rel (%p2455_p1) target bundleno = 133 (0x85), region = 84 }
  0x82   : > { %v3327_v0 = vmov 0.0  }
  0x83   : > { %442 = vst [vmem:[#allocation2] sm:$0xff] %v3327_v0  ;;  %443 = vst [vmem:[#allocation2 + $0x8] sm:$0xff] %v3327_v0 }
  0x84   : > { %444 = vst [vmem:[#allocation3 + $0x8] sm:$0xff] %v3327_v0  ;;  %445 = vst [vmem:[#allocation3] sm:$0xff] %v3327_v0 }
  0x85 PF: > { %v2798_v1 = vld [vmem:[#allocation9 + $0xe4] ss:$16 sps:$4 sm:$0xff]   ;;  %v2800_v2 = vld [vmem:[#allocation9 + $0xec] ss:$16 sps:$4 sm:$0xff]   ;;  %v3975_v3 = vmov 0   ;;  %vm3330_vm0 = vmmov 0  }
  0x86   : > { %724 = vmatprep.mubr.bf16.mxu0 %v3975_v3  ;;  %797 = vmatprep.mubr.bf16.mxu1 %v3975_v3  ;;  %v2802_v4 = vld [vmem:[#allocation9 + $0xe0] ss:$16 sps:$4 sm:$0xff]   ;;  %v2803_v5 = vld [vmem:[#allocation9 + $0xe8] ss:$16 sps:$4 sm:$0xff]   ;;  %v2804_v6 = vld [vmem:[#allocation9 + $0xc4] ss:$16 sps:$4 sm:$0xff]  }
  0x87   : > { %692 = vmatprep.subr.bf16.mxu0 %v2798_v1  ;;  %765 = vmatprep.subr.bf16.mxu1 %v2800_v2  ;;  %v2806_v7 = vld [vmem:[#allocation9 + $0xcc] ss:$16 sps:$4 sm:$0xff]   ;;  %v2808_v8 = vld [vmem:[#allocation9 + $0xc0] ss:$16 sps:$4 sm:$0xff]   ;;  %v2809_v9 = vld [vmem:[#allocation9 + $0xc8] ss:$16 sps:$4 sm:$0xff]  }
  0x88   : > { %693 = vmatpush1.bf16.msra.mxu0 %v2802_v4  ;;  %766 = vmatpush1.bf16.msra.mxu1 %v2803_v5  ;;  %v2810_v10 = vld [vmem:[#allocation9 + $0xa4] ss:$16 sps:$4 sm:$0xff]   ;;  %v2812_v11 = vld [vmem:[#allocation9 + $0xac] ss:$16 sps:$4 sm:$0xff]   ;;  %v2814_v12 = vld [vmem:[#allocation9 + $0xa0] ss:$16 sps:$4 sm:$0xff]  }
  0x89   : > { %694 = vmatprep.subr.bf16.mxu0 %v2804_v6  ;;  %767 = vmatprep.subr.bf16.mxu1 %v2806_v7  ;;  %v2815_v13 = vld [vmem:[#allocation9 + $0xa8] ss:$16 sps:$4 sm:$0xff]   ;;  %v2816_v14 = vld [vmem:[#allocation9 + $0x84] ss:$16 sps:$4 sm:$0xff]   ;;  %v2818_v15 = vld [vmem:[#allocation9 + $0x8c] ss:$16 sps:$4 sm:$0xff]  }
  0x8a   : > { %v2820_v16 = vld [vmem:[#allocation9 + $0x80] ss:$16 sps:$4 sm:$0xff]   ;;  %v2821_v17 = vld [vmem:[#allocation9 + $0x88] ss:$16 sps:$4 sm:$0xff]   ;;  %v2822_v18 = vld [vmem:[#allocation9 + $0x64] ss:$16 sps:$4 sm:$0xff]  }
  0x8b   : > { %v2824_v19 = vld [vmem:[#allocation9 + $0x6c] ss:$16 sps:$4 sm:$0xff]   ;;  %v2826_v20 = vld [vmem:[#allocation9 + $0x60] ss:$16 sps:$4 sm:$0xff]   ;;  %v2827_v21 = vld [vmem:[#allocation9 + $0x68] ss:$16 sps:$4 sm:$0xff]  }
  0x8c   : > { %695 = vmatpush1.bf16.msra.mxu0 %v2808_v8  ;;  %768 = vmatpush1.bf16.msra.mxu1 %v2809_v9  ;;  %v2828_v22 = vld [vmem:[#allocation9 + $0x44] ss:$16 sps:$4 sm:$0xff]   ;;  %v2830_v23 = vld [vmem:[#allocation9 + $0x4c] ss:$16 sps:$4 sm:$0xff]   ;;  %v2832_v24 = vld [vmem:[#allocation9 + $0x40] ss:$16 sps:$4 sm:$0xff]  }
  0x8d   : > { %696 = vmatprep.subr.bf16.mxu0 %v2810_v10  ;;  %769 = vmatprep.subr.bf16.mxu1 %v2812_v11  ;;  %v2833_v25 = vld [vmem:[#allocation9 + $0x48] ss:$16 sps:$4 sm:$0xff]   ;;  %v2834_v26 = vld [vmem:[#allocation9 + $0x24] ss:$16 sps:$4 sm:$0xff]   ;;  %v2836_v27 = vld [vmem:[#allocation9 + $0x2c] ss:$16 sps:$4 sm:$0xff]  }
  0x8e   : > { %v2838_v28 = vld [vmem:[#allocation9 + $0x20] ss:$16 sps:$4 sm:$0xff]   ;;  %v2839_v29 = vld [vmem:[#allocation9 + $0x28] ss:$16 sps:$4 sm:$0xff]   ;;  %v2840_v30 = vld [vmem:[#allocation9 + $0x4] ss:$16 sps:$4 sm:$0xff]  }
  0x8f   : > { %v2842_v31 = vld [vmem:[#allocation9 + $0xc] ss:$16 sps:$4 sm:$0xff]   ;;  %v2844_v32 = vld [vmem:[#allocation9] ss:$16 sps:$4 sm:$0xff]   ;;  %v2845_v33 = vld [vmem:[#allocation9 + $0x8] ss:$16 sps:$4 sm:$0xff]  }
  0x90   : > { %697 = vmatpush1.bf16.msra.mxu0 %v2814_v12  ;;  %770 = vmatpush1.bf16.msra.mxu1 %v2815_v13  ;;  %v2849_v34 = vld [vmem:[#allocation12 + $0xe4] ss:$16 sps:$4 sm:$0xff]   ;;  %v2852_v35 = vld [vmem:[#allocation12 + $0xec] ss:$16 sps:$4 sm:$0xff]   ;;  %v2847_v37 = vld [vmem:[#allocation12 + $0xe0] ss:$16 sps:$4 sm:$0xff]  }
  0x91   : > { %698 = vmatprep.subr.bf16.mxu0 %v2816_v14  ;;  %771 = vmatprep.subr.bf16.mxu1 %v2818_v15  ;;  %v2846_v36 = vld [vmem:[%s3530_s22] sm:$0xff]   ;;  %v2850_v38 = vld [vmem:[#allocation12 + $0xe8] ss:$16 sps:$4 sm:$0xff]   ;;  %v2858_v40 = vld [vmem:[#allocation12 + $0xcc] ss:$16 sps:$4 sm:$0xff]   ;;  %p2584_p12 = scmp.ne.s32.totalorder %s3307_s12, 1 }
  0x92   : > { %v2855_v39 = vld [vmem:[#allocation12 + $0xc4] ss:$16 sps:$4 sm:$0xff]   ;;  %v2853_v41 = vld [vmem:[#allocation12 + $0xc0] ss:$16 sps:$4 sm:$0xff]   ;;  %v2856_v42 = vld [vmem:[#allocation12 + $0xc8] ss:$16 sps:$4 sm:$0xff]  }
  0x93   : > { %v2862_v43 = vld [vmem:[#allocation12 + $0xa4] ss:$16 sps:$4 sm:$0xff]   ;;  %v2865_v44 = vld [vmem:[#allocation12 + $0xac] ss:$16 sps:$4 sm:$0xff]   ;;  %v2860_v46 = vld [vmem:[#allocation12 + $0xa0] ss:$16 sps:$4 sm:$0xff]  }
  0x94   : > { %699 = vmatpush1.bf16.msra.mxu0 %v2820_v16  ;;  %772 = vmatpush1.bf16.msra.mxu1 %v2821_v17  ;;  %v2859_v45 = vld [vmem:[%s3530_s22 + $0x8] sm:$0xff]   ;;  %v2868_v48 = vld [vmem:[#allocation12 + $0x84] ss:$16 sps:$4 sm:$0xff]   ;;  %v2866_v50 = vld [vmem:[#allocation12 + $0x80] ss:$16 sps:$4 sm:$0xff]  }
  0x95   : > { %700 = vmatprep.subr.bf16.mxu0 %v2822_v18  ;;  %773 = vmatprep.subr.bf16.mxu1 %v2824_v19  ;;  %v2863_v47 = vld [vmem:[#allocation12 + $0xa8] ss:$16 sps:$4 sm:$0xff]   ;;  %v2871_v49 = vld [vmem:[#allocation12 + $0x8c] ss:$16 sps:$4 sm:$0xff]   ;;  %v2875_v52 = vld [vmem:[#allocation12 + $0x64] ss:$16 sps:$4 sm:$0xff]  }
  0x96   : > { %v2869_v51 = vld [vmem:[#allocation12 + $0x88] ss:$16 sps:$4 sm:$0xff]   ;;  %v2878_v53 = vld [vmem:[#allocation12 + $0x6c] ss:$16 sps:$4 sm:$0xff]   ;;  %v2872_v54 = vld [vmem:[%s3530_s22 + $0x10] sm:$0xff]  }
  0x97   : > { %v2873_v55 = vld [vmem:[#allocation12 + $0x60] ss:$16 sps:$4 sm:$0xff]   ;;  %v2876_v56 = vld [vmem:[#allocation12 + $0x68] ss:$16 sps:$4 sm:$0xff]   ;;  %v2881_v57 = vld [vmem:[#allocation12 + $0x44] ss:$16 sps:$4 sm:$0xff]  }
  0x98   : > { %701 = vmatpush1.bf16.msra.mxu0 %v2826_v20  ;;  %774 = vmatpush1.bf16.msra.mxu1 %v2827_v21  ;;  %v2884_v58 = vld [vmem:[#allocation12 + $0x4c] ss:$16 sps:$4 sm:$0xff]   ;;  %v2879_v59 = vld [vmem:[#allocation12 + $0x40] ss:$16 sps:$4 sm:$0xff]   ;;  %v2882_v60 = vld [vmem:[#allocation12 + $0x48] ss:$16 sps:$4 sm:$0xff]  }
  0x99   : > { %702 = vmatprep.subr.bf16.mxu0 %v2828_v22  ;;  %775 = vmatprep.subr.bf16.mxu1 %v2830_v23  ;;  %v2888_v61 = vld [vmem:[#allocation12 + $0x24] ss:$16 sps:$4 sm:$0xff]   ;;  %v2891_v62 = vld [vmem:[#allocation12 + $0x2c] ss:$16 sps:$4 sm:$0xff]   ;;  %v2886_v0 = vld [vmem:[#allocation12 + $0x20] ss:$16 sps:$4 sm:$0xff]  }
  0x9a   : > { %v2885_v63 = vld [vmem:[%s3530_s22 + $0x18] sm:$0xff]   ;;  %v2894_v2 = vld [vmem:[#allocation12 + $0x4] ss:$16 sps:$4 sm:$0xff]   ;;  %v2892_v5 = vld [vmem:[#allocation12] ss:$16 sps:$4 sm:$0xff]  }
  0x9b   : > { %v2889_v1 = vld [vmem:[#allocation12 + $0x28] ss:$16 sps:$4 sm:$0xff]   ;;  %v2897_v4 = vld [vmem:[#allocation12 + $0xc] ss:$16 sps:$4 sm:$0xff]   ;;  %v3561_v7 = vld [vmem:[#allocation11 + $0xe4] ss:$16 sps:$4 sm:$0xff]  }
  0x9c   : > { %703 = vmatpush1.bf16.msra.mxu0 %v2832_v24  ;;  %776 = vmatpush1.bf16.msra.mxu1 %v2833_v25  ;;  %v2895_v6 = vld [vmem:[#allocation12 + $0x8] ss:$16 sps:$4 sm:$0xff]   ;;  %v3566_v9 = vld [vmem:[#allocation11 + $0xe0] ss:$16 sps:$4 sm:$0xff]   ;;  %v3568_v10 = vld [vmem:[#allocation11 + $0xc4] ss:$16 sps:$4 sm:$0xff]  }
  0x9d   : > { %704 = vmatprep.subr.bf16.mxu0 %v2834_v26  ;;  %777 = vmatprep.subr.bf16.mxu1 %v2836_v27  ;;  %v2898_v8 = vld [vmem:[%s3530_s22 + $0x18] sm:$0xff]   ;;  %v3571_v11 = vld [vmem:[#allocation11 + $0xc0] ss:$16 sps:$4 sm:$0xff]   ;;  %v3573_v12 = vld [vmem:[#allocation11 + $0xa4] ss:$16 sps:$4 sm:$0xff]  }
  0x9e   : > { %v3579_v13 = vld [vmem:[#allocation11 + $0xa0] ss:$16 sps:$4 sm:$0xff]   ;;  %v3582_v14 = vld [vmem:[#allocation11 + $0x84] ss:$16 sps:$4 sm:$0xff]   ;;  %v1424_v25 = vld [vmem:[#allocation2 + $0x8] sm:$0xff] }
  0x9f   : > { %v3585_v15 = vld [vmem:[#allocation11 + $0x80] ss:$16 sps:$4 sm:$0xff]   ;;  %v3588_v16 = vld [vmem:[#allocation11 + $0x64] ss:$16 sps:$4 sm:$0xff]   ;;  %v2923_v27 = vld [vmem:[#allocation15 + $0x38] sm:$0xff]  }
  0xa0   : > { %705 = vmatpush1.bf16.msra.mxu0 %v2838_v28  ;;  %778 = vmatpush1.bf16.msra.mxu1 %v2839_v29  ;;  %v3591_v17 = vld [vmem:[#allocation11 + $0x60] ss:$16 sps:$4 sm:$0xff]   ;;  %v3594_v18 = vld [vmem:[#allocation11 + $0x44] ss:$16 sps:$4 sm:$0xff]   ;;  %v3329_v28 = vmov 0.0  }
  0xa1   : > { %706 = vmatprep.subr.bf16.mxu0 %v2840_v30  ;;  %779 = vmatprep.subr.bf16.mxu1 %v2842_v31  ;;  %v3597_v19 = vld [vmem:[#allocation11 + $0x40] ss:$16 sps:$4 sm:$0xff]   ;;  %v3600_v20 = vld [vmem:[#allocation11 + $0x24] ss:$16 sps:$4 sm:$0xff]   ;;  %v2925_v30 = vld [vmem:[#allocation15 + $0x28] sm:$0xff]  }
  0xa2   : > { %v3603_v21 = vld [vmem:[#allocation11 + $0x20] ss:$16 sps:$4 sm:$0xff]   ;;  %v3606_v22 = vld [vmem:[#allocation11 + $0x4] ss:$16 sps:$4 sm:$0xff]  }
  0xa3   : > { %v3609_v23 = vld [vmem:[#allocation11] ss:$16 sps:$4 sm:$0xff]  }
  0xa4   : > { %707 = vmatpush1.bf16.msra.mxu0 %v2844_v32  ;;  %780 = vmatpush1.bf16.msra.mxu1 %v2845_v33  ;;  %v1423_v24 = vld [vmem:[#allocation2] sm:$0xff]  ;;  %v2926_v31 = vld [vmem:[#allocation15 + $0x20] sm:$0xff]   ;;  %v2927_v32 = vld [vmem:[#allocation15 + $0x18] sm:$0xff]  }
  0xa5   : > { %1168 = vmatprep.subr.bf16.mxu0 %v2849_v34  ;;  %1209 = vmatprep.subr.bf16.mxu1 %v2852_v35  ;;  %v3612_v26 = vpack.c.bf16 %v1424_v25, %v1423_v24  ;;  %v2924_v29 = vld [vmem:[#allocation15 + $0x30] sm:$0xff]   ;;  %v2929_v34 = vld [vmem:[#allocation15 + $0x8] sm:$0xff]   ;;  %v2930_v35 = vld [vmem:[#allocation15] sm:$0xff]  }
  0xa6   : > { %v2928_v33 = vld [vmem:[#allocation15 + $0x10] sm:$0xff]  }
  0xa7   : > { %725 = vmatmul.mubr.bf16.vlgmr.msra.gmra.mxu0 %v2846_v36  ;;  %798 = vmatmul.mubr.bf16.vlgmr.msra.gmra.mxu1 %v2846_v36  ;;  %v3634_v36 = vld [vmem:[#allocation11 + $0xec] ss:$16 sps:$4 sm:$0xff]  }
  0xa8   : > { %1169 = vmatpush1.bf16.msra.mxu0 %v2847_v37  ;;  %1210 = vmatpush1.bf16.msra.mxu1 %v2850_v38  ;;  %v488_v37 = vlaneseq }
  0xa9   : > { %1170 = vmatprep.subr.bf16.mxu0 %v2855_v39  ;;  %1211 = vmatprep.subr.bf16.mxu1 %v2858_v40 }
  0xaa   : > { %734 = vmatprep.mubr.bf16.mxu0 %v3975_v3  ;;  %807 = vmatprep.mubr.bf16.mxu1 %v3975_v3  ;;  %v3637_v38 = vshrl.u32 %v488_v37, 7 }
  0xac   : > { %1171 = vmatpush1.bf16.msra.mxu0 %v2853_v41  ;;  %1212 = vmatpush1.bf16.msra.mxu1 %v2856_v42  ;;  %v498_v39 = vsub.s32 2, %v3637_v38  ;;  %v490_v40 = vsub.s32 0, %v3637_v38  ;;  %v494_v41 = vsub.s32 1, %v3637_v38  ;;  %v502_v42 = vsub.s32 3, %v3637_v38 }
  0xad   : > { %1172 = vmatprep.subr.bf16.mxu0 %v2862_v43  ;;  %1213 = vmatprep.subr.bf16.mxu1 %v2865_v44  ;;  %v486_v43 = vld [vmem:[%s3962_s3] sm:$0xf] }
  0xae   : > { %v3648_v44 = vrot.slane %v486_v43, %v498_v39 }
  0xaf   : > { %735 = vmatmul.mubr.bf16.gmra.mxu0 %v2859_v45  ;;  %808 = vmatmul.mubr.bf16.gmra.mxu1 %v2859_v45  ;;  %v3652_v45 = vrot.slane %v486_v43, %v490_v40 }
  0xb0   : > { %1173 = vmatpush1.bf16.msra.mxu0 %v2860_v46  ;;  %1214 = vmatpush1.bf16.msra.mxu1 %v2863_v47  ;;  %v3654_v46 = vrot.slane %v486_v43, %v494_v41  ;;  %v3658_v47 = vrot.slane %v486_v43, %v502_v42 }
  0xb1   : > { %1174 = vmatprep.subr.bf16.mxu0 %v2868_v48  ;;  %1215 = vmatprep.subr.bf16.mxu1 %v2871_v49 }
  0xb2   : > { %744 = vmatprep.mubr.bf16.mxu0 %v3975_v3  ;;  %817 = vmatprep.mubr.bf16.mxu1 %v3975_v3 }
  0xb4   : > { %1175 = vmatpush1.bf16.msra.mxu0 %v2866_v50  ;;  %1216 = vmatpush1.bf16.msra.mxu1 %v2869_v51 }
  0xb5   : > { %1176 = vmatprep.subr.bf16.mxu0 %v2875_v52  ;;  %1217 = vmatprep.subr.bf16.mxu1 %v2878_v53 }
  0xb7   : > { %745 = vmatmul.mubr.bf16.gmra.mxu0 %v2872_v54  ;;  %818 = vmatmul.mubr.bf16.gmra.mxu1 %v2872_v54 }
  0xb8   : > { %1177 = vmatpush1.bf16.msra.mxu0 %v2873_v55  ;;  %1218 = vmatpush1.bf16.msra.mxu1 %v2876_v56 }
  0xb9   : > { %1178 = vmatprep.subr.bf16.mxu0 %v2881_v57  ;;  %1219 = vmatprep.subr.bf16.mxu1 %v2884_v58 }
  0xba   : > { %754 = vmatprep.mubr.bf16.mxu0 %v3975_v3  ;;  %827 = vmatprep.mubr.bf16.mxu1 %v3975_v3 }
  0xbc   : > { %1179 = vmatpush1.bf16.msra.mxu0 %v2879_v59  ;;  %1220 = vmatpush1.bf16.msra.mxu1 %v2882_v60 }
  0xbd   : > { %1180 = vmatprep.subr.bf16.mxu0 %v2888_v61  ;;  %1221 = vmatprep.subr.bf16.mxu1 %v2891_v62 }
  0xbf   : > { %755 = vmatmul.mubr.bf16.gmra.mxu0 %v2885_v63  ;;  %828 = vmatmul.mubr.bf16.gmra.mxu1 %v2885_v63 }
  0xc0   : > { %1181 = vmatpush1.bf16.msra.mxu0 %v2886_v0  ;;  %1222 = vmatpush1.bf16.msra.mxu1 %v2889_v1 }
  0xc1   : > { %1182 = vmatprep.subr.bf16.mxu0 %v2894_v2  ;;  %1223 = vmatprep.subr.bf16.mxu1 %v2897_v4 }
  0xc2   : > { %1200 = vmatprep.mubr.bf16.mxu0 %v3975_v3  ;;  %1241 = vmatprep.mubr.bf16.mxu1 %v3975_v3 }
  0xc4   : > { %1183 = vmatpush1.bf16.msra.mxu0 %v2892_v5  ;;  %1224 = vmatpush1.bf16.msra.mxu1 %v2895_v6 }
  0xc5   : > { %1603 = vmatprep.subr.bf16.mxu1 %v3561_v7  ;;  %2633 = vmatprep.subr.bf16.mxu0 %v3329_v28 }
  0xc7   : > { %1201 = vmatmul.mubr.bf16.vlgmr.msra.gmra.mxu0 %v2898_v8  ;;  %1242 = vmatmul.mubr.bf16.vlgmr.msra.gmra.mxu1 %v2898_v8 }
  0xc8   : > { %1604 = vmatpush1.bf16.msra.mxu1 %v3566_v9  ;;  %1635 = vmatprep.mubr.bf16.mxu1 %v3975_v3 }
  0xc9   : > { %1605 = vmatprep.subr.bf16.mxu1 %v3568_v10  ;;  %2634 = vmatpush3.bf16.msra.mxu0 %v2923_v27 }
  0xca   : > { %2635 = vmatprep.subr.bf16.mxu0 %v3329_v28  ;;  %2649 = vmatprep.mubr.msk.bf16.mxu0 %vm3330_vm0, %v3329_v28 }
  0xcc   : > { %1606 = vmatpush1.bf16.msra.mxu1 %v3571_v11 }
  0xcd   : > { %1607 = vmatprep.subr.bf16.mxu1 %v3573_v12  ;;  %2636 = vmatpush3.bf16.msra.mxu0 %v2924_v29 }
  0xce   : > { %2637 = vmatprep.subr.bf16.mxu0 %v3329_v28 }
  0xd0   : > { %1608 = vmatpush1.bf16.msra.mxu1 %v3579_v13 }
  0xd1   : > { %1609 = vmatprep.subr.bf16.mxu1 %v3582_v14  ;;  %2638 = vmatpush3.bf16.msra.mxu0 %v2925_v30 }
  0xd2   : > { %2639 = vmatprep.subr.bf16.mxu0 %v3329_v28 }
  0xd4   : > { %1610 = vmatpush1.bf16.msra.mxu1 %v3585_v15 }
  0xd5   : > { %1611 = vmatprep.subr.bf16.mxu1 %v3588_v16  ;;  %2640 = vmatpush3.bf16.msra.mxu0 %v2926_v31 }
  0xd6   : > { %2641 = vmatprep.subr.bf16.mxu0 %v3329_v28 }
  0xd8   : > { %1612 = vmatpush1.bf16.msra.mxu1 %v3591_v17 }
  0xd9   : > { %1613 = vmatprep.subr.bf16.mxu1 %v3594_v18  ;;  %2642 = vmatpush3.bf16.msra.mxu0 %v2927_v32 }
  0xda   : > { %2643 = vmatprep.subr.bf16.mxu0 %v3329_v28 }
  0xdc   : > { %1614 = vmatpush1.bf16.msra.mxu1 %v3597_v19 }
  0xdd   : > { %1615 = vmatprep.subr.bf16.mxu1 %v3600_v20  ;;  %2644 = vmatpush3.bf16.msra.mxu0 %v2928_v33 }
  0xde   : > { %2645 = vmatprep.subr.bf16.mxu0 %v3329_v28 }
  0xe0   : > { %1616 = vmatpush1.bf16.msra.mxu1 %v3603_v21 }
  0xe1   : > { %1617 = vmatprep.subr.bf16.mxu1 %v3606_v22  ;;  %2646 = vmatpush3.bf16.msra.mxu0 %v2929_v34 }
  0xe2   : > { %2647 = vmatprep.subr.bf16.mxu0 %v3329_v28 }
  0xe4   : > { %1618 = vmatpush1.bf16.msra.mxu1 %v3609_v23 }
  0xe5   : > { %1749 = vmatprep.subr.bf16.mxu1 %v3561_v7  ;;  %2648 = vmatpush3.bf16.msra.mxu0 %v2930_v35 }
  0xe6   : > { %1646 = vmatprep.subr.bf16.mxu0 %v3634_v36 }
  0xe7   : > { %1636 = vmatmul.mubr.bf16.vlgmr.msra.gmra.mxu1 %v3612_v26 }
  0xe8   : > { %1750 = vmatpush1.bf16.msra.mxu1 %v3566_v9  ;;  %1781 = vmatprep.mubr.bf16.mxu1 %v3975_v3 }
  0xe9   : > { %1751 = vmatprep.subr.bf16.mxu1 %v3568_v10 }
  0xec   : > { %1752 = vmatpush1.bf16.msra.mxu1 %v3571_v11 }
  0xed   : > { %1753 = vmatprep.subr.bf16.mxu1 %v3573_v12 }
  0xf0   : > { %1754 = vmatpush1.bf16.msra.mxu1 %v3579_v13 }
  0xf1   : > { %1755 = vmatprep.subr.bf16.mxu1 %v3582_v14 }
  0xf4   : > { %1756 = vmatpush1.bf16.msra.mxu1 %v3585_v15 }
  0xf5   : > { %1757 = vmatprep.subr.bf16.mxu1 %v3588_v16 }
  0xf8   : > { %1758 = vmatpush1.bf16.msra.mxu1 %v3591_v17 }
  0xf9   : > { %1759 = vmatprep.subr.bf16.mxu1 %v3594_v18 }
  0xfc   : > { %1760 = vmatpush1.bf16.msra.mxu1 %v3597_v19 }
  0xfd   : > { %1761 = vmatprep.subr.bf16.mxu1 %v3600_v20 }
 0x100   : > { %1762 = vmatpush1.bf16.msra.mxu1 %v3603_v21 }
 0x101   : > { %1763 = vmatprep.subr.bf16.mxu1 %v3606_v22 }
 0x104   : > { %1764 = vmatpush1.bf16.msra.mxu1 %v3609_v23 }
 0x105   : > { %1895 = vmatprep.subr.bf16.mxu1 %v3561_v7 }
 0x167   : > { %v726_v48 = vpop.f32.mrf.mxu0  ;;  %v799_v49 = vpop.f32.mrf.mxu1 }
 0x168   : > { %v800_v50 = vadd.f32 %v799_v49, %v3648_v44  ;;  %v727_v53 = vadd.f32 %v726_v48, %v3652_v45 }
 0x169   : > { %v728_v51 = vpop.f32.mrf.mxu0  ;;  %v801_v52 = vpop.f32.mrf.mxu1 }
 0x16a   : > { %v729_v54 = vadd.f32 %v728_v51, %v3654_v46  ;;  %v802_v55 = vadd.f32 %v801_v52, %v3658_v47 }
 0x16b   : > { %v730_v56 = vpop.f32.mrf.mxu0  ;;  %v803_v57 = vpop.f32.mrf.mxu1 }
 0x16c   : > { %v3664_v58 = vpack.c.bf16 %v729_v54, %v727_v53  ;;  %v3666_v59 = vpack.c.bf16 %v802_v55, %v800_v50  ;;  %v804_v60 = vadd.f32 %v803_v57, %v3648_v44  ;;  %v731_v63 = vadd.f32 %v730_v56, %v3652_v45 }
 0x16d   : > { %v732_v61 = vpop.f32.mrf.mxu0  ;;  %v805_v62 = vpop.f32.mrf.mxu1 }
 0x16e   : > { %v733_v0 = vadd.f32 %v732_v61, %v3654_v46  ;;  %v806_v1 = vadd.f32 %v805_v62, %v3658_v47 }
 0x16f   : > { %v736_v2 = vpop.f32.mrf.mxu0  ;;  %v809_v4 = vpop.f32.mrf.mxu1 }
 0x170   : > { %v3672_v5 = vpack.c.bf16 %v733_v0, %v731_v63  ;;  %v3674_v6 = vpack.c.bf16 %v806_v1, %v804_v60  ;;  %v737_v8 = vadd.f32 %v736_v2, %v3652_v45  ;;  %v810_v24 = vadd.f32 %v809_v4, %v3648_v44 }
 0x171   : > { %v738_v25 = vpop.f32.mrf.mxu0  ;;  %v811_v27 = vpop.f32.mrf.mxu1 }
 0x172   : > { %v739_v28 = vadd.f32 %v738_v25, %v3654_v46  ;;  %v812_v29 = vadd.f32 %v811_v27, %v3658_v47 }
 0x173   : > { %v740_v30 = vpop.f32.mrf.mxu0  ;;  %v813_v31 = vpop.f32.mrf.mxu1 }
 0x174   : > { %v3680_v32 = vpack.c.bf16 %v739_v28, %v737_v8  ;;  %v3682_v33 = vpack.c.bf16 %v812_v29, %v810_v24  ;;  %v741_v34 = vadd.f32 %v740_v30, %v3652_v45  ;;  %v814_v35 = vadd.f32 %v813_v31, %v3648_v44 }
 0x175   : > { %v742_v37 = vpop.f32.mrf.mxu0  ;;  %v815_v41 = vpop.f32.mrf.mxu1 }
 0x176   : > { %v743_v43 = vadd.f32 %v742_v37, %v3654_v46  ;;  %v816_v48 = vadd.f32 %v815_v41, %v3658_v47 }
 0x177   : > { %v746_v49 = vpop.f32.mrf.mxu0  ;;  %v819_v50 = vpop.f32.mrf.mxu1 }
 0x178   : > { %v3688_v51 = vpack.c.bf16 %v743_v43, %v741_v34  ;;  %v3690_v52 = vpack.c.bf16 %v816_v48, %v814_v35  ;;  %v747_v53 = vadd.f32 %v746_v49, %v3652_v45  ;;  %v820_v54 = vadd.f32 %v819_v50, %v3648_v44  ;;  %v985_v35 = vld [vmem:[%s3964_s5] sm:$0xf] }
 0x179   : > { %v748_v55 = vpop.f32.mrf.mxu0  ;;  %v821_v56 = vpop.f32.mrf.mxu1 }
 0x17a   : > { %v749_v57 = vadd.f32 %v748_v55, %v3654_v46  ;;  %v822_v60 = vadd.f32 %v821_v56, %v3658_v47 }
 0x17b   : > { %v750_v61 = vpop.f32.mrf.mxu0  ;;  %v823_v62 = vpop.f32.mrf.mxu1 }
 0x17c   : > { %v3696_v63 = vpack.c.bf16 %v749_v57, %v747_v53  ;;  %v3698_v0 = vpack.c.bf16 %v822_v60, %v820_v54  ;;  %v751_v1 = vadd.f32 %v750_v61, %v3652_v45  ;;  %v824_v2 = vadd.f32 %v823_v62, %v3648_v44 }
 0x17d   : > { %v752_v4 = vpop.f32.mrf.mxu0  ;;  %v825_v8 = vpop.f32.mrf.mxu1  ;;  %v990_v53 = vrot.slane %v985_v35, %v490_v40 }
 0x17e   : > { %v753_v24 = vadd.f32 %v752_v4, %v3654_v46  ;;  %v826_v25 = vadd.f32 %v825_v8, %v3658_v47  ;;  %v998_v8 = vrot.slane %v985_v35, %v502_v42 }
 0x17f   : > { %v756_v27 = vpop.f32.mrf.mxu0  ;;  %v829_v28 = vpop.f32.mrf.mxu1 }
 0x180   : > { %v3704_v29 = vpack.c.bf16 %v753_v24, %v751_v1  ;;  %v3706_v30 = vpack.c.bf16 %v826_v25, %v824_v2  ;;  %v757_v31 = vadd.f32 %v756_v27, %v3652_v45  ;;  %v830_v34 = vadd.f32 %v829_v28, %v3648_v44 }
 0x181   : > { %v758_v37 = vpop.f32.mrf.mxu0  ;;  %v831_v41 = vpop.f32.mrf.mxu1 }
 0x182   : > { %v759_v43 = vadd.f32 %v758_v37, %v3654_v46  ;;  %v832_v48 = vadd.f32 %v831_v41, %v3658_v47 }
 0x183   : > { %v760_v49 = vpop.f32.mrf.mxu0  ;;  %v833_v50 = vpop.f32.mrf.mxu1 }
 0x184   : > { %v3717_v54 = vpack.c.bf16 %v759_v43, %v757_v31  ;;  %v3719_v55 = vpack.c.bf16 %v832_v48, %v830_v34  ;;  %v761_v56 = vadd.f32 %v760_v49, %v3652_v45  ;;  %v834_v57 = vadd.f32 %v833_v50, %v3648_v44 }
 0x185   : > { %v762_v60 = vpop.f32.mrf.mxu0  ;;  %v835_v61 = vpop.f32.mrf.mxu1  ;;  %v994_v43 = vrot.slane %v985_v35, %v498_v39 }
 0x186   : > { %3999 = vst [vmem:[#allocation23_spill] sm:$0xff] %v3717_v54  ;;  %4000 = vst [vmem:[#allocation24_spill] sm:$0xff] %v3719_v55  ;;  %v763_v62 = vadd.f32 %v762_v60, %v3654_v46  ;;  %v836_v1 = vadd.f32 %v835_v61, %v3658_v47 }
 0x187   : > { %v1202_v2 = vpop.f32.mrf.mxu0  ;;  %v1243_v4 = vpop.f32.mrf.mxu1 }
 0x188   : > { %v3727_v40 = vpack.c.bf16 %v763_v62, %v761_v56  ;;  %v3729_v24 = vpack.c.bf16 %v836_v1, %v834_v57  ;;  %v1203_v25 = vadd.f32 %v1202_v2, %v990_v53  ;;  %v1244_v48 = vadd.f32 %v1243_v4, %v994_v43 }
 0x189   : > { %v1204_v27 = vpop.f32.mrf.mxu0  ;;  %v1245_v45 = vpop.f32.mrf.mxu1 }
 0x18a   : > { %4001 = vst [vmem:[#allocation25_spill] sm:$0xff] %v3727_v40  ;;  %4002 = vst [vmem:[#allocation26_spill] sm:$0xff] %v3729_v24  ;;  %v1252_v28 = vmul.f32 0.5, %v1203_v25  ;;  %v1246_v44 = vadd.f32 %v1245_v45, %v998_v8  ;;  %v1253_v50 = vmul.f32 0.5, %v1244_v48  ;;  %v3745_v48 = vld [vmem:[#allocation11 + $0xa8] ss:$16 sps:$4 sm:$0xff]   ;;  %v1437_v40 = vunpack.c.h.bf16 %v3666_v59 }
 0x18b   : > { %v1205_v31 = vpop.f32.mrf.mxu0  ;;  %v1247_v34 = vpop.f32.mrf.mxu1 }
 0x18c   : > { %2955 = vtanh.f32 %v1252_v28  ;;  %v1206_v46 = vadd.f32 %v1205_v31, %v990_v53  ;;  %v1248_v49 = vadd.f32 %v1247_v34, %v994_v43  ;;  %v3738_v43 = vld [vmem:[#allocation11 + $0xc8] ss:$16 sps:$4 sm:$0xff]  }
 0x18d   : > { %v1207_v37 = vpop.f32.mrf.mxu0  ;;  %v1249_v47 = vpop.f32.mrf.mxu1  ;;  %2957 = vtanh.f32 %v1246_v44 }
 0x18e   : > { %v1254_v41 = vmul.f32 0.5, %v1206_v46  ;;  %v1250_v42 = vadd.f32 %v1249_v47, %v998_v8  ;;  %v1255_v56 = vmul.f32 0.5, %v1248_v49  ;;  %v3733_v37 = vld [vmem:[#allocation11 + $0xe8] ss:$16 sps:$4 sm:$0xff]   ;;  %v3748_v49 = vld [vmem:[#allocation11 + $0x8c] ss:$16 sps:$4 sm:$0xff]  }
 0x190   : > { %2959 = vtanh.f32 %v1254_v41  ;;  %v3735_v41 = vld [vmem:[#allocation11 + $0xcc] ss:$16 sps:$4 sm:$0xff]  }
 0x191   : > { %2961 = vtanh.f32 %v1250_v42  ;;  %v3742_v42 = vld [vmem:[#allocation11 + $0xac] ss:$16 sps:$4 sm:$0xff]  }
 0x192   : > { %2963 = vtanh.f32 %v1253_v50  ;;  %v3751_v50 = vld [vmem:[#allocation11 + $0x88] ss:$16 sps:$4 sm:$0xff]  }
 0x193   : > { %2965 = vtanh.f32 %v1255_v56  ;;  %v3754_v56 = vld [vmem:[#allocation11 + $0x6c] ss:$16 sps:$4 sm:$0xff]  }
 0x199   : > { %v2956_v57 = vpop.eup %2955 }
 0x19a   : > { %v1260_v60 = vadd.f32 1.0, %v2956_v57  ;;  %v2958_v61 = vpop.eup %2957  ;;  %v3757_v57 = vld [vmem:[#allocation11 + $0x68] ss:$16 sps:$4 sm:$0xff]  }
 0x19c   : > { %v1264_v62 = vmul.f32 0.5, %v1260_v60  ;;  %v3760_v60 = vld [vmem:[#allocation11 + $0x4c] ss:$16 sps:$4 sm:$0xff]  }
 0x19d   : > { %v2960_v53 = vpop.eup %2959 }
 0x19e   : > { %v1270_v1 = vmul.f32 %v2958_v61, %v1264_v62  ;;  %v1262_v2 = vadd.f32 1.0, %v2960_v53  ;;  %v2962_v38 = vpop.eup %2961  ;;  %v3763_v61 = vld [vmem:[#allocation11 + $0x48] ss:$16 sps:$4 sm:$0xff]   ;;  %v3766_v62 = vld [vmem:[#allocation11 + $0x2c] ss:$16 sps:$4 sm:$0xff]  }
 0x19f   : > { %v2964_v35 = vpop.eup %2963  ;;  %v3769_v53 = vld [vmem:[#allocation11 + $0x28] ss:$16 sps:$4 sm:$0xff]  }
 0x1a0   : > { %v1266_v25 = vmul.f32 0.5, %v1262_v2  ;;  %2967 = vtanh.f32 %v1270_v1  ;;  %v2966_v4 = vpop.eup %2965  ;;  %v1261_v8 = vadd.f32 1.0, %v2964_v35  ;;  %v3772_v1 = vld [vmem:[#allocation11 + $0xc] ss:$16 sps:$4 sm:$0xff]   ;;  %v3775_v2 = vld [vmem:[#allocation11 + $0x8] ss:$16 sps:$4 sm:$0xff]  }
 0x1a1   : > { %v1263_v27 = vadd.f32 1.0, %v2966_v4 }
 0x1a2   : > { %v1271_v39 = vmul.f32 %v2962_v38, %v1266_v25  ;;  %v1265_v28 = vmul.f32 0.5, %v1261_v8 }
 0x1a3   : > { %v1267_v44 = vmul.f32 0.5, %v1263_v27 }
 0x1a4   : > { %2969 = vtanh.f32 %v1271_v39 }
 0x1a7   : > { %v1637_v27 = vpop.f32.mrf.mxu1 }
 0x1ad   : > { %v2968_v45 = vpop.eup %2967 }
 0x1ae   : > { %v1274_v34 = vmul.f32 %v2968_v45, %v1265_v28  ;;  %v1639_v45 = vpop.f32.mrf.mxu1 }
 0x1b0   : > { %v1641_v28 = vpop.f32.mrf.mxu1 }
 0x1b1   : > { %v2970_v31 = vpop.eup %2969 }
 0x1b2   : > { %v1275_v46 = vmul.f32 %v2970_v31, %v1267_v44  ;;  %v1435_v44 = vunpack.c.h.bf16 %v3664_v58  ;;  %v1434_v31 = vunpack.c.l.bf16 %v3664_v58 }
 0x1b4   : > { %v1276_v47 = vpack.c.bf16 %v1275_v46, %v1274_v34  ;;  %v1690_v34 = vadd.f32 %v1639_v45, %v1435_v44  ;;  %v1643_v46 = vpop.f32.mrf.mxu1  ;;  %v1441_v44 = vunpack.c.h.bf16 %v3674_v6 }
 0x1b6   : > { %2650 = vmatmul.mubr.bf16.vlgmr.msra.gmra.mxu0 %v1276_v47  ;;  %v1689_v47 = vadd.f32 %v1637_v27, %v1434_v31  ;;  %v1698_v24 = vmul.f32 0.5, %v1690_v34 }
 0x1b7   : > { %1647 = vmatpush1.bf16.msra.mxu0 %v3733_v37  ;;  %1678 = vmatprep.mubr.bf16.mxu0 %v3975_v3 }
 0x1b8   : > { %1648 = vmatprep.subr.bf16.mxu0 %v3735_v41  ;;  %2971 = vtanh.f32 %v1698_v24  ;;  %v1440_v24 = vunpack.c.l.bf16 %v3674_v6 }
 0x1bb   : > { %1649 = vmatpush1.bf16.msra.mxu0 %v3738_v43 }
 0x1bc   : > { %1650 = vmatprep.subr.bf16.mxu0 %v3742_v42 }
 0x1bf   : > { %1651 = vmatpush1.bf16.msra.mxu0 %v3745_v48 }
 0x1c0   : > { %1652 = vmatprep.subr.bf16.mxu0 %v3748_v49 }
 0x1c3   : > { %1653 = vmatpush1.bf16.msra.mxu0 %v3751_v50 }
 0x1c4   : > { %1654 = vmatprep.subr.bf16.mxu0 %v3754_v56 }
 0x1c7   : > { %1655 = vmatpush1.bf16.msra.mxu0 %v3757_v57 }
 0x1c8   : > { %1656 = vmatprep.subr.bf16.mxu0 %v3760_v60 }
 0x1cb   : > { %1657 = vmatpush1.bf16.msra.mxu0 %v3763_v61 }
 0x1cc   : > { %1658 = vmatprep.subr.bf16.mxu0 %v3766_v62 }
 0x1cf   : > { %1659 = vmatpush1.bf16.msra.mxu0 %v3769_v53 }
 0x1d0   : > { %1660 = vmatprep.subr.bf16.mxu0 %v3772_v1 }
 0x1d3   : > { %1661 = vmatpush1.bf16.msra.mxu0 %v3775_v2 }
 0x1d4   : > { %1792 = vmatprep.subr.bf16.mxu0 %v3634_v36 }
 0x1d6   : > { %1679 = vmatmul.mubr.bf16.vlgmr.msra.gmra.mxu0 %v3612_v26  ;;  %v2543_v26 = vld [vmem:[%s3967_s8] ss:$0 sm:$0xff] }
 0x1d7   : > { %1793 = vmatpush1.bf16.msra.mxu0 %v3733_v37  ;;  %1824 = vmatprep.mubr.bf16.mxu0 %v3975_v3  ;;  %v1439_v3 = vunpack.c.h.bf16 %v3672_v5 }
 0x1d8   : > { %1794 = vmatprep.subr.bf16.mxu0 %v3735_v41 }
 0x1db   : > { %1795 = vmatpush1.bf16.msra.mxu0 %v3738_v43 }
 0x1dc   : > { %1796 = vmatprep.subr.bf16.mxu0 %v3742_v42 }
 0x1df   : > { %1797 = vmatpush1.bf16.msra.mxu0 %v3745_v48 }
 0x1e0   : > { %1798 = vmatprep.subr.bf16.mxu0 %v3748_v49 }
 0x1e3   : > { %1799 = vmatpush1.bf16.msra.mxu0 %v3751_v50 }
 0x1e4   : > { %1800 = vmatprep.subr.bf16.mxu0 %v3754_v56 }
 0x1e7   : > { %1801 = vmatpush1.bf16.msra.mxu0 %v3757_v57 }
 0x1e8   : > { %1802 = vmatprep.subr.bf16.mxu0 %v3760_v60 }
 0x1eb   : > { %1803 = vmatpush1.bf16.msra.mxu0 %v3763_v61 }
 0x1ec   : > { %1804 = vmatprep.subr.bf16.mxu0 %v3766_v62 }
 0x1ef   : > { %1805 = vmatpush1.bf16.msra.mxu0 %v3769_v53 }
 0x1f0   : > { %1806 = vmatprep.subr.bf16.mxu0 %v3772_v1 }
 0x1f3   : > { %1807 = vmatpush1.bf16.msra.mxu0 %v3775_v2 }
 0x1f4   : > { %1938 = vmatprep.subr.bf16.mxu0 %v3634_v36 }
 0x276   : > { %v1382_v25 = vpop.f32.mrf.mxu0 }
 0x277   : > { %v1383_v38 = vadd.f32 %v2543_v26, %v1382_v25  ;;  %v1438_v25 = vunpack.c.l.bf16 %v3672_v5 }
 0x278   : > { %v2651_v39 = vpop.f32.mrf.mxu0 }
 0x279   : > { %1389 = vst [vmem:[#allocation5 + $0x8] sm:$0xff] %v1383_v38  ;;  %v1694_v38 = vadd.f32 %v1643_v46, %v1439_v3  ;;  %v1697_v39 = vmul.f32 0.5, %v1689_v47  ;;  %v2972_v3 = vpop.eup %2971 }
 0x27a   : > { %v1385_v35 = vpop.f32.mrf.mxu0  ;;  %v1710_v47 = vadd.f32 1.0, %v2972_v3 }
 0x27b   : > { %v1386_v4 = vadd.f32 %v2543_v26, %v1385_v35  ;;  %v1693_v26 = vadd.f32 %v1641_v28, %v1438_v25  ;;  %v1701_v35 = vmul.f32 0.5, %v1694_v38  ;;  %2973 = vtanh.f32 %v1697_v39 }
 0x27c   : > { %v2652_v8 = vpop.f32.mrf.mxu0  ;;  %v1436_v28 = vunpack.c.l.bf16 %v3666_v59 }
 0x27d   : > { %1390 = vst [vmem:[#allocation5] sm:$0xff] %v1386_v4  ;;  %v1700_v4 = vmul.f32 0.5, %v1693_v26  ;;  %2975 = vtanh.f32 %v1701_v35  ;;  %v1716_v35 = vmul.f32 0.5, %v1710_v47 }
 0x27f   : > { %2977 = vtanh.f32 %v1700_v4 }
 0x288   : > { %v2974_v34 = vpop.eup %2973 }
 0x289   : > { %v1709_v39 = vadd.f32 1.0, %v2974_v34 }
 0x28a   : > { %v2976_v38 = vpop.eup %2975 }
 0x28b   : > { %v1713_v4 = vadd.f32 1.0, %v2976_v38  ;;  %v1715_v55 = vmul.f32 0.5, %v1709_v39 }
 0x28c   : > { %v2978_v26 = vpop.eup %2977 }
 0x28d   : > { %v1719_v54 = vmul.f32 0.5, %v1713_v4 }
 0x296   : > { %v1680_v8 = vpop.f32.mrf.mxu0 }
 0x297   : > { %v1691_v46 = vadd.f32 %v1680_v8, %v1436_v28 }
 0x298   : > { %v1682_v58 = vpop.f32.mrf.mxu0 }
 0x299   : > { %v1692_v45 = vadd.f32 %v1682_v58, %v1437_v40  ;;  %v1699_v40 = vmul.f32 0.5, %v1691_v46 }
 0x29a   : > { %v1684_v27 = vpop.f32.mrf.mxu0 }
 0x29b   : > { %2979 = vtanh.f32 %v1692_v45  ;;  %v1695_v25 = vadd.f32 %v1684_v27, %v1440_v24  ;;  %v1425_v45 = vld [vmem:[#allocation3 + $0x8] sm:$0xff] }
 0x29c   : > { %v1686_v31 = vpop.f32.mrf.mxu0  ;;  %v1723_v59 = vmul.f32 %v1716_v35, %v1425_v45  ;;  %v1740_v45 = vunpack.c.l.bf16 %v3680_v32 }
 0x29d   : > { %v1696_v5 = vadd.f32 %v1686_v31, %v1441_v44  ;;  %v1702_v58 = vmul.f32 0.5, %v1695_v25  ;;  %v1712_v44 = vadd.f32 1.0, %v2978_v26 }
 0x29f   : > { %2981 = vtanh.f32 %v1696_v5  ;;  %v1426_v5 = vld [vmem:[#allocation3] sm:$0xff]  ;;  %v1718_v8 = vmul.f32 0.5, %v1712_v44 }
 0x2a0   : > { %2983 = vtanh.f32 %v1699_v40  ;;  %v1724_v28 = vmul.f32 %v1719_v54, %v1426_v5  ;;  %v4003_v54 = vmov 0  }
 0x2a1   : > { %2985 = vtanh.f32 %v1702_v58 }
 0x2a8   : > { %v2980_v31 = vpop.eup %2979 }
 0x2a9   : > { %v1725_v6 = vmul.f32 %v2980_v31, %v1715_v55 }
 0x2ab   : > { %v3809_v3 = vadd.f32 %v1725_v6, %v1723_v59  ;;  %v1741_v6 = vunpack.c.h.bf16 %v3680_v32 }
 0x2ac   : > { %v2982_v27 = vpop.eup %2981 }
 0x2ad   : > { %v1726_v24 = vmul.f32 %v2982_v27, %v1718_v8  ;;  %2987 = vtanh.f32 %v3809_v3  ;;  %v2984_v46 = vpop.eup %2983  ;;  %v1743_v8 = vunpack.c.h.bf16 %v3682_v33 }
 0x2ae   : > { %v2986_v47 = vpop.eup %2985  ;;  %v1711_v25 = vadd.f32 1.0, %v2984_v46  ;;  %v1744_v46 = vunpack.c.l.bf16 %v3688_v51 }
 0x2af   : > { %v3812_v34 = vadd.f32 %v1726_v24, %v1724_v28  ;;  %v1714_v38 = vadd.f32 1.0, %v2986_v47 }
 0x2b0   : > { %v1717_v55 = vmul.f32 0.5, %v1711_v25 }
 0x2b1   : > { %2989 = vtanh.f32 %v3812_v34  ;;  %v1720_v26 = vmul.f32 0.5, %v1714_v38 }
 0x2ba   : > { %v2988_v39 = vpop.eup %2987 }
 0x2bb   : > { %v1731_v35 = vmul.f32 %v2988_v39, %v1717_v55  ;;  %v1745_v39 = vunpack.c.h.bf16 %v3688_v51 }
 0x2be   : > { %v2990_v40 = vpop.eup %2989 }
 0x2bf   : > { %v1732_v4 = vmul.f32 %v2990_v40, %v1720_v26 }
 0x2c1   : > { %v1748_v58 = vpack.c.bf16 %v1732_v4, %v1731_v35  ;;  %v1747_v35 = vunpack.c.h.bf16 %v3690_v52 }
 0x2c3   : > { %1782 = vmatmul.mubr.bf16.vlgmr.msra.gmra.mxu1 %v1748_v58  ;;  %1825 = vmatmul.mubr.bf16.vlgmr.msra.gmra.mxu0 %v1748_v58 }
 0x2c4   : > { %1896 = vmatpush1.bf16.msra.mxu1 %v3566_v9  ;;  %1939 = vmatpush1.bf16.msra.mxu0 %v3733_v37 }
 0x2c5   : > { %1897 = vmatprep.subr.bf16.mxu1 %v3568_v10  ;;  %1940 = vmatprep.subr.bf16.mxu0 %v3735_v41 }
 0x2c6   : > { %1927 = vmatprep.mubr.bf16.mxu1 %v4003_v54  ;;  %1970 = vmatprep.mubr.bf16.mxu0 %v4003_v54 }
 0x2c8   : > { %1898 = vmatpush1.bf16.msra.mxu1 %v3571_v11  ;;  %1941 = vmatpush1.bf16.msra.mxu0 %v3738_v43 }
 0x2c9   : > { %1899 = vmatprep.subr.bf16.mxu1 %v3573_v12  ;;  %1942 = vmatprep.subr.bf16.mxu0 %v3742_v42 }
 0x2cc   : > { %1900 = vmatpush1.bf16.msra.mxu1 %v3579_v13  ;;  %1943 = vmatpush1.bf16.msra.mxu0 %v3745_v48 }
 0x2cd   : > { %1901 = vmatprep.subr.bf16.mxu1 %v3582_v14  ;;  %1944 = vmatprep.subr.bf16.mxu0 %v3748_v49 }
 0x2d0   : > { %1902 = vmatpush1.bf16.msra.mxu1 %v3585_v15  ;;  %1945 = vmatpush1.bf16.msra.mxu0 %v3751_v50 }
 0x2d1   : > { %1903 = vmatprep.subr.bf16.mxu1 %v3588_v16  ;;  %1946 = vmatprep.subr.bf16.mxu0 %v3754_v56 }
 0x2d4   : > { %1904 = vmatpush1.bf16.msra.mxu1 %v3591_v17  ;;  %1947 = vmatpush1.bf16.msra.mxu0 %v3757_v57 }
 0x2d5   : > { %1905 = vmatprep.subr.bf16.mxu1 %v3594_v18  ;;  %1948 = vmatprep.subr.bf16.mxu0 %v3760_v60 }
 0x2d8   : > { %1906 = vmatpush1.bf16.msra.mxu1 %v3597_v19  ;;  %1949 = vmatpush1.bf16.msra.mxu0 %v3763_v61 }
 0x2d9   : > { %1907 = vmatprep.subr.bf16.mxu1 %v3600_v20  ;;  %1950 = vmatprep.subr.bf16.mxu0 %v3766_v62 }
 0x2dc   : > { %1908 = vmatpush1.bf16.msra.mxu1 %v3603_v21  ;;  %1951 = vmatpush1.bf16.msra.mxu0 %v3769_v53 }
 0x2dd   : > { %1909 = vmatprep.subr.bf16.mxu1 %v3606_v22  ;;  %1952 = vmatprep.subr.bf16.mxu0 %v3772_v1 }
 0x2e0   : > { %1910 = vmatpush1.bf16.msra.mxu1 %v3609_v23  ;;  %1953 = vmatpush1.bf16.msra.mxu0 %v3775_v2 }
 0x2e1   : > { %2041 = vmatprep.subr.bf16.mxu1 %v3561_v7  ;;  %2084 = vmatprep.subr.bf16.mxu0 %v3634_v36 }
 0x383   : > { %v1783_v44 = vpop.f32.mrf.mxu1  ;;  %v1826_v31 = vpop.f32.mrf.mxu0 }
 0x384   : > { %v1835_v59 = vadd.f32 %v1783_v44, %v1740_v45  ;;  %v1742_v45 = vunpack.c.l.bf16 %v3682_v33  ;;  %v1746_v44 = vunpack.c.l.bf16 %v3690_v52 }
 0x385   : > { %v1785_v5 = vpop.f32.mrf.mxu1  ;;  %v1828_v27 = vpop.f32.mrf.mxu0 }
 0x386   : > { %v1843_v28 = vmul.f32 0.5, %v1835_v59  ;;  %v1836_v24 = vadd.f32 %v1785_v5, %v1741_v6  ;;  %v1838_v47 = vadd.f32 %v1828_v27, %v1743_v8  ;;  %v1837_v59 = vadd.f32 %v1826_v31, %v1742_v45 }
 0x387   : > { %v1787_v25 = vpop.f32.mrf.mxu1  ;;  %v1830_v7 = vpop.f32.mrf.mxu0 }
 0x388   : > { %2991 = vtanh.f32 %v1843_v28  ;;  %v1844_v36 = vmul.f32 0.5, %v1836_v24  ;;  %v1839_v38 = vadd.f32 %v1787_v25, %v1744_v46  ;;  %v1841_v6 = vadd.f32 %v1830_v7, %v1746_v44 }
 0x389   : > { %v1789_v55 = vpop.f32.mrf.mxu1  ;;  %v1832_v26 = vpop.f32.mrf.mxu0  ;;  %v1845_v27 = vmul.f32 0.5, %v1837_v59 }
 0x38a   : > { %2993 = vtanh.f32 %v1844_v36  ;;  %v1846_v32 = vmul.f32 0.5, %v1839_v38  ;;  %v1840_v40 = vadd.f32 %v1789_v55, %v1745_v39  ;;  %v1842_v58 = vadd.f32 %v1832_v26, %v1747_v35 }
 0x38b   : > { %2995 = vtanh.f32 %v1838_v47  ;;  %v1848_v25 = vmul.f32 0.5, %v1841_v6 }
 0x38c   : > { %2997 = vtanh.f32 %v1846_v32  ;;  %v1847_v4 = vmul.f32 0.5, %v1840_v40 }
 0x38e   : > { %2999 = vtanh.f32 %v1847_v4 }
 0x38f   : > { %3001 = vtanh.f32 %v1842_v58 }
 0x390   : > { %3003 = vtanh.f32 %v1845_v27 }
 0x391   : > { %3005 = vtanh.f32 %v1848_v25 }
 0x395   : > { %v2992_v51 = vpop.eup %2991 }
 0x396   : > { %v1855_v5 = vadd.f32 1.0, %v2992_v51 }
 0x397   : > { %v2994_v8 = vpop.eup %2993 }
 0x398   : > { %v2996_v28 = vpop.eup %2995  ;;  %v1861_v24 = vmul.f32 0.5, %v1855_v5  ;;  %v1856_v46 = vadd.f32 1.0, %v2994_v8 }
 0x399   : > { %v2998_v47 = vpop.eup %2997 }
 0x39a   : > { %v1862_v36 = vmul.f32 0.5, %v1856_v46  ;;  %v1871_v38 = vmul.f32 %v2996_v28, %v1861_v24  ;;  %v1858_v39 = vadd.f32 1.0, %v2998_v47 }
 0x39b   : > { %v3000_v55 = vpop.eup %2999 }
 0x39c   : > { %v1869_v33 = vmul.f32 %v1862_v36, %v3809_v3  ;;  %v1864_v26 = vmul.f32 0.5, %v1858_v39  ;;  %v1859_v52 = vadd.f32 1.0, %v3000_v55  ;;  %v3002_v31 = vpop.eup %3001 }
 0x39d   : > { %v3004_v58 = vpop.eup %3003 }
 0x39e   : > { %v3858_v7 = vadd.f32 %v1871_v38, %v1869_v33  ;;  %v1865_v32 = vmul.f32 0.5, %v1859_v52  ;;  %v1872_v40 = vmul.f32 %v3002_v31, %v1864_v26  ;;  %v3006_v45 = vpop.eup %3005  ;;  %v1857_v44 = vadd.f32 1.0, %v3004_v58 }
 0x39f   : > { %v1860_v3 = vadd.f32 1.0, %v3006_v45 }
 0x3a0   : > { %v1870_v35 = vmul.f32 %v1865_v32, %v3812_v34  ;;  %3007 = vtanh.f32 %v3858_v7  ;;  %v1863_v6 = vmul.f32 0.5, %v1857_v44 }
 0x3a1   : > { %v1866_v51 = vmul.f32 0.5, %v1860_v3 }
 0x3a2   : > { %v3862_v4 = vadd.f32 %v1872_v40, %v1870_v35 }
 0x3a4   : > { %3009 = vtanh.f32 %v3862_v4 }
 0x3ad   : > { %v3008_v59 = vpop.eup %3007 }
 0x3ae   : > { %v1877_v8 = vmul.f32 %v3008_v59, %v1863_v6 }
 0x3b1   : > { %v3010_v5 = vpop.eup %3009 }
 0x3b2   : > { %v1878_v27 = vmul.f32 %v3010_v5, %v1866_v51 }
 0x3b4   : > { %v1894_v28 = vpack.c.bf16 %v1878_v27, %v1877_v8 }
 0x3b6   : > { %1928 = vmatmul.mubr.bf16.vlgmr.msra.gmra.mxu1 %v1894_v28  ;;  %1971 = vmatmul.mubr.bf16.vlgmr.msra.gmra.mxu0 %v1894_v28 }
 0x3b7   : > { %2042 = vmatpush1.bf16.msra.mxu1 %v3566_v9  ;;  %2085 = vmatpush1.bf16.msra.mxu0 %v3733_v37  ;;  %v1886_v9 = vunpack.c.l.bf16 %v3696_v63 }
 0x3b8   : > { %2043 = vmatprep.subr.bf16.mxu1 %v3568_v10  ;;  %2086 = vmatprep.subr.bf16.mxu0 %v3735_v41  ;;  %v1891_v41 = vunpack.c.h.bf16 %v3704_v29 }
 0x3b9   : > { %2073 = vmatprep.mubr.bf16.mxu1 %v4003_v54  ;;  %2116 = vmatprep.mubr.bf16.mxu0 %v4003_v54 }
 0x3bb   : > { %2044 = vmatpush1.bf16.msra.mxu1 %v3571_v11  ;;  %2087 = vmatpush1.bf16.msra.mxu0 %v3738_v43 }
 0x3bc   : > { %2045 = vmatprep.subr.bf16.mxu1 %v3573_v12  ;;  %2088 = vmatprep.subr.bf16.mxu0 %v3742_v42 }
 0x3bf   : > { %2046 = vmatpush1.bf16.msra.mxu1 %v3579_v13  ;;  %2089 = vmatpush1.bf16.msra.mxu0 %v3745_v48  ;;  %v1887_v13 = vunpack.c.h.bf16 %v3696_v63 }
 0x3c0   : > { %2047 = vmatprep.subr.bf16.mxu1 %v3582_v14  ;;  %2090 = vmatprep.subr.bf16.mxu0 %v3748_v49  ;;  %v1893_v49 = vunpack.c.h.bf16 %v3706_v30 }
 0x3c3   : > { %2048 = vmatpush1.bf16.msra.mxu1 %v3585_v15  ;;  %2091 = vmatpush1.bf16.msra.mxu0 %v3751_v50  ;;  %v1889_v15 = vunpack.c.h.bf16 %v3698_v0 }
 0x3c4   : > { %2049 = vmatprep.subr.bf16.mxu1 %v3588_v16  ;;  %2092 = vmatprep.subr.bf16.mxu0 %v3754_v56 }
 0x3c7   : > { %2050 = vmatpush1.bf16.msra.mxu1 %v3591_v17  ;;  %2093 = vmatpush1.bf16.msra.mxu0 %v3757_v57  ;;  %v1888_v57 = vunpack.c.l.bf16 %v3698_v0 }
 0x3c8   : > { %2051 = vmatprep.subr.bf16.mxu1 %v3594_v18  ;;  %2094 = vmatprep.subr.bf16.mxu0 %v3760_v60  ;;  %v1892_v60 = vunpack.c.l.bf16 %v3706_v30 }
 0x3cb   : > { %2052 = vmatpush1.bf16.msra.mxu1 %v3597_v19  ;;  %2095 = vmatpush1.bf16.msra.mxu0 %v3763_v61  ;;  %v1890_v19 = vunpack.c.l.bf16 %v3704_v29 }
 0x3cc   : > { %2053 = vmatprep.subr.bf16.mxu1 %v3600_v20  ;;  %2096 = vmatprep.subr.bf16.mxu0 %v3766_v62 }
 0x3cf   : > { %2054 = vmatpush1.bf16.msra.mxu1 %v3603_v21  ;;  %2097 = vmatpush1.bf16.msra.mxu0 %v3769_v53 }
 0x3d0   : > { %2055 = vmatprep.subr.bf16.mxu1 %v3606_v22  ;;  %2098 = vmatprep.subr.bf16.mxu0 %v3772_v1 }
 0x3d3   : > { %2056 = vmatpush1.bf16.msra.mxu1 %v3609_v23  ;;  %2099 = vmatpush1.bf16.msra.mxu0 %v3775_v2 }
 0x476   : > { %v1929_v10 = vpop.f32.mrf.mxu1  ;;  %v1972_v11 = vpop.f32.mrf.mxu0 }
 0x477   : > { %v1981_v12 = vadd.f32 %v1929_v10, %v1886_v9  ;;  %v1983_v61 = vadd.f32 %v1972_v11, %v1888_v57 }
 0x478   : > { %v1931_v14 = vpop.f32.mrf.mxu1  ;;  %v1974_v16 = vpop.f32.mrf.mxu0 }
 0x479   : > { %v1989_v17 = vmul.f32 0.5, %v1981_v12  ;;  %v1982_v18 = vadd.f32 %v1931_v14, %v1887_v13  ;;  %v1984_v20 = vadd.f32 %v1974_v16, %v1889_v15  ;;  %v1991_v2 = vmul.f32 0.5, %v1983_v61  ;;  %v4005_v13 = vld [vmem:[#allocation24_spill] sm:$0xff] }
 0x47a   : > { %v1933_v21 = vpop.f32.mrf.mxu1  ;;  %v1976_v22 = vpop.f32.mrf.mxu0  ;;  %v2035_v14 = vunpack.c.h.bf16 %v4005_v13 }
 0x47b   : > { %3011 = vtanh.f32 %v1989_v17  ;;  %v1990_v23 = vmul.f32 0.5, %v1982_v18  ;;  %v1985_v37 = vadd.f32 %v1933_v21, %v1890_v19  ;;  %v1987_v62 = vadd.f32 %v1976_v22, %v1892_v60  ;;  %v4006_v18 = vld [vmem:[#allocation25_spill] sm:$0xff] }
 0x47c   : > { %v1935_v43 = vpop.f32.mrf.mxu1  ;;  %v1978_v42 = vpop.f32.mrf.mxu0  ;;  %v2036_v19 = vunpack.c.l.bf16 %v4006_v18  ;;  %v2034_v60 = vunpack.c.l.bf16 %v4005_v13 }
 0x47d   : > { %3013 = vtanh.f32 %v1990_v23  ;;  %v1992_v63 = vmul.f32 0.5, %v1985_v37  ;;  %v1986_v48 = vadd.f32 %v1935_v43, %v1891_v41  ;;  %v1988_v56 = vadd.f32 %v1978_v42, %v1893_v49  ;;  %v4007_v49 = vld [vmem:[#allocation26_spill] sm:$0xff] }
 0x47e   : > { %3015 = vtanh.f32 %v1984_v20  ;;  %v1994_v46 = vmul.f32 0.5, %v1987_v62  ;;  %v2037_v41 = vunpack.c.h.bf16 %v4006_v18  ;;  %v2038_v62 = vunpack.c.l.bf16 %v4007_v49 }
 0x47f   : > { %3017 = vtanh.f32 %v1992_v63  ;;  %v1993_v50 = vmul.f32 0.5, %v1986_v48 }
 0x481   : > { %3019 = vtanh.f32 %v1993_v50  ;;  %v2039_v50 = vunpack.c.h.bf16 %v4007_v49 }
 0x482   : > { %3021 = vtanh.f32 %v1988_v56 }
 0x483   : > { %3023 = vtanh.f32 %v1991_v2 }
 0x484   : > { %3025 = vtanh.f32 %v1994_v46 }
 0x488   : > { %v3012_v29 = vpop.eup %3011 }
 0x489   : > { %v2001_v53 = vadd.f32 1.0, %v3012_v29 }
 0x48a   : > { %v3014_v1 = vpop.eup %3013 }
 0x48b   : > { %v3016_v34 = vpop.eup %3015  ;;  %v2007_v54 = vmul.f32 0.5, %v2001_v53  ;;  %v2002_v24 = vadd.f32 1.0, %v3014_v1 }
 0x48c   : > { %v3018_v25 = vpop.eup %3017 }
 0x48d   : > { %v2008_v47 = vmul.f32 0.5, %v2002_v24  ;;  %v2017_v36 = vmul.f32 %v3016_v34, %v2007_v54  ;;  %v2004_v38 = vadd.f32 1.0, %v3018_v25 }
 0x48e   : > { %v3020_v39 = vpop.eup %3019 }
 0x48f   : > { %v2015_v0 = vmul.f32 %v2008_v47, %v3858_v7  ;;  %v2010_v55 = vmul.f32 0.5, %v2004_v38  ;;  %v2005_v30 = vadd.f32 1.0, %v3020_v39  ;;  %v3022_v33 = vpop.eup %3021 }
 0x490   : > { %v3024_v35 = vpop.eup %3023 }
 0x491   : > { %v3906_v26 = vadd.f32 %v2017_v36, %v2015_v0  ;;  %v2011_v52 = vmul.f32 0.5, %v2005_v30  ;;  %v2018_v31 = vmul.f32 %v3022_v33, %v2010_v55  ;;  %v3026_v58 = vpop.eup %3025  ;;  %v2003_v45 = vadd.f32 1.0, %v3024_v35 }
 0x492   : > { %v2006_v7 = vadd.f32 1.0, %v3026_v58 }
 0x493   : > { %v2016_v32 = vmul.f32 %v2011_v52, %v3862_v4  ;;  %3027 = vtanh.f32 %v3906_v26  ;;  %v2009_v3 = vmul.f32 0.5, %v2003_v45  ;;  %v4004_v4 = vld [vmem:[#allocation23_spill] sm:$0xff] }
 0x494   : > { %v2012_v59 = vmul.f32 0.5, %v2006_v7  ;;  %v2032_v27 = vunpack.c.l.bf16 %v4004_v4  ;;  %v2033_v11 = vunpack.c.h.bf16 %v4004_v4 }
 0x495   : > { %v3910_v40 = vadd.f32 %v2018_v31, %v2016_v32 }
 0x497   : > { %3029 = vtanh.f32 %v3910_v40 }
 0x4a0   : > { %v3028_v44 = vpop.eup %3027 }
 0x4a1   : > { %v2023_v51 = vmul.f32 %v3028_v44, %v2009_v3 }
 0x4a4   : > { %v3030_v6 = vpop.eup %3029 }
 0x4a5   : > { %v2024_v5 = vmul.f32 %v3030_v6, %v2012_v59 }
 0x4a7   : > { %v2040_v8 = vpack.c.bf16 %v2024_v5, %v2023_v51 }
 0x4a9   : > { %2074 = vmatmul.mubr.bf16.vlgmr.msra.gmra.mxu1 %v2040_v8  ;;  %2117 = vmatmul.mubr.bf16.vlgmr.msra.gmra.mxu0 %v2040_v8 }
 0x569   : > { %v2075_v28 = vpop.f32.mrf.mxu1  ;;  %v2118_v9 = vpop.f32.mrf.mxu0 }
 0x56a   : > { %v2127_v10 = vadd.f32 %v2075_v28, %v2032_v27  ;;  %v2129_v61 = vadd.f32 %v2118_v9, %v2034_v60 }
 0x56b   : > { %v2077_v12 = vpop.f32.mrf.mxu1  ;;  %v2120_v15 = vpop.f32.mrf.mxu0 }
 0x56c   : > { %v2135_v16 = vmul.f32 0.5, %v2127_v10  ;;  %v2128_v17 = vadd.f32 %v2077_v12, %v2033_v11  ;;  %v2130_v20 = vadd.f32 %v2120_v15, %v2035_v14  ;;  %v2137_v29 = vmul.f32 0.5, %v2129_v61 }
 0x56d   : > { %v2079_v21 = vpop.f32.mrf.mxu1  ;;  %v2122_v22 = vpop.f32.mrf.mxu0 }
 0x56e   : > { %3031 = vtanh.f32 %v2135_v16  ;;  %v2136_v23 = vmul.f32 0.5, %v2128_v17  ;;  %v2131_v37 = vadd.f32 %v2079_v21, %v2036_v19  ;;  %v2133_v53 = vadd.f32 %v2122_v22, %v2038_v62 }
 0x56f   : > { %v2081_v43 = vpop.f32.mrf.mxu1  ;;  %v2124_v42 = vpop.f32.mrf.mxu0 }
 0x570   : > { %3033 = vtanh.f32 %v2136_v23  ;;  %v2138_v63 = vmul.f32 0.5, %v2131_v37  ;;  %v2132_v48 = vadd.f32 %v2081_v43, %v2037_v41  ;;  %v2134_v57 = vadd.f32 %v2124_v42, %v2039_v50 }
 0x571   : > { %3035 = vtanh.f32 %v2130_v20  ;;  %v2140_v25 = vmul.f32 0.5, %v2133_v53 }
 0x572   : > { %3037 = vtanh.f32 %v2138_v63  ;;  %v2139_v56 = vmul.f32 0.5, %v2132_v48 }
 0x574   : > { %3039 = vtanh.f32 %v2139_v56 }
 0x575   : > { %3041 = vtanh.f32 %v2134_v57 }
 0x576   : > { %3043 = vtanh.f32 %v2137_v29 }
 0x577   : > { %3045 = vtanh.f32 %v2140_v25 }
 0x57b   : > { %v3032_v1 = vpop.eup %3031 }
 0x57c   : > { %v2147_v2 = vadd.f32 1.0, %v3032_v1 }
 0x57d   : > { %v3034_v34 = vpop.eup %3033 }
 0x57e   : > { %v3036_v54 = vpop.eup %3035  ;;  %v2153_v24 = vmul.f32 0.5, %v2147_v2  ;;  %v2148_v46 = vadd.f32 1.0, %v3034_v34 }
 0x57f   : > { %v3038_v47 = vpop.eup %3037 }
 0x580   : > { %v2154_v36 = vmul.f32 0.5, %v2148_v46  ;;  %v2163_v38 = vmul.f32 %v3036_v54, %v2153_v24  ;;  %v2150_v39 = vadd.f32 1.0, %v3038_v47 }
 0x581   : > { %v3040_v0 = vpop.eup %3039 }
 0x582   : > { %v2161_v55 = vmul.f32 %v2154_v36, %v3906_v26  ;;  %v2156_v30 = vmul.f32 0.5, %v2150_v39  ;;  %v2151_v33 = vadd.f32 1.0, %v3040_v0  ;;  %v3042_v52 = vpop.eup %3041 }
 0x583   : > { %v3044_v7 = vpop.eup %3043 }
 0x584   : > { %v2165_v31 = vadd.f32 %v2163_v38, %v2161_v55  ;;  %v2157_v32 = vmul.f32 0.5, %v2151_v33  ;;  %v2164_v35 = vmul.f32 %v3042_v52, %v2156_v30  ;;  %v2149_v44 = vadd.f32 1.0, %v3044_v7  ;;  %v3046_v3 = vpop.eup %3045 }
 0x585   : > { %v2152_v6 = vadd.f32 1.0, %v3046_v3 }
 0x586   : > { %3047 = vtanh.f32 %v2165_v31  ;;  %2173 = vst [vmem:[#allocation3 + $0x8] sm:$0xff] %v2165_v31  ;;  %v2162_v58 = vmul.f32 %v2157_v32, %v3910_v40  ;;  %v2155_v59 = vmul.f32 0.5, %v2149_v44 }
 0x587   : > { %v2158_v5 = vmul.f32 0.5, %v2152_v6 }
 0x588   : > { %v2166_v45 = vadd.f32 %v2164_v35, %v2162_v58 }
 0x58a   : > { %3049 = vtanh.f32 %v2166_v45  ;;  %2174 = vst [vmem:[#allocation3] sm:$0xff] %v2166_v45 }
 0x593   : > { %v3048_v26 = vpop.eup %3047 }
 0x594   : > { %v2169_v51 = vmul.f32 %v3048_v26, %v2155_v59 }
 0x596   : > { %2171 = vst [vmem:[#allocation2] sm:$0xff] %v2169_v51  ;;  %2178 = sbr.rel (%p2584_p12) target bundleno = 1980 (0x7bc), region = 88 }
 0x597   : > { %v3050_v8 = vpop.eup %3049 }
 0x598   : > { %v2170_v4 = vmul.f32 %v3050_v8, %v2158_v5 }
 0x59a   : > { %2172 = vst [vmem:[#allocation2 + $0x8] sm:$0xff] %v2170_v4 }
 0x59b   : > { %v3051_v27 = vld [vmem:[#allocation14 + $0x38] sm:$0xff]   ;;  %v3331_v40 = vmov 0.0   ;;  %v3052_v28 = vld [vmem:[#allocation14 + $0x30] sm:$0xff]   ;;  %vm3332_vm1 = vmmov 0   ;;  %v3053_v9 = vld [vmem:[#allocation14 + $0x28] sm:$0xff]   ;;  %v2179_v15 = vpack.c.bf16 %v2170_v4, %v2169_v51 }
 0x59c   : > { %2653 = vmatprep.subr.bf16.mxu0 %v3331_v40  ;;  %2669 = vmatprep.mubr.msk.bf16.mxu0 %vm3332_vm1, %v3331_v40  ;;  %v3054_v10 = vld [vmem:[#allocation14 + $0x20] sm:$0xff]   ;;  %v3055_v11 = vld [vmem:[#allocation14 + $0x18] sm:$0xff]   ;;  %v3056_v12 = vld [vmem:[#allocation14 + $0x10] sm:$0xff]  }
 0x59d   : > { %2654 = vmatpush3.bf16.msra.mxu0 %v3051_v27  ;;  %v3057_v13 = vld [vmem:[#allocation14 + $0x8] sm:$0xff]   ;;  %v3058_v14 = vld [vmem:[#allocation14] sm:$0xff]   ;;  %v2196_v16 = vld [vmem:[#allocation5 + $0x8] sm:$0xff] }
 0x59e   : > { %2655 = vmatprep.subr.bf16.mxu0 %v3331_v40  ;;  %v2197_v20 = vld [vmem:[#allocation5] sm:$0xff] }
 0x5a1   : > { %2656 = vmatpush3.bf16.msra.mxu0 %v3052_v28 }
 0x5a2   : > { %2657 = vmatprep.subr.bf16.mxu0 %v3331_v40 }
 0x5a5   : > { %2658 = vmatpush3.bf16.msra.mxu0 %v3053_v9 }
 0x5a6   : > { %2659 = vmatprep.subr.bf16.mxu0 %v3331_v40 }
 0x5a9   : > { %2660 = vmatpush3.bf16.msra.mxu0 %v3054_v10 }
 0x5aa   : > { %2661 = vmatprep.subr.bf16.mxu0 %v3331_v40 }
 0x5ad   : > { %2662 = vmatpush3.bf16.msra.mxu0 %v3055_v11 }
 0x5ae   : > { %2663 = vmatprep.subr.bf16.mxu0 %v3331_v40 }
 0x5b1   : > { %2664 = vmatpush3.bf16.msra.mxu0 %v3056_v12 }
 0x5b2   : > { %2665 = vmatprep.subr.bf16.mxu0 %v3331_v40 }
 0x5b5   : > { %2666 = vmatpush3.bf16.msra.mxu0 %v3057_v13 }
 0x5b6   : > { %2667 = vmatprep.subr.bf16.mxu0 %v3331_v40 }
 0x5b9   : > { %2668 = vmatpush3.bf16.msra.mxu0 %v3058_v14 }
 0x5bc   : > { %2670 = vmatmul.mubr.bf16.vlgmr.msra.gmra.mxu0 %v2179_v15 }
 0x67c   : > { %v2280_v17 = vpop.f32.mrf.mxu0 }
 0x67d   : > { %v2281_v18 = vadd.f32 %v2280_v17, %v2196_v16 }
 0x67e   : > { %v2671_v19 = vpop.f32.mrf.mxu0 }
 0x67f   : > { %2287 = vmax.xlane.f32.xlu0 %v2281_v18 }
 0x680   : > { %v2283_v21 = vpop.f32.mrf.mxu0 }
 0x681   : > { %v2284_v22 = vadd.f32 %v2283_v21, %v2197_v20 }
 0x682   : > { %v2672_v23 = vpop.f32.mrf.mxu0 }
 0x683   : > { %2289 = vmax.xlane.f32.xlu0 %v2284_v22 }
 0x708   : > { %v2288_v37 = vpop.xlane.xlu0 %2287 }
 0x709   : > { %v2291_v41 = vsub.f32 %v2281_v18, %v2288_v37 }
 0x70b   : > { %v2293_v43 = vmul.f32 1.442695, %v2291_v41 }
 0x70c   : > { %v2290_v42 = vpop.xlane.xlu0 %2289 }
 0x70d   : > { %v2292_v63 = vsub.f32 %v2284_v22, %v2290_v42  ;;  %3059 = vpow2.f32 %v2293_v43 }
 0x70f   : > { %v2295_v48 = vmul.f32 1.442695, %v2292_v63 }
 0x711   : > { %3061 = vpow2.f32 %v2295_v48 }
 0x71a   : > { %v3060_v49 = vpop.eup %3059 }
 0x71b   : > { %2297 = vadd.xlane.f32.xlu1 %v3060_v49 }
 0x71e   : > { %v3062_v50 = vpop.eup %3061 }
 0x71f   : > { %2299 = vadd.xlane.f32.xlu1 %v3062_v50 }
 0x7a4   : > { %v2298_v56 = vpop.xlane.xlu1 %2297 }
 0x7a5   : > { %3063 = vlog2.f32 %v2298_v56 }
 0x7a8   : > { %v2300_v57 = vpop.xlane.xlu1 %2299 }
 0x7a9   : > { %3065 = vlog2.f32 %v2300_v57 }
 0x7b2   : > { %v3064_v60 = vpop.eup %3063 }
 0x7b3   : > { %v2302_v61 = vmul.f32 0.6931472, %v3064_v60 }
 0x7b5   : > { %v2305_v62 = vsub.f32 %v2291_v41, %v2302_v61 }
 0x7b6   : > { %v3066_v29 = vpop.eup %3065 }
 0x7b7   : > { %2307 = vst [vmem:[#allocation17] sm:$0xff] %v2305_v62  ;;  %v2304_v53 = vmul.f32 0.6931472, %v3066_v29 }
 0x7b9   : > { %v2306_v1 = vsub.f32 %v2292_v63, %v2304_v53 }
 0x7bb   : > { %2308 = vst [vmem:[#allocation17 + $0x8] sm:$0xff] %v2306_v1 }
 0x7bc PF: > { %s4008_s12 = sadd.s32 4294967295, %s3315_s14   ;;  %s3333_s30 = smov [#allocation17]  }
 0x7bd   : > { %p3926_p13 = scmp.eq.s32.totalorder %s4008_s12, 1  ;;  %s2318_s24 = sshll.u32 %s3333_s30, 4  ;;  %s2319_s24 = int_to_ptr.vmem [resolvable:$true] %s2318_s24 }
 0x7be   : > { %s3225_s25 = scalar_lea.vmem %s2319_s24, 256  ;;  %p3232_p3 = scmp.lt.s32.totalorder %s2319_s24, %s2319_s24 }
 0x7bf   : > { %p3226_p5 = scmp.ne.s32.totalorder %s2319_s24, %s3225_s25  ;;  %p3233_p4 = scmp.lt.s32.totalorder %s3225_s25, %s3225_s25 }
 0x7c1   : > { %p3227_p0 = pnand %p3226_p5, %p3926_p13  ;;  %p3234_p6 = por %p3233_p4, %p3232_p3 }
 0x7c3   : > { %p3228_p2 = pneg %p3227_p0 }
 0x7c5   : > { %p3235_p7 = pnand %p3234_p6, %p3228_p2 }
 0x7c7   : > { %3238 = shalt.err (!%p3235_p7)
}
 0x7c8   : > { %s3334_s15 = smov 128   ;;  %s3335_s29 = smov 8  }
 0x7c9   : > { %2696 = dma.vmem_to_hbm [thread:$0]  (%p3926_p13), %s2319_s24, 256, %s3968_s9, [#allocation8], %s3334_s15, %s3334_s15, %s3335_s29  }
 0x7ca   : > { %3290 = dma.done.wait (%p3926_p13), [#allocation8], 256  }
 0x7cb   : > { %3292 = vsyncadd (%p3926_p13), [#allocation8], 4294967040 }
 0x7cc PF: > { %s26_s14 = sadd.s32 1, %s3315_s14   ;;  %s4010_s30 = smov %s3299_s10 }
 0x7cd   : > { %p23_p8 = scmp.ge.s32.totalorder %s26_s14, 4   ;;  %s4011_s10 = smov %s3303_s11 }
 0x7ce   : > { %s4012_s11 = smov %s3509_s18  ;;  %s4013_s12 = smov %s3311_s13 }
 0x7cf   : > { %s4014_s13 = smov %s4016_s20  ;;  %25 = sbr.rel (!%p23_p8) target bundleno = 12 (0xc), region = 127 }
 0x7d4   :  { %2334 = vsyncpa [#allocation7], 1 }
 0x7d5   :  { %2336 = vsyncpa [#allocation7 + $0x1], 1 }
 0x7d6   :  { %2337 = vsyncpa [#allocation10], 1 }
 0x7d7   :  { %2338 = vsyncpa [#allocation13], 1 }
 0x7d8   :  { %2339 = vsyncpa [#allocation16], 1 }
 0x7d9   :  { %2340 = vsyncpa [#allocation8], 1 }
 0x7da   :  { %2342 = vsyncpa [#allocation8 + $0x1], 1 }

</bundles_post_ra>
